<compile_context>
chip_gen: v6e
topology: v6e:2x2x1
jax: 0.10.0
libtpu: 0.0.40
codegen_flags: <defaults>
</compile_context>

<pallas_src>
import numpy as np
import jax
import jax.numpy as jnp
from jax.experimental import pallas as pl
from jax.experimental.pallas import tpu as pltpu


# ----------------------------- GELU (tanh form) ------------------------------
_SQRT_2_OVER_PI = 0.7978845608028654
_GELU_C = 0.044715


def _gelu_tanh(x):
    # tanh-approximate GELU.  jnp.tanh lowers to the EUP (separate bundle slot
    # from the VALU), so the elementwise chain is ~8 VPU ops/element vs ~20-28
    # for the A&S erf approximation -> binding VALU slot roughly halved.
    u = _SQRT_2_OVER_PI * (x + _GELU_C * x * x * x)
    return 0.5 * x * (1.0 + jnp.tanh(u))


# --------------------------------- kernel ------------------------------------
def ffn_kernel(x_ref, w1_ref, b1_ref, w2_ref, b2_ref, o_ref):
    """Fused FeedForward: Linear -> GELU(tanh) -> Linear.
    x block (tb, dim) f32; w1/w2 bf16 (MXU operands); biases f32; out f32."""
    x16 = x_ref[...].astype(jnp.bfloat16)
    h = jnp.dot(x16, w1_ref[...], preferred_element_type=jnp.float32)
    h = _gelu_tanh(h + b1_ref[...])                      # f32 VPU + EUP tanh
    y = jnp.dot(h.astype(jnp.bfloat16), w2_ref[...],
                preferred_element_type=jnp.float32)
    o_ref[...] = y + b2_ref[...]
    # TODO(synk): nn.Dropout with p > 0 (training mode) is not implemented;
    # p = 0.0 (eval) is the identity, so nothing to emit.


# ----------------------------- tile selection ---------------------------------
def _pick_tile(T):
    """Token-tile size (sublane axis):
      - T <= 256: single full-array block.
      - otherwise: >= 4 grid steps when possible (two per v7x TensorCore so
        step i+1's DMA hides under step i), at least 256 rows per tile,
        capped at 1024 to amortize the ~0.35us/grid-step overhead on long
        sequences; always a multiple of 8 (sublane tiling)."""
    if T <= 256:
        return T
    tb = max(256, min(1024, T // 4))
    return tb - (tb % 8)


# ---------------------------- pallas_call wrapper -----------------------------
def feed_forward(x, prepared_params):
    """x: (..., dim) float32 -> (..., dim) float32.
    `prepared_params` must come from prepare_params() (bf16 weights)."""
    dim = x.shape[-1]
    inner = prepared_params['w1'].shape[-1]
    lead = x.shape[:-1]

    tokens = x.reshape(-1, dim)
    T = tokens.shape[0]

    tb = _pick_tile(T)
    rem = (-T) % tb
    if rem:                               # not hit in __main__ (1024 % 256 == 0)
        tokens = jnp.pad(tokens, ((0, rem), (0, 0)))
    Tp = T + rem

    out = pl.pallas_call(
        ffn_kernel,
        out_shape=jax.ShapeDtypeStruct((Tp, dim), jnp.float32),
        grid=(Tp // tb,),
        in_specs=[
            pl.BlockSpec((tb, dim), lambda i: (i, 0)),       # x tile
            pl.BlockSpec((dim, inner), lambda i: (0, 0)),    # w1 (resident)
            pl.BlockSpec((1, inner), lambda i: (0, 0)),      # b1
            pl.BlockSpec((inner, dim), lambda i: (0, 0)),    # w2 (resident)
            pl.BlockSpec((1, dim), lambda i: (0, 0)),        # b2
        ],
        out_specs=pl.BlockSpec((tb, dim), lambda i: (i, 0)),
        compiler_params=pltpu.CompilerParams(
            dimension_semantics=("parallel",),        # megacore-shard token axis
            vmem_limit_bytes=32 * 1024 * 1024),       # headroom above v5e 16MiB default
    )(tokens, prepared_params['w1'], prepared_params['b1'],
      prepared_params['w2'], prepared_params['b2'])

    if rem:
        out = out[:T]
    return out.reshape(*lead, dim)


# ---------------------- one-time parameter preparation ------------------------
def prepare_params(params):
    """Cast matmul weights to bf16 ONCE (MXU operand dtype) instead of on every
    forward call; biases stay f32 for the VPU bias adds."""
    return {
        'w1': params['w1'].astype(jnp.bfloat16),
        'w2': params['w2'].astype(jnp.bfloat16),
        'b1': params['b1'].astype(jnp.float32).reshape(1, -1),
        'b2': params['b2'].astype(jnp.float32).reshape(1, -1),
    }


# ------------------------- pure-JAX reference (check) -------------------------
def reference_forward(x, params):
    # Exact (erf) GELU, matching PyTorch nn.GELU() default semantics.
    h = jax.nn.gelu(x @ params['w1'] + params['b1'], approximate=False)
    return h @ params['w2'] + params['b2']


# ------------------------------ parameter init --------------------------------
def init_params(key, dim, mult=4):
    inner = int(dim * mult)
    k1, k2, k3, k4 = jax.random.split(key, 4)
    lim1 = 1.0 / np.sqrt(dim)      # PyTorch nn.Linear default init range
    lim2 = 1.0 / np.sqrt(inner)
    return {
        'w1': jax.random.uniform(k1, (dim, inner), jnp.float32, -lim1, lim1),
        'b1': jax.random.uniform(k2, (1, inner), jnp.float32, -lim1, lim1),
        'w2': jax.random.uniform(k3, (inner, dim), jnp.float32, -lim2, lim2),
        'b2': jax.random.uniform(k4, (1, dim), jnp.float32, -lim2, lim2),
    }


# ------------------------------------ main ------------------------------------
if __name__ == "__main__":
    B, S, DIM, MULT = 2, 512, 128, 4      # 1024 tokens -> tb=256 -> 4 parallel steps
    key = jax.random.PRNGKey(0)
    kp, kx = jax.random.split(key)
    params = init_params(kp, DIM, MULT)
    fast_params = prepare_params(params)           # one-time bf16 weight cast
    x = jax.random.normal(kx, (B, S, DIM), dtype=jnp.float32)

    out = jax.block_until_ready(feed_forward(x, fast_params))
    assert out.shape == x.shape

    ref = reference_forward(x, params)
    err = float(jnp.max(jnp.abs(out - ref)))
    # bf16 MXU operands (+~1e-3) and tanh-GELU vs exact erf (<~3e-3 in the
    # activation, well-averaged by the second matmul): a few 1e-3 absolute
    # error expected against the exact-erf f32 reference.
    assert np.isfinite(err) and err < 5e-2, f"max abs err {err}"
    print("KERNEL_OK")
</pallas_src>

<mosaic_0001>
module attributes {stable_mosaic.version = 11 : i64} {
  func.func @ffn_kernel(%arg0: i32, %arg1: memref<256x128xf32, #tpu.memory_space<vmem>>, %arg2: memref<128x512xbf16, #tpu.memory_space<vmem>>, %arg3: memref<1x512xf32, #tpu.memory_space<vmem>>, %arg4: memref<512x128xbf16, #tpu.memory_space<vmem>>, %arg5: memref<1x128xf32, #tpu.memory_space<vmem>>, %arg6: memref<256x128xf32, #tpu.memory_space<vmem>>) attributes {dimension_semantics = [#tpu.dimension_semantics<parallel>], iteration_bounds = array<i64: 4>, scalar_prefetch = 0 : i64, scratch_operands = 0 : i64, tpu.core_type = #tpu.core_type<tc>, window_params = [{transform_indices = @transform_0, window_bounds = array<i64: 256, 128>}, {pipeline_mode = #tpu.pipeline_mode<synchronous>, transform_indices = @transform_1, window_bounds = array<i64: 128, 512>}, {pipeline_mode = #tpu.pipeline_mode<synchronous>, transform_indices = @transform_2, window_bounds = array<i64: 1, 512>}, {pipeline_mode = #tpu.pipeline_mode<synchronous>, transform_indices = @transform_3, window_bounds = array<i64: 512, 128>}, {pipeline_mode = #tpu.pipeline_mode<synchronous>, transform_indices = @transform_4, window_bounds = array<i64: 1, 128>}, {transform_indices = @transform_5, window_bounds = array<i64: 256, 128>}]} {
    %c0 = arith.constant 0 : index
    %c0_0 = arith.constant 0 : index
    %0 = vector.load %arg1[%c0, %c0_0] : memref<256x128xf32, #tpu.memory_space<vmem>>, vector<256x128xf32>
    %1 = arith.truncf %0 : vector<256x128xf32> to vector<256x128xbf16>
    %c0_1 = arith.constant 0 : index
    %c0_2 = arith.constant 0 : index
    %2 = vector.load %arg2[%c0_1, %c0_2] : memref<128x512xbf16, #tpu.memory_space<vmem>>, vector<128x512xbf16>
    %cst = arith.constant dense<0.000000e+00> : vector<256x512xf32>
    %3 = tpu.matmul %1, %2, %cst {dimension_numbers = #tpu.dot_dimension_numbers<[1], [0], [0], [1], [0, 0, 1, 1], [], []>} : vector<256x128xbf16>, vector<128x512xbf16>, vector<256x512xf32> -> vector<256x512xf32>
    %c0_3 = arith.constant 0 : index
    %c0_4 = arith.constant 0 : index
    %4 = vector.load %arg3[%c0_3, %c0_4] : memref<1x512xf32, #tpu.memory_space<vmem>>, vector<1x512xf32>
    %5 = vector.broadcast %4 : vector<1x512xf32> to vector<256x512xf32>
    %6 = arith.addf %3, %5 : vector<256x512xf32>
    %cst_5 = arith.constant 4.471500e-02 : f32
    %7 = vector.broadcast %cst_5 : f32 to vector<256x512xf32>
    %8 = arith.mulf %7, %6 : vector<256x512xf32>
    %9 = arith.mulf %8, %6 : vector<256x512xf32>
    %10 = arith.mulf %9, %6 : vector<256x512xf32>
    %11 = arith.addf %6, %10 : vector<256x512xf32>
    %cst_6 = arith.constant 0.797884583 : f32
    %12 = vector.broadcast %cst_6 : f32 to vector<256x512xf32>
    %13 = arith.mulf %12, %11 : vector<256x512xf32>
    %cst_7 = arith.constant 5.000000e-01 : f32
    %14 = vector.broadcast %cst_7 : f32 to vector<256x512xf32>
    %15 = arith.mulf %14, %6 : vector<256x512xf32>
    %16 = math.tanh %13 : vector<256x512xf32>
    %cst_8 = arith.constant 1.000000e+00 : f32
    %17 = vector.broadcast %cst_8 : f32 to vector<256x512xf32>
    %18 = arith.addf %17, %16 : vector<256x512xf32>
    %19 = arith.mulf %15, %18 : vector<256x512xf32>
    %20 = arith.truncf %19 : vector<256x512xf32> to vector<256x512xbf16>
    %c0_9 = arith.constant 0 : index
    %c0_10 = arith.constant 0 : index
    %21 = vector.load %arg4[%c0_9, %c0_10] : memref<512x128xbf16, #tpu.memory_space<vmem>>, vector<512x128xbf16>
    %cst_11 = arith.constant dense<0.000000e+00> : vector<256x128xf32>
    %22 = tpu.matmul %20, %21, %cst_11 {dimension_numbers = #tpu.dot_dimension_numbers<[1], [0], [0], [1], [0, 0, 1, 1], [], []>} : vector<256x512xbf16>, vector<512x128xbf16>, vector<256x128xf32> -> vector<256x128xf32>
    %c0_12 = arith.constant 0 : index
    %c0_13 = arith.constant 0 : index
    %23 = vector.load %arg5[%c0_12, %c0_13] : memref<1x128xf32, #tpu.memory_space<vmem>>, vector<1x128xf32>
    %24 = vector.broadcast %23 : vector<1x128xf32> to vector<256x128xf32>
    %25 = arith.addf %22, %24 : vector<256x128xf32>
    %c0_14 = arith.constant 0 : index
    %c0_15 = arith.constant 0 : index
    %26 = vector.load %arg6[%c0_14, %c0_15] : memref<256x128xf32, #tpu.memory_space<vmem>>, vector<256x128xf32>
    tpu.vector_store %arg6[%c0_14, %c0_15], %25 {strides = array<i32>} : memref<256x128xf32, #tpu.memory_space<vmem>>, vector<256x128xf32>,
    return
  }
  func.func @transform_0(%arg0: i32) -> (i32, i32) {
    %c0_i32 = arith.constant 0 : i32
    %c0_i32_0 = arith.constant 0 : i32
    return %arg0, %c0_i32 : i32, i32
  }
  func.func @transform_1(%arg0: i32) -> (i32, i32) {
    %c0_i32 = arith.constant 0 : i32
    %c0_i32_0 = arith.constant 0 : i32
    %c0_i32_1 = arith.constant 0 : i32
    return %c0_i32, %c0_i32_0 : i32, i32
  }
  func.func @transform_2(%arg0: i32) -> (i32, i32) {
    %c0_i32 = arith.constant 0 : i32
    %c0_i32_0 = arith.constant 0 : i32
    %c0_i32_1 = arith.constant 0 : i32
    return %c0_i32, %c0_i32_0 : i32, i32
  }
  func.func @transform_3(%arg0: i32) -> (i32, i32) {
    %c0_i32 = arith.constant 0 : i32
    %c0_i32_0 = arith.constant 0 : i32
    %c0_i32_1 = arith.constant 0 : i32
    return %c0_i32, %c0_i32_0 : i32, i32
  }
  func.func @transform_4(%arg0: i32) -> (i32, i32) {
    %c0_i32 = arith.constant 0 : i32
    %c0_i32_0 = arith.constant 0 : i32
    %c0_i32_1 = arith.constant 0 : i32
    return %c0_i32, %c0_i32_0 : i32, i32
  }
  func.func @transform_5(%arg0: i32) -> (i32, i32) {
    %c0_i32 = arith.constant 0 : i32
    %c0_i32_0 = arith.constant 0 : i32
    return %arg0, %c0_i32 : i32, i32
  }
}

</mosaic_0001>

<bundles_post_ra>
// kernel: tpu_custom_call.1
= control target key start
LH: loop header
LB: loop body
LE: loop exit
PB: predicated region body
PF: predicated region fallthrough
CT: control target
= control target key end

     0   :  { %10 = vsyncpa [#allocation3], 0  ;;  %s5786_s0 = inlined_call_operand.hbm [shape: f32[1024,128], index: 0, kind: input, shape index: {}]   ;;  %s5787_s1 = inlined_call_operand.hbm [shape: bf16[128,512], index: 1, kind: input, shape index: {}]   ;;  %s5788_s2 = inlined_call_operand.hbm [shape: f32[1,512], index: 2, kind: input, shape index: {}]   ;;  %s5789_s3 = inlined_call_operand.hbm [shape: bf16[512,128], index: 3, kind: input, shape index: {}]   ;;  %s5790_s4 = inlined_call_operand.vmem [shape: f32[1,128], index: 4, kind: input, shape index: {}]   ;;  %s5791_s5 = inlined_call_operand.hbm [shape: f32[1024,128], index: 5, kind: output, shape index: {}]  }
   0x1   :  { %12 = vsyncpa [#allocation3 + $0x1], 0 }
   0x2   :  { %13 = vsyncpa [#allocation6], 0 }
   0x3   :  { %14 = vsyncpa [#allocation9], 0 }
   0x4   :  { %15 = vsyncpa [#allocation4], 0 }
   0x5   :  { %17 = vsyncpa [#allocation4 + $0x1], 0  ;;  %s3842_s18 = smov 0   ;;  %s3844_s19 = smov 0  }
   0x6   :  { %s3846_s20 = smov 0   ;;  %s3848_s21 = smov 0  }
   0x7 LB: > { %s3863_s22 = sadd.s32 4294967295, %s3796_s21   ;;  %s2885_s23 = sadd.s32 4294967294, %s3796_s21   ;;  %s3796_s21 = sphi %s3848_s21, %s6250_s21   ;;  %s3792_s20 = sphi %s3846_s20, %s6249_s20   ;;  %s3788_s19 = sphi %s3844_s19, %s6248_s19   ;;  %s3784_s18 = sphi %s3842_s18, %s6247_s18  }
   0x8   : > { %p43_p0 = scmp.ne.s32.totalorder %s3788_s19, %s3784_s18  ;;  %p5792_p1 = scmp.eq.s32.totalorder %s3863_s22, 0 }
   0x9   : > { %p157_p3 = scmp.eq.s32.totalorder %s2885_s23, 3  ;;  %p2886_p5 = scmp.ge.s32.totalorder %s3796_s21, 1 }
   0xa   : > { %p3872_p4 = por %p5792_p1, %p43_p0  ;;  %p164_p7 = scmp.lt.s32.totalorder %s3796_s21, 5 }
   0xb   : > { %p3877_p6 = por %p157_p3, %p43_p0  ;;  %s3798_s27 = smov [#allocation5]  }
   0xc   : > { %s5922_s24 = scalar_select %p3872_p4, 1, 0 }
   0xd   : > { %s5923_s25 = scalar_select %p3877_p6, 1, 0 }
   0xe   : > { %p3882_p8 = pnand %p2886_p5, %p164_p7  ;;  %s176_s28 = sshll.u32 %s3798_s27, 4  ;;  %s177_s28 = int_to_ptr.vmem [resolvable:$true] %s176_s28 }
   0xf   : > { %s3799_s30 = smov [#allocation7]   ;;  %s3800_s7 = smov [#allocation8]  }
  0x10   : > { %s5924_s26 = scalar_select %p3882_p8, 1, 0 }
  0x11   : > { %p3212_p9 = pneg %p3882_p8  ;;  %s190_s6 = sshll.u32 %s3799_s30, 4  ;;  %s191_s6 = int_to_ptr.vmem [resolvable:$true] %s190_s6 }
  0x12   : > { %s200_s8 = sshll.u32 %s3800_s7, 4  ;;  %s3629_s9 = scalar_lea.vmem %s177_s28, 4096  ;;  %s201_s8 = int_to_ptr.vmem [resolvable:$true] %s200_s8 }
  0x13   : > { %p3890_p10 = pnand %p3212_p9, %p5792_p1  ;;  %p3630_p12 = scmp.ne.s32.totalorder %s177_s28, %s3629_s9 }
  0x14   : > { %p3637_p3 = scmp.lt.s32.totalorder %s177_s28, %s177_s28  ;;  %p3638_p5 = scmp.lt.s32.totalorder %s3629_s9, %s3629_s9 }
  0x15   : > { %p3620_p11 = pneg %p3890_p10 }
  0x16   : > { %p3639_p7 = por %p3638_p5, %p3637_p3 }
  0x17   : > { %p3632_p13 = pnand %p3630_p12, %p3620_p11 }
  0x19   : > { %p3633_p0 = pneg %p3632_p13 }
  0x1b   : > { %p3640_p9 = pnand %p3639_p7, %p3633_p0 }
  0x1d   : > { %3643 = shalt.err (!%p3640_p9)
}
  0x1e   : > { %s3801_s10 = smov 256   ;;  %s3802_s11 = smov 16  }
  0x1f   : > { %3215 = dma.hbm_to_vmem [thread:$0]  (!%p3890_p10), %s5787_s1, 4096, %s177_s28, [#allocation6], %s3801_s10, %s3801_s10, %s3802_s11  }
  0x20   : > { %s3655_s14 = scalar_lea.vmem %s191_s6, 64  ;;  %p3663_p2 = scmp.lt.s32.totalorder %s191_s6, %s191_s6 }
  0x21   : > { %p3656_p1 = scmp.ne.s32.totalorder %s191_s6, %s3655_s14  ;;  %p3664_p6 = scmp.lt.s32.totalorder %s3655_s14, %s3655_s14 }
  0x23   : > { %p3658_p12 = pnand %p3656_p1, %p3620_p11  ;;  %p3665_p3 = por %p3664_p6, %p3663_p2 }
  0x25   : > { %p3659_p13 = pneg %p3658_p12 }
  0x27   : > { %p3666_p0 = pnand %p3665_p3, %p3659_p13 }
  0x29   : > { %3669 = shalt.err (!%p3666_p0)
}
  0x2a   : > { %3218 = dma.hbm_to_vmem [thread:$0]  (!%p3890_p10), %s5788_s2, 64, %s191_s6, [#allocation6]  }
  0x2b   : > { %s3681_s17 = scalar_lea.vmem %s201_s8, 4096  ;;  %p3689_p9 = scmp.lt.s32.totalorder %s201_s8, %s201_s8 }
  0x2c   : > { %p3682_p5 = scmp.ne.s32.totalorder %s201_s8, %s3681_s17  ;;  %p3690_p12 = scmp.lt.s32.totalorder %s3681_s17, %s3681_s17 }
  0x2e   : > { %p3684_p7 = pnand %p3682_p5, %p3620_p11  ;;  %p3691_p4 = por %p3690_p12, %p3689_p9 }
  0x30   : > { %p3685_p1 = pneg %p3684_p7 }
  0x32   : > { %p3692_p2 = pnand %p3691_p4, %p3685_p1 }
  0x34   : > { %3695 = shalt.err (!%p3692_p2)
}
  0x35   : > { %s3803_s23 = smov 64   ;;  %s3804_s27 = smov 4  }
  0x36   : > { %3221 = dma.hbm_to_vmem [thread:$0]  (!%p3890_p10), %s5789_s3, 4096, %s201_s8, [#allocation9], %s3803_s23, %s3803_s23, %s3804_s27  }
  0x37   : > { %s3921_s6 = sadd.s32 1, %s3796_s21   ;;  %s30_s9 = sadd.s32 1, %s3792_s20 }
  0x38   : > { %s27_s7 = ssub.s32 %s3796_s21, %s3921_s6  ;;  %p37_p6 = scmp.ne.s32.totalorder %s3792_s20, %s3788_s19 }
  0x39   : > { %p28_p4 = scmp.eq.s32.totalorder %s27_s7, 0  ;;  %p38_p11 = scmp.eq.s32.totalorder %s3796_s21, 0 }
  0x3a   : > { %p3233_p13 = scmp.lt.s32.totalorder %s3796_s21, 4  ;;  %p5926_p0 = scmp.eq.s32.totalorder %s3863_s22, 3 }
  0x3b   : > { %s3931_s10 = scalar_select %p28_p4, %s3792_s20, %s30_s9  }
  0x3c   : > { %p39_p3 = por %p38_p11, %p37_p6  ;;  %p3935_p5 = por %p5926_p0, %p37_p6 }
  0x3d   : > { %s217_s29 = sand.u32 1, %s3792_s20   ;;  %s2970_s12 = sshll.u32 %s3796_s21, 12 }
  0x3e   : > { %s5927_s11 = scalar_select %p3935_p5, 1, 0 }
  0x3f   : > { %s2891_s8 = sshll.u32 %s217_s29, 8  ;;  %s3944_s15 = scalar_lea.hbm %s5786_s0, %s2970_s12 }
  0x40   : > { %s221_s16 = scalar_lea.vmem [#allocation2], %s2891_s8  ;;  %p3946_p10 = pnand %p3233_p13, %p39_p3 }
  0x41   : > { %s228_s17 = sshll.u32 %s221_s16, 4  ;;  %s3952_s27 = scalar_lea.sflag [#allocation3], %s217_s29  ;;  %s3950_s17 = int_to_ptr.vmem [resolvable:$true] %s228_s17 }
  0x42   : > { %s3696_s28 = scalar_lea.hbm %s3944_s15, 4096  ;;  %p3698_p1 = pneg %p3946_p10 }
  0x43   : > { %p3697_p7 = scmp.ne.s32.totalorder %s3944_s15, %s3696_s28  ;;  %s3701_s9 = scalar_lea.hbm %s5786_s0, 16384 }
  0x44   : > { %p3702_p2 = scmp.lt.s32.totalorder %s3944_s15, %s5786_s0  ;;  %p3703_p4 = scmp.lt.s32.totalorder %s3701_s9, %s3696_s28 }
  0x45   : > { %p3699_p9 = pnand %p3698_p1, %p3697_p7 }
  0x46   : > { %p3704_p6 = por %p3703_p4, %p3702_p2 }
  0x47   : > { %p3700_p12 = pneg %p3699_p9 }
  0x49   : > { %p3705_p11 = pnand %p3704_p6, %p3700_p12 }
  0x4b   : > { %3708 = shalt.err (!%p3705_p11)
}
  0x4c   : > { %s3709_s29 = scalar_lea.vmem %s3950_s17, 4096  ;;  %s3805_s13 = smov [#allocation2]  }
  0x4d   : > { %p3710_p13 = scmp.ne.s32.totalorder %s3950_s17, %s3709_s29  ;;  %s3714_s14 = sshll.u32 %s3805_s13, 4  ;;  %s3715_s14 = int_to_ptr.vmem [resolvable:$false] %s3714_s14 }
  0x4e   : > { %s3716_s16 = scalar_lea.vmem %s3715_s14, 8192  ;;  %p3717_p7 = scmp.lt.s32.totalorder %s3950_s17, %s3715_s14 }
  0x4f   : > { %p3712_p3 = pnand %p3710_p13, %p3698_p1  ;;  %p3718_p9 = scmp.lt.s32.totalorder %s3716_s16, %s3709_s29 }
  0x51   : > { %p3713_p0 = pneg %p3712_p3  ;;  %p3719_p5 = por %p3718_p9, %p3717_p7 }
  0x53   : > { %p3720_p8 = pnand %p3719_p5, %p3713_p0 }
  0x55   : > { %3723 = shalt.err (!%p3720_p8)
}
  0x56   : > { %s3806_s28 = smov 128   ;;  %s3807_s30 = smov 8  }
  0x57   : > { %3225 = dma.hbm_to_vmem [thread:$0]  (!%p3946_p10), %s3944_s15, 4096, %s3950_s17, %s3952_s27, %s3806_s28, %s3806_s28, %s3807_s30  }
  0x58   : > { %p5929_p1 = scmp.ne.s32.totalorder %s5924_s26, 0 }
  0x5a   : > { %240 = sbr.rel (%p5929_p1) target bundleno = 900 (0x384), region = 40 }
  0x5f   : > { %s3976_s7 = sand.u32 1, %s3788_s19   ;;  %p5930_p8 = scmp.ne.s32.totalorder %s5922_s24, 0 }
  0x60   : > { %s2895_s9 = sshll.u32 %s3976_s7, 8  ;;  %s243_s12 = scalar_lea.sflag [#allocation3], %s3976_s7 }
  0x61   : > { %s3982_s8 = scalar_lea.vmem [#allocation2], %s2895_s9 }
  0x62   : > { %3767 = dma.done.wait (%p5930_p8), %s243_s12, 4096  }
  0x63   : > { %3769 = vsyncadd (%p5930_p8), %s243_s12, 4294963200  ;;  %p5931_p5 = scmp.eq.s32.totalorder %s3863_s22, 0 }
  0x65   : > { %3771 = dma.done.wait (%p5931_p5), [#allocation6], 4160   ;;  %p5932_p10 = pmov %p5931_p5 }
  0x66   : > { %p5933_p12 = pmov %p5931_p5 }
  0x67   : > { %3773 = vsyncadd (%p5932_p10), [#allocation6], 4294963136 }
  0x68   : > { %3775 = dma.done.wait (%p5933_p12), [#allocation9], 4096   ;;  %p5934_p2 = pmov %p5931_p5 }
  0x69   : > { %v3808_v0 = vmov 0   ;;  %v3282_v1 = vld [vmem:[#allocation5 + $0xe4] ss:$16 sps:$4 sm:$0xff]   ;;  %v3284_v2 = vld [vmem:[#allocation5 + $0xec] ss:$16 sps:$4 sm:$0xff]   ;;  %s5646_s15 = scalar_lea.vmem [#allocation10], %s2895_s9 }
  0x6a   : > { %3777 = vsyncadd (%p5934_p2), [#allocation9], 4294963200  ;;  %582 = vmatprep.mubr.bf16.mxu0 %v3808_v0  ;;  %775 = vmatprep.mubr.bf16.mxu1 %v3808_v0  ;;  %v3286_v3 = vld [vmem:[#allocation5 + $0xe0] ss:$16 sps:$4 sm:$0xff]   ;;  %v3287_v4 = vld [vmem:[#allocation5 + $0xe8] ss:$16 sps:$4 sm:$0xff]  }
  0x6b   : > { %550 = vmatprep.subr.bf16.mxu0 %v3282_v1  ;;  %743 = vmatprep.subr.bf16.mxu1 %v3284_v2  ;;  %v3288_v5 = vld [vmem:[#allocation5 + $0xc4] ss:$16 sps:$4 sm:$0xff]   ;;  %v3290_v6 = vld [vmem:[#allocation5 + $0xcc] ss:$16 sps:$4 sm:$0xff]   ;;  %v3292_v7 = vld [vmem:[#allocation5 + $0xc0] ss:$16 sps:$4 sm:$0xff]  }
  0x6c   : > { %551 = vmatpush1.bf16.msra.mxu0 %v3286_v3  ;;  %744 = vmatpush1.bf16.msra.mxu1 %v3287_v4  ;;  %v3293_v8 = vld [vmem:[#allocation5 + $0xc8] ss:$16 sps:$4 sm:$0xff]   ;;  %v3294_v9 = vld [vmem:[#allocation5 + $0xa4] ss:$16 sps:$4 sm:$0xff]   ;;  %v3296_v10 = vld [vmem:[#allocation5 + $0xac] ss:$16 sps:$4 sm:$0xff]  }
  0x6d   : > { %552 = vmatprep.subr.bf16.mxu0 %v3288_v5  ;;  %745 = vmatprep.subr.bf16.mxu1 %v3290_v6  ;;  %v3298_v11 = vld [vmem:[#allocation5 + $0xa0] ss:$16 sps:$4 sm:$0xff]   ;;  %v3299_v12 = vld [vmem:[#allocation5 + $0xa8] ss:$16 sps:$4 sm:$0xff]   ;;  %v3300_v13 = vld [vmem:[#allocation5 + $0x84] ss:$16 sps:$4 sm:$0xff]  }
  0x6e   : > { %v3302_v14 = vld [vmem:[#allocation5 + $0x8c] ss:$16 sps:$4 sm:$0xff]   ;;  %v3304_v15 = vld [vmem:[#allocation5 + $0x80] ss:$16 sps:$4 sm:$0xff]   ;;  %v3305_v16 = vld [vmem:[#allocation5 + $0x88] ss:$16 sps:$4 sm:$0xff]  }
  0x6f   : > { %v3306_v17 = vld [vmem:[#allocation5 + $0x64] ss:$16 sps:$4 sm:$0xff]   ;;  %v3308_v18 = vld [vmem:[#allocation5 + $0x6c] ss:$16 sps:$4 sm:$0xff]   ;;  %v3310_v19 = vld [vmem:[#allocation5 + $0x60] ss:$16 sps:$4 sm:$0xff]  }
  0x70   : > { %553 = vmatpush1.bf16.msra.mxu0 %v3292_v7  ;;  %746 = vmatpush1.bf16.msra.mxu1 %v3293_v8  ;;  %v3311_v20 = vld [vmem:[#allocation5 + $0x68] ss:$16 sps:$4 sm:$0xff]   ;;  %v3312_v21 = vld [vmem:[#allocation5 + $0x44] ss:$16 sps:$4 sm:$0xff]   ;;  %v3314_v22 = vld [vmem:[#allocation5 + $0x4c] ss:$16 sps:$4 sm:$0xff]  }
  0x71   : > { %554 = vmatprep.subr.bf16.mxu0 %v3294_v9  ;;  %747 = vmatprep.subr.bf16.mxu1 %v3296_v10  ;;  %v3316_v23 = vld [vmem:[#allocation5 + $0x40] ss:$16 sps:$4 sm:$0xff]   ;;  %v3317_v24 = vld [vmem:[#allocation5 + $0x48] ss:$16 sps:$4 sm:$0xff]   ;;  %v3318_v25 = vld [vmem:[#allocation5 + $0x24] ss:$16 sps:$4 sm:$0xff]  }
  0x72   : > { %v3320_v26 = vld [vmem:[#allocation5 + $0x2c] ss:$16 sps:$4 sm:$0xff]   ;;  %v3322_v27 = vld [vmem:[#allocation5 + $0x20] ss:$16 sps:$4 sm:$0xff]   ;;  %v3323_v28 = vld [vmem:[#allocation5 + $0x28] ss:$16 sps:$4 sm:$0xff]  }
  0x73   : > { %v3324_v29 = vld [vmem:[#allocation5 + $0x4] ss:$16 sps:$4 sm:$0xff]   ;;  %v3326_v30 = vld [vmem:[#allocation5 + $0xc] ss:$16 sps:$4 sm:$0xff]   ;;  %v3328_v31 = vld [vmem:[#allocation5] ss:$16 sps:$4 sm:$0xff]  }
  0x74   : > { %555 = vmatpush1.bf16.msra.mxu0 %v3298_v11  ;;  %748 = vmatpush1.bf16.msra.mxu1 %v3299_v12  ;;  %v3329_v32 = vld [vmem:[#allocation5 + $0x8] ss:$16 sps:$4 sm:$0xff]   ;;  %v288_v33 = vld [vmem:[%s3982_s8] sm:$0xff]  ;;  %v290_v40 = vld [vmem:[%s3982_s8 + $0x10] sm:$0xff]  ;;  %s2971_s17 = sshll.u32 %s3863_s22, 12  ;;  %s2783_s23 = sshll.u32 %s5646_s15, 4  ;;  %s5743_s23 = int_to_ptr.vmem [resolvable:$true] %s2783_s23 }
  0x75   : > { %556 = vmatprep.subr.bf16.mxu0 %v3300_v13  ;;  %749 = vmatprep.subr.bf16.mxu1 %v3302_v14  ;;  %v289_v34 = vld [vmem:[%s3982_s8 + $0x8] sm:$0xff]  ;;  %v3330_v35 = vld [vmem:[#allocation8 + $0x78] sm:$0xff]   ;;  %v3334_v42 = vld [vmem:[#allocation8 + $0x70] sm:$0xff]   ;;  %s5741_s13 = scalar_lea.hbm %s5791_s5, %s2971_s17  ;;  %s2770_s14 = scalar_lea.sflag [#allocation4], %s3976_s7 }
  0x76   : > { %v320_v36 = vpack.c.bf16 %v289_v34, %v288_v33  ;;  %v3331_v37 = vld [vmem:[#allocation8 + $0x38] sm:$0xff]   ;;  %v3335_v43 = vld [vmem:[#allocation8 + $0x30] sm:$0xff]   ;;  %v3338_v47 = vld [vmem:[#allocation8 + $0x68] sm:$0xff]   ;;  %s3724_s22 = scalar_lea.vmem %s5743_s23, 4096  ;;  %p6245_p6 = scmp.ne.s32.totalorder %s5927_s11, 0 }
  0x77   : > { %v3332_v38 = vld [vmem:[#allocation8 + $0xf8] sm:$0xff]   ;;  %v3336_v44 = vld [vmem:[#allocation8 + $0xf0] sm:$0xff]   ;;  %v3339_v48 = vld [vmem:[#allocation8 + $0x28] sm:$0xff]   ;;  %p3725_p4 = scmp.ne.s32.totalorder %s5743_s23, %s3724_s22  ;;  %s3809_s16 = smov [#allocation10]  }
  0x78   : > { %557 = vmatpush1.bf16.msra.mxu0 %v3304_v15  ;;  %750 = vmatpush1.bf16.msra.mxu1 %v3305_v16  ;;  %v3333_v39 = vld [vmem:[#allocation8 + $0xb8] sm:$0xff]   ;;  %v3337_v46 = vld [vmem:[#allocation8 + $0xb0] sm:$0xff]   ;;  %v293_v50 = vld [vmem:[%s3982_s8 + $0x28] sm:$0xff]  ;;  %s3728_s28 = sshll.u32 %s3809_s16, 4  ;;  %s3729_s28 = int_to_ptr.vmem [resolvable:$false] %s3728_s28 }
  0x79   : > { %558 = vmatprep.subr.bf16.mxu0 %v3306_v17  ;;  %751 = vmatprep.subr.bf16.mxu1 %v3308_v18  ;;  %v291_v41 = vld [vmem:[%s3982_s8 + $0x18] sm:$0xff]  ;;  %v292_v49 = vld [vmem:[%s3982_s8 + $0x20] sm:$0xff]  ;;  %v3340_v51 = vld [vmem:[#allocation8 + $0xe8] sm:$0xff]   ;;  %p3726_p11 = pnand %p3725_p4, %p6245_p6  ;;  %s3730_s30 = scalar_lea.vmem %s3729_s28, 8192 }
  0x7a   : > { %v321_v45 = vpack.c.bf16 %v291_v41, %v290_v40  ;;  %v3341_v52 = vld [vmem:[#allocation8 + $0xa8] sm:$0xff]   ;;  %v3342_v53 = vld [vmem:[#allocation8 + $0x60] sm:$0xff]   ;;  %v322_v56 = vpack.c.bf16 %v293_v50, %v292_v49  ;;  %v3346_v58 = vld [vmem:[#allocation8 + $0x58] sm:$0xff]   ;;  %v370_v50 = vlaneseq  ;;  %p3731_p3 = scmp.lt.s32.totalorder %s5743_s23, %s3729_s28  ;;  %p3732_p0 = scmp.lt.s32.totalorder %s3730_s30, %s3724_s22 }
  0x7b   : > { %v3343_v54 = vld [vmem:[#allocation8 + $0x20] sm:$0xff]   ;;  %v3347_v59 = vld [vmem:[#allocation8 + $0x18] sm:$0xff]   ;;  %v294_v60 = vld [vmem:[%s3982_s8 + $0x30] sm:$0xff]  ;;  %p3727_p13 = pneg %p3726_p11 }
  0x7c   : > { %559 = vmatpush1.bf16.msra.mxu0 %v3310_v19  ;;  %752 = vmatpush1.bf16.msra.mxu1 %v3311_v20  ;;  %v3344_v55 = vld [vmem:[#allocation8 + $0xe0] sm:$0xff]   ;;  %v295_v61 = vld [vmem:[%s3982_s8 + $0x38] sm:$0xff]  ;;  %v298_v9 = vld [vmem:[%s3982_s8 + $0x50] sm:$0xff]  ;;  %p3733_p7 = por %p3732_p0, %p3731_p3 }
  0x7d   : > { %560 = vmatprep.subr.bf16.mxu0 %v3312_v21  ;;  %753 = vmatprep.subr.bf16.mxu1 %v3314_v22  ;;  %v3345_v57 = vld [vmem:[#allocation8 + $0xa0] sm:$0xff]   ;;  %v3348_v62 = vld [vmem:[#allocation8 + $0xd8] sm:$0xff]   ;;  %v3350_v1 = vld [vmem:[#allocation8 + $0x50] sm:$0xff]   ;;  %v323_v4 = vpack.c.bf16 %v295_v61, %v294_v60 }
  0x7e   : > { %v3349_v63 = vld [vmem:[#allocation8 + $0x98] sm:$0xff]   ;;  %v3351_v2 = vld [vmem:[#allocation8 + $0x10] sm:$0xff]   ;;  %v297_v7 = vld [vmem:[%s3982_s8 + $0x48] sm:$0xff]  ;;  %p3734_p9 = pnand %p3733_p7, %p3727_p13 }
  0x7f   : > { %v3352_v3 = vld [vmem:[#allocation8 + $0xd0] sm:$0xff]   ;;  %v296_v6 = vld [vmem:[%s3982_s8 + $0x40] sm:$0xff]  ;;  %v301_v13 = vld [vmem:[%s3982_s8 + $0x68] sm:$0xff] }
  0x80   : > { %561 = vmatpush1.bf16.msra.mxu0 %v3316_v23  ;;  %754 = vmatpush1.bf16.msra.mxu1 %v3317_v24  ;;  %v3353_v5 = vld [vmem:[#allocation8 + $0x90] sm:$0xff]   ;;  %v324_v8 = vpack.c.bf16 %v297_v7, %v296_v6  ;;  %v300_v12 = vld [vmem:[%s3982_s8 + $0x60] sm:$0xff]  ;;  %v305_v19 = vld [vmem:[%s3982_s8 + $0x88] sm:$0xff] }
  0x81   : > { %562 = vmatprep.subr.bf16.mxu0 %v3318_v25  ;;  %755 = vmatprep.subr.bf16.mxu1 %v3320_v26  ;;  %v299_v10 = vld [vmem:[%s3982_s8 + $0x58] sm:$0xff]  ;;  %v326_v14 = vpack.c.bf16 %v301_v13, %v300_v12  ;;  %v302_v15 = vld [vmem:[%s3982_s8 + $0x70] sm:$0xff]  ;;  %v304_v18 = vld [vmem:[%s3982_s8 + $0x80] sm:$0xff] }
  0x82   : > { %v325_v11 = vpack.c.bf16 %v299_v10, %v298_v9  ;;  %v303_v16 = vld [vmem:[%s3982_s8 + $0x78] sm:$0xff]  ;;  %v328_v20 = vpack.c.bf16 %v305_v19, %v304_v18  ;;  %v306_v21 = vld [vmem:[%s3982_s8 + $0x90] sm:$0xff]  ;;  %v308_v24 = vld [vmem:[%s3982_s8 + $0xa0] sm:$0xff] }
  0x83   : > { %v327_v17 = vpack.c.bf16 %v303_v16, %v302_v15  ;;  %v307_v22 = vld [vmem:[%s3982_s8 + $0x98] sm:$0xff]  ;;  %v309_v25 = vld [vmem:[%s3982_s8 + $0xa8] sm:$0xff]  ;;  %v312_v34 = vld [vmem:[%s3982_s8 + $0xc0] sm:$0xff] }
  0x84   : > { %563 = vmatpush1.bf16.msra.mxu0 %v3322_v27  ;;  %756 = vmatpush1.bf16.msra.mxu1 %v3323_v28  ;;  %v329_v23 = vpack.c.bf16 %v307_v22, %v306_v21  ;;  %v330_v26 = vpack.c.bf16 %v309_v25, %v308_v24  ;;  %v310_v27 = vld [vmem:[%s3982_s8 + $0xb0] sm:$0xff]  ;;  %v311_v28 = vld [vmem:[%s3982_s8 + $0xb8] sm:$0xff]  ;;  %v3359_v40 = vld [vmem:[#allocation8] sm:$0xff]  }
  0x85   : > { %564 = vmatprep.subr.bf16.mxu0 %v3324_v29  ;;  %757 = vmatprep.subr.bf16.mxu1 %v3326_v30  ;;  %v3354_v29 = vld [vmem:[#allocation8 + $0x48] sm:$0xff]   ;;  %v3360_v41 = vld [vmem:[#allocation8 + $0xc0] sm:$0xff]  }
  0x86   : > { %v3355_v30 = vld [vmem:[#allocation8 + $0x8] sm:$0xff]  }
  0x87   : > { %v3357_v33 = vld [vmem:[#allocation8 + $0x88] sm:$0xff]  }
  0x88   : > { %565 = vmatpush1.bf16.msra.mxu0 %v3328_v31  ;;  %758 = vmatpush1.bf16.msra.mxu1 %v3329_v32  ;;  %v3356_v31 = vld [vmem:[#allocation8 + $0xc8] sm:$0xff]   ;;  %v331_v32 = vpack.c.bf16 %v311_v28, %v310_v27 }
  0x89   : > { %2972 = vmatprep.subr.bf16.mxu0 %v3330_v35  ;;  %3084 = vmatprep.subr.bf16.mxu1 %v3332_v38  ;;  %v313_v35 = vld [vmem:[%s3982_s8 + $0xc8] sm:$0xff]  ;;  %v315_v38 = vld [vmem:[%s3982_s8 + $0xd8] sm:$0xff] }
  0x8b   : > { %583 = vmatmul.mubr.bf16.vlgmr.msra.gmra.mxu0 %v320_v36  ;;  %776 = vmatmul.mubr.bf16.vlgmr.msra.gmra.mxu1 %v320_v36  ;;  %v332_v36 = vpack.c.bf16 %v313_v35, %v312_v34 }
  0x8c   : > { %592 = vmatprep.mubr.bf16.mxu0 %v3808_v0  ;;  %785 = vmatprep.mubr.bf16.mxu1 %v3808_v0 }
  0x8d   : > { %2973 = vmatpush3.bf16.msra.mxu0 %v3331_v37  ;;  %3085 = vmatpush3.bf16.msra.mxu1 %v3333_v39  ;;  %v314_v37 = vld [vmem:[%s3982_s8 + $0xd0] sm:$0xff]  ;;  %v3358_v39 = vld [vmem:[#allocation8 + $0x40] sm:$0xff]  }
  0x8e   : > { %2974 = vmatprep.subr.bf16.mxu0 %v3334_v42  ;;  %3086 = vmatprep.subr.bf16.mxu1 %v3336_v44  ;;  %v333_v42 = vpack.c.bf16 %v315_v38, %v314_v37  ;;  %v316_v44 = vld [vmem:[%s3982_s8 + $0xe0] sm:$0xff] }
  0x91   : > { %2975 = vmatpush3.bf16.msra.mxu0 %v3335_v43  ;;  %3087 = vmatpush3.bf16.msra.mxu1 %v3337_v46  ;;  %v3361_v43 = vld [vmem:[#allocation8 + $0x80] sm:$0xff]  }
  0x92   : > { %2976 = vmatprep.subr.bf16.mxu0 %v3338_v47  ;;  %3088 = vmatprep.subr.bf16.mxu1 %v3340_v51  ;;  %v318_v47 = vld [vmem:[%s3982_s8 + $0xf0] sm:$0xff]  ;;  %v371_v51 = vshrl.u32 %v370_v50, 7 }
  0x93   : > { %593 = vmatmul.mubr.bf16.gmra.mxu0 %v321_v45  ;;  %786 = vmatmul.mubr.bf16.gmra.mxu1 %v321_v45  ;;  %v317_v45 = vld [vmem:[%s3982_s8 + $0xe8] sm:$0xff] }
  0x94   : > { %602 = vmatprep.mubr.bf16.mxu0 %v3808_v0  ;;  %795 = vmatprep.mubr.bf16.mxu1 %v3808_v0  ;;  %v334_v46 = vpack.c.bf16 %v317_v45, %v316_v44 }
  0x95   : > { %2977 = vmatpush3.bf16.msra.mxu0 %v3339_v48  ;;  %3089 = vmatpush3.bf16.msra.mxu1 %v3341_v52  ;;  %v319_v48 = vld [vmem:[%s3982_s8 + $0xf8] sm:$0xff]  ;;  %v372_v52 = vsub.s32 0, %v371_v51 }
  0x96   : > { %2978 = vmatprep.subr.bf16.mxu0 %v3342_v53  ;;  %3090 = vmatprep.subr.bf16.mxu1 %v3344_v55  ;;  %v335_v49 = vpack.c.bf16 %v319_v48, %v318_v47  ;;  %v380_v53 = vsub.s32 2, %v371_v51  ;;  %v376_v55 = vsub.s32 1, %v371_v51 }
  0x99   : > { %2979 = vmatpush3.bf16.msra.mxu0 %v3343_v54  ;;  %3091 = vmatpush3.bf16.msra.mxu1 %v3345_v57  ;;  %v368_v54 = vld [vmem:[#allocation7] sm:$0xf] }
  0x9a   : > { %2980 = vmatprep.subr.bf16.mxu0 %v3346_v58  ;;  %3092 = vmatprep.subr.bf16.mxu1 %v3348_v62  ;;  %v4060_v57 = vrot.slane %v368_v54, %v372_v52  ;;  %v4062_v58 = vrot.slane %v368_v54, %v380_v53  ;;  %v4064_v61 = vrot.slane %v368_v54, %v376_v55 }
  0x9b   : > { %603 = vmatmul.mubr.bf16.gmra.mxu0 %v322_v56  ;;  %796 = vmatmul.mubr.bf16.gmra.mxu1 %v322_v56  ;;  %v384_v56 = vsub.s32 3, %v371_v51 }
  0x9c   : > { %612 = vmatprep.mubr.bf16.mxu0 %v3808_v0  ;;  %805 = vmatprep.mubr.bf16.mxu1 %v3808_v0 }
  0x9d   : > { %2981 = vmatpush3.bf16.msra.mxu0 %v3347_v59  ;;  %3093 = vmatpush3.bf16.msra.mxu1 %v3349_v63 }
  0x9e   : > { %2982 = vmatprep.subr.bf16.mxu0 %v3350_v1  ;;  %3094 = vmatprep.subr.bf16.mxu1 %v3352_v3 }
  0xa1   : > { %2983 = vmatpush3.bf16.msra.mxu0 %v3351_v2  ;;  %3095 = vmatpush3.bf16.msra.mxu1 %v3353_v5 }
  0xa2   : > { %2984 = vmatprep.subr.bf16.mxu0 %v3354_v29  ;;  %3096 = vmatprep.subr.bf16.mxu1 %v3356_v31 }
  0xa3   : > { %613 = vmatmul.mubr.bf16.gmra.mxu0 %v323_v4  ;;  %806 = vmatmul.mubr.bf16.gmra.mxu1 %v323_v4 }
  0xa4   : > { %622 = vmatprep.mubr.bf16.mxu0 %v3808_v0  ;;  %815 = vmatprep.mubr.bf16.mxu1 %v3808_v0 }
  0xa5   : > { %2985 = vmatpush3.bf16.msra.mxu0 %v3355_v30  ;;  %3097 = vmatpush3.bf16.msra.mxu1 %v3357_v33 }
  0xa6   : > { %2986 = vmatprep.subr.bf16.mxu0 %v3358_v39  ;;  %3098 = vmatprep.subr.bf16.mxu1 %v3360_v41 }
  0xa9   : > { %2987 = vmatpush3.bf16.msra.mxu0 %v3359_v40  ;;  %3099 = vmatpush3.bf16.msra.mxu1 %v3361_v43 }
  0xab   : > { %623 = vmatmul.mubr.bf16.gmra.mxu0 %v324_v8  ;;  %816 = vmatmul.mubr.bf16.gmra.mxu1 %v324_v8 }
  0xac   : > { %632 = vmatprep.mubr.bf16.mxu0 %v3808_v0  ;;  %825 = vmatprep.mubr.bf16.mxu1 %v3808_v0 }
  0xb3   : > { %633 = vmatmul.mubr.bf16.gmra.mxu0 %v325_v11  ;;  %826 = vmatmul.mubr.bf16.gmra.mxu1 %v325_v11 }
  0xb4   : > { %642 = vmatprep.mubr.bf16.mxu0 %v3808_v0  ;;  %835 = vmatprep.mubr.bf16.mxu1 %v3808_v0 }
  0xbb   : > { %643 = vmatmul.mubr.bf16.gmra.mxu0 %v326_v14  ;;  %836 = vmatmul.mubr.bf16.gmra.mxu1 %v326_v14 }
  0xbc   : > { %652 = vmatprep.mubr.bf16.mxu0 %v3808_v0  ;;  %845 = vmatprep.mubr.bf16.mxu1 %v3808_v0 }
  0xc3   : > { %653 = vmatmul.mubr.bf16.gmra.mxu0 %v327_v17  ;;  %846 = vmatmul.mubr.bf16.gmra.mxu1 %v327_v17 }
  0xc4   : > { %662 = vmatprep.mubr.bf16.mxu0 %v3808_v0  ;;  %855 = vmatprep.mubr.bf16.mxu1 %v3808_v0 }
  0xcb   : > { %663 = vmatmul.mubr.bf16.gmra.mxu0 %v328_v20  ;;  %856 = vmatmul.mubr.bf16.gmra.mxu1 %v328_v20 }
  0xcc   : > { %672 = vmatprep.mubr.bf16.mxu0 %v3808_v0  ;;  %865 = vmatprep.mubr.bf16.mxu1 %v3808_v0 }
  0xd3   : > { %673 = vmatmul.mubr.bf16.gmra.mxu0 %v329_v23  ;;  %866 = vmatmul.mubr.bf16.gmra.mxu1 %v329_v23 }
  0xd4   : > { %682 = vmatprep.mubr.bf16.mxu0 %v3808_v0  ;;  %875 = vmatprep.mubr.bf16.mxu1 %v3808_v0 }
  0xdb   : > { %683 = vmatmul.mubr.bf16.gmra.mxu0 %v330_v26  ;;  %876 = vmatmul.mubr.bf16.gmra.mxu1 %v330_v26 }
  0xdc   : > { %692 = vmatprep.mubr.bf16.mxu0 %v3808_v0  ;;  %885 = vmatprep.mubr.bf16.mxu1 %v3808_v0 }
  0xe3   : > { %693 = vmatmul.mubr.bf16.gmra.mxu0 %v331_v32  ;;  %886 = vmatmul.mubr.bf16.gmra.mxu1 %v331_v32 }
  0xe4   : > { %702 = vmatprep.mubr.bf16.mxu0 %v3808_v0  ;;  %895 = vmatprep.mubr.bf16.mxu1 %v3808_v0 }
  0xeb   : > { %703 = vmatmul.mubr.bf16.gmra.mxu0 %v332_v36  ;;  %896 = vmatmul.mubr.bf16.gmra.mxu1 %v332_v36 }
  0xec   : > { %712 = vmatprep.mubr.bf16.mxu0 %v3808_v0  ;;  %905 = vmatprep.mubr.bf16.mxu1 %v3808_v0 }
  0xf3   : > { %713 = vmatmul.mubr.bf16.gmra.mxu0 %v333_v42  ;;  %906 = vmatmul.mubr.bf16.gmra.mxu1 %v333_v42 }
  0xf4   : > { %722 = vmatprep.mubr.bf16.mxu0 %v3808_v0  ;;  %915 = vmatprep.mubr.bf16.mxu1 %v3808_v0 }
  0xfb   : > { %723 = vmatmul.mubr.bf16.gmra.mxu0 %v334_v46  ;;  %916 = vmatmul.mubr.bf16.gmra.mxu1 %v334_v46 }
  0xfc   : > { %732 = vmatprep.mubr.bf16.mxu0 %v3808_v0  ;;  %925 = vmatprep.mubr.bf16.mxu1 %v3808_v0  ;;  %v4066_v0 = vrot.slane %v368_v54, %v384_v56 }
 0x103   : > { %733 = vmatmul.mubr.bf16.gmra.mxu0 %v335_v49  ;;  %926 = vmatmul.mubr.bf16.gmra.mxu1 %v335_v49 }
 0x14b   : > { %v584_v59 = vpop.f32.mrf.mxu0  ;;  %v777_v60 = vpop.f32.mrf.mxu1 }
 0x14c   : > { %v585_v62 = vadd.f32 %v584_v59, %v4060_v57  ;;  %v778_v63 = vadd.f32 %v777_v60, %v4062_v58 }
 0x14d   : > { %v586_v1 = vpop.f32.mrf.mxu0  ;;  %v779_v2 = vpop.f32.mrf.mxu1 }
 0x14e   : > { %v936_v3 = vmul.f32 0.044715, %v585_v62  ;;  %v938_v4 = vmul.f32 0.044715, %v778_v63  ;;  %v4071_v5 = vadd.f32 %v586_v1, %v4064_v61  ;;  %v4074_v6 = vadd.f32 %v779_v2, %v4066_v0 }
 0x14f   : > { %v588_v7 = vpop.f32.mrf.mxu0  ;;  %v781_v8 = vpop.f32.mrf.mxu1  ;;  %v4083_v27 = vmul.f32 0.5, %v585_v62  ;;  %v4088_v32 = vmul.f32 0.5, %v778_v63 }
 0x150   : > { %v1064_v9 = vmul.f32 %v936_v3, %v585_v62  ;;  %v1066_v10 = vmul.f32 %v938_v4, %v778_v63  ;;  %v589_v11 = vadd.f32 %v588_v7, %v4060_v57  ;;  %v782_v12 = vadd.f32 %v781_v8, %v4062_v58 }
 0x151   : > { %v590_v13 = vpop.f32.mrf.mxu0  ;;  %v783_v14 = vpop.f32.mrf.mxu1  ;;  %v937_v17 = vmul.f32 0.044715, %v4071_v5  ;;  %v939_v19 = vmul.f32 0.044715, %v4074_v6  ;;  %v4103_v45 = vmul.f32 0.5, %v4071_v5  ;;  %v4109_v51 = vmul.f32 0.5, %v4074_v6 }
 0x152   : > { %v1192_v15 = vmul.f32 %v1064_v9, %v585_v62  ;;  %v1194_v16 = vmul.f32 %v1066_v10, %v778_v63  ;;  %v940_v18 = vmul.f32 0.044715, %v589_v11  ;;  %v942_v20 = vmul.f32 0.044715, %v782_v12 }
 0x153   : > { %v594_v21 = vpop.f32.mrf.mxu0  ;;  %v787_v22 = vpop.f32.mrf.mxu1  ;;  %v4081_v26 = vadd.f32 %v590_v13, %v4064_v61  ;;  %v4086_v29 = vadd.f32 %v783_v14, %v4066_v0  ;;  %v1065_v33 = vmul.f32 %v937_v17, %v4071_v5  ;;  %v1067_v43 = vmul.f32 %v939_v19, %v4074_v6  ;;  %5937 = vst [vmem:[#allocation17_spill] sm:$0xff] %v4103_v45 }
 0x154   : > { %v1320_v23 = vadd.f32 %v1192_v15, %v585_v62  ;;  %v1322_v24 = vadd.f32 %v1194_v16, %v778_v63  ;;  %v1068_v25 = vmul.f32 %v940_v18, %v589_v11  ;;  %v1070_v28 = vmul.f32 %v942_v20, %v782_v12  ;;  %5938 = vst [vmem:[#allocation18_spill] sm:$0xff] %v4109_v51 }
 0x155   : > { %v596_v30 = vpop.f32.mrf.mxu0  ;;  %v789_v31 = vpop.f32.mrf.mxu1  ;;  %v941_v35 = vmul.f32 0.044715, %v4081_v26  ;;  %v4093_v38 = vadd.f32 %v594_v21, %v4060_v57  ;;  %v4096_v39 = vadd.f32 %v787_v22, %v4062_v58  ;;  %v4105_v47 = vmul.f32 0.5, %v589_v11 }
 0x156   : > { %v1196_v34 = vmul.f32 %v1068_v25, %v589_v11  ;;  %v1448_v36 = vmul.f32 0.7978846, %v1320_v23  ;;  %v1198_v37 = vmul.f32 %v1070_v28, %v782_v12  ;;  %v1450_v42 = vmul.f32 0.7978846, %v1322_v24 }
 0x157   : > { %5935 = vst [vmem:[#allocation15_spill] sm:$0xff] %v4093_v38  ;;  %5936 = vst [vmem:[#allocation16_spill] sm:$0xff] %v4096_v39  ;;  %v598_v40 = vpop.f32.mrf.mxu0  ;;  %v791_v41 = vpop.f32.mrf.mxu1  ;;  %v4100_v44 = vadd.f32 %v596_v30, %v4064_v61  ;;  %v943_v48 = vmul.f32 0.044715, %v4086_v29  ;;  %v4112_v52 = vmul.f32 %v1065_v33, %v4071_v5  ;;  %v4114_v54 = vmul.f32 0.5, %v782_v12 }
 0x158   : > { %v1324_v46 = vadd.f32 %v1196_v34, %v589_v11  ;;  %v1326_v53 = vadd.f32 %v1198_v37, %v782_v12  ;;  %v1069_v55 = vmul.f32 %v941_v35, %v4081_v26  ;;  %3362 = vtanh.f32 %v1448_v36 }
 0x159   : > { %v600_v49 = vpop.f32.mrf.mxu0  ;;  %v793_v50 = vpop.f32.mrf.mxu1  ;;  %v944_v56 = vmul.f32 0.044715, %v4093_v38  ;;  %v946_v59 = vmul.f32 0.044715, %v4096_v39  ;;  %v4120_v60 = vadd.f32 %v789_v31, %v4066_v0  ;;  %3364 = vtanh.f32 %v1450_v42 }
 0x15a   : > { %v4123_v1 = vmul.f32 %v1067_v43, %v4074_v6  ;;  %v945_v2 = vmul.f32 0.044715, %v4100_v44  ;;  %v4127_v3 = vadd.f32 %v598_v40, %v4060_v57  ;;  %v1452_v4 = vmul.f32 0.7978846, %v1324_v46 }
 0x15b   : > { %v604_v62 = vpop.f32.mrf.mxu0  ;;  %v797_v63 = vpop.f32.mrf.mxu1  ;;  %v1071_v7 = vmul.f32 %v943_v48, %v4086_v29  ;;  %v947_v8 = vmul.f32 0.044715, %v4120_v60  ;;  %v4132_v9 = vadd.f32 %v791_v41, %v4062_v58  ;;  %v1454_v12 = vmul.f32 0.7978846, %v1326_v53 }
 0x15c   : > { %5939 = vst [vmem:[#allocation19_spill] sm:$0xff] %v4127_v3  ;;  %v4135_v13 = vmul.f32 %v1069_v55, %v4081_v26  ;;  %v948_v14 = vmul.f32 0.044715, %v4127_v3  ;;  %v4139_v15 = vadd.f32 %v600_v49, %v4064_v61  ;;  %v1072_v16 = vmul.f32 %v944_v56, %v4093_v38 }
 0x15d   : > { %5940 = vst [vmem:[#allocation20_spill] sm:$0xff] %v4132_v9  ;;  %v606_v10 = vpop.f32.mrf.mxu0  ;;  %v799_v11 = vpop.f32.mrf.mxu1  ;;  %v1074_v17 = vmul.f32 %v946_v59, %v4096_v39  ;;  %v4144_v18 = vadd.f32 %v793_v50, %v4066_v0  ;;  %v4147_v19 = vadd.f32 %v604_v62, %v4060_v57  ;;  %v1073_v22 = vmul.f32 %v945_v2, %v4100_v44 }
 0x15e   : > { %v1075_v23 = vmul.f32 %v947_v8, %v4120_v60  ;;  %v4152_v24 = vadd.f32 %v797_v63, %v4062_v58  ;;  %v4155_v25 = vadd.f32 %v606_v10, %v4064_v61  ;;  %3366 = vtanh.f32 %v1452_v4 }
 0x15f   : > { %5941 = vst [vmem:[#allocation21_spill] sm:$0xff] %v4147_v19  ;;  %v608_v20 = vpop.f32.mrf.mxu0  ;;  %v801_v21 = vpop.f32.mrf.mxu1  ;;  %v4158_v28 = vmul.f32 %v1071_v7, %v4086_v29  ;;  %v950_v30 = vmul.f32 0.044715, %v4132_v9  ;;  %v949_v31 = vmul.f32 0.044715, %v4139_v15  ;;  %3368 = vtanh.f32 %v1454_v12 }
 0x160   : > { %5942 = vst [vmem:[#allocation22_spill] sm:$0xff] %v4152_v24  ;;  %5943 = vst [vmem:[#allocation23_spill] sm:$0xff] %v4155_v25  ;;  %v1076_v35 = vmul.f32 %v948_v14, %v4127_v3  ;;  %v951_v36 = vmul.f32 0.044715, %v4144_v18  ;;  %v952_v37 = vmul.f32 0.044715, %v4147_v19  ;;  %v4166_v40 = vmul.f32 %v1072_v16, %v4093_v38 }
 0x161   : > { %v610_v33 = vpop.f32.mrf.mxu0  ;;  %v803_v34 = vpop.f32.mrf.mxu1  ;;  %v954_v41 = vmul.f32 0.044715, %v4152_v24  ;;  %v953_v42 = vmul.f32 0.044715, %v4155_v25  ;;  %v4171_v43 = vadd.f32 %v799_v11, %v4066_v0  ;;  %v4174_v49 = vmul.f32 %v1074_v17, %v4096_v39 }
 0x162   : > { %5944 = vst [vmem:[#allocation24_spill] sm:$0xff] %v4166_v40  ;;  %v4177_v50 = vmul.f32 %v1073_v22, %v4100_v44  ;;  %v4180_v53 = vmul.f32 %v1075_v23, %v4120_v60  ;;  %v4183_v55 = vadd.f32 %v608_v20, %v4060_v57  ;;  %v1078_v56 = vmul.f32 %v950_v30, %v4132_v9 }
 0x163   : > { %5945 = vst [vmem:[#allocation25_spill] sm:$0xff] %v4171_v43  ;;  %v614_v46 = vpop.f32.mrf.mxu0  ;;  %v807_v48 = vpop.f32.mrf.mxu1  ;;  %5946 = vst [vmem:[#allocation26_spill] sm:$0xff] %v4174_v49  ;;  %v1077_v59 = vmul.f32 %v949_v31, %v4139_v15  ;;  %v955_v62 = vmul.f32 0.044715, %v4171_v43  ;;  %v4189_v63 = vadd.f32 %v801_v21, %v4062_v58  ;;  %v4192_v7 = vmul.f32 %v1076_v35, %v4127_v3 }
 0x164   : > { %5947 = vst [vmem:[#allocation27_spill] sm:$0xff] %v4183_v55  ;;  %v1079_v8 = vmul.f32 %v951_v36, %v4144_v18  ;;  %v1080_v10 = vmul.f32 %v952_v37, %v4147_v19  ;;  %v4197_v11 = vadd.f32 %v610_v33, %v4064_v61  ;;  %v1082_v12 = vmul.f32 %v954_v41, %v4152_v24 }
 0x165   : > { %5948 = vst [vmem:[#allocation28_spill] sm:$0xff] %v4189_v63  ;;  %v616_v2 = vpop.f32.mrf.mxu0  ;;  %v809_v4 = vpop.f32.mrf.mxu1  ;;  %5949 = vst [vmem:[#allocation29_spill] sm:$0xff] %v4192_v7  ;;  %v1081_v14 = vmul.f32 %v953_v42, %v4155_v25  ;;  %v4202_v16 = vadd.f32 %v803_v34, %v4066_v0  ;;  %v4205_v17 = vadd.f32 %v614_v46, %v4060_v57  ;;  %v956_v30 = vmul.f32 0.044715, %v4183_v55 }
 0x166   : > { %v4207_v22 = vpop.eup %3362  ;;  %v1083_v23 = vmul.f32 %v955_v62, %v4171_v43  ;;  %v4212_v31 = vadd.f32 %v807_v48, %v4062_v58  ;;  %v4215_v33 = vadd.f32 %v616_v2, %v4064_v61  ;;  %v4220_v34 = vmul.f32 %v1078_v56, %v4132_v9 }
 0x167   : > { %5950 = vst [vmem:[#allocation30_spill] sm:$0xff] %v4205_v17  ;;  %v618_v20 = vpop.f32.mrf.mxu0  ;;  %v811_v21 = vpop.f32.mrf.mxu1  ;;  %v4223_v36 = vmul.f32 %v1077_v59, %v4139_v15  ;;  %v958_v37 = vmul.f32 0.044715, %v4189_v63  ;;  %v957_v41 = vmul.f32 0.044715, %v4197_v11  ;;  %v4228_v48 = vmul.f32 %v1079_v8, %v4144_v18 }
 0x168   : > { %5951 = vst [vmem:[#allocation31_spill] sm:$0xff] %v4212_v31  ;;  %v4217_v35 = vpop.eup %3364  ;;  %5952 = vst [vmem:[#allocation32_spill] sm:$0xff] %v4220_v34  ;;  %v4231_v62 = vmul.f32 %v1080_v10, %v4147_v19  ;;  %v959_v2 = vmul.f32 0.044715, %v4202_v16  ;;  %v960_v56 = vmul.f32 0.044715, %v4205_v17  ;;  %v4236_v34 = vmul.f32 %v1082_v12, %v4152_v24 }
 0x169   : > { %v620_v42 = vpop.f32.mrf.mxu0  ;;  %v813_v46 = vpop.f32.mrf.mxu1  ;;  %v4239_v59 = vmul.f32 %v1081_v14, %v4155_v25  ;;  %v962_v9 = vmul.f32 0.044715, %v4212_v31  ;;  %v4243_v49 = vadd.f32 %v809_v4, %v4066_v0  ;;  %v4246_v10 = vmul.f32 %v1083_v23, %v4171_v43 }
 0x16a   : > { %5953 = vst [vmem:[#allocation33_spill] sm:$0xff] %v4231_v62  ;;  %5954 = vst [vmem:[#allocation34_spill] sm:$0xff] %v4236_v34  ;;  %v1084_v62 = vmul.f32 %v956_v30, %v4183_v55  ;;  %v961_v19 = vmul.f32 0.044715, %v4215_v33  ;;  %v4251_v12 = vadd.f32 %v618_v20, %v4060_v57  ;;  %v1086_v14 = vmul.f32 %v958_v37, %v4189_v63 }
 0x16b   : > { %5955 = vst [vmem:[#allocation35_spill] sm:$0xff] %v4239_v59  ;;  %v624_v8 = vpop.f32.mrf.mxu0  ;;  %v817_v39 = vpop.f32.mrf.mxu1  ;;  %5956 = vst [vmem:[#allocation36_spill] sm:$0xff] %v4246_v10  ;;  %v1085_v34 = vmul.f32 %v957_v41, %v4197_v11  ;;  %v963_v24 = vmul.f32 0.044715, %v4243_v49  ;;  %v4257_v4 = vadd.f32 %v811_v21, %v4062_v58  ;;  %v1087_v30 = vmul.f32 %v959_v2, %v4202_v16 }
 0x16c   : > { %5957 = vst [vmem:[#allocation37_spill] sm:$0xff] %v4251_v12  ;;  %v4259_v23 = vpop.eup %3366  ;;  %v1088_v10 = vmul.f32 %v960_v56, %v4205_v17  ;;  %v964_v20 = vmul.f32 0.044715, %v4251_v12  ;;  %v4265_v43 = vadd.f32 %v620_v42, %v4064_v61  ;;  %v1090_v41 = vmul.f32 %v962_v9, %v4212_v31 }
 0x16d   : > { %5958 = vst [vmem:[#allocation38_spill] sm:$0xff] %v4257_v4  ;;  %v626_v59 = vpop.f32.mrf.mxu0  ;;  %v819_v25 = vpop.f32.mrf.mxu1  ;;  %v966_v21 = vmul.f32 0.044715, %v4257_v4  ;;  %v4272_v7 = vadd.f32 %v813_v46, %v4066_v0  ;;  %v4275_v3 = vadd.f32 %v624_v8, %v4060_v57  ;;  %v4278_v56 = vmul.f32 %v1084_v62, %v4183_v55 }
 0x16e   : > { %v4267_v37 = vpop.eup %3368  ;;  %v1089_v42 = vmul.f32 %v961_v19, %v4215_v33  ;;  %v965_v40 = vmul.f32 0.044715, %v4265_v43  ;;  %v4283_v38 = vadd.f32 %v817_v39, %v4062_v58  ;;  %v4286_v9 = vmul.f32 %v1086_v14, %v4189_v63 }
 0x16f   : > { %v628_v2 = vpop.f32.mrf.mxu0  ;;  %v821_v51 = vpop.f32.mrf.mxu1  ;;  %5959 = vst [vmem:[#allocation39_spill] sm:$0xff] %v4278_v56  ;;  %v1091_v46 = vmul.f32 %v963_v24, %v4243_v49  ;;  %v967_v8 = vmul.f32 0.044715, %v4272_v7  ;;  %v4291_v45 = vadd.f32 %v626_v59, %v4064_v61  ;;  %v4294_v62 = vmul.f32 %v1085_v34, %v4197_v11 }
 0x170   : > { %5960 = vst [vmem:[#allocation40_spill] sm:$0xff] %v4283_v38  ;;  %5961 = vst [vmem:[#allocation41_spill] sm:$0xff] %v4286_v9  ;;  %v4297_v19 = vmul.f32 %v1087_v30, %v4202_v16  ;;  %v1092_v56 = vmul.f32 %v964_v20, %v4251_v12  ;;  %v968_v39 = vmul.f32 0.044715, %v4275_v3  ;;  %v4302_v14 = vmul.f32 %v1088_v10, %v4205_v17 }
 0x171   : > { %v630_v55 = vpop.f32.mrf.mxu0  ;;  %v4305_v24 = vmul.f32 %v1090_v41, %v4212_v31  ;;  %v1094_v59 = vmul.f32 %v966_v21, %v4257_v4  ;;  %v4309_v9 = vadd.f32 %v819_v25, %v4066_v0  ;;  %v823_v34 = vpop.f32.mrf.mxu1  ;;  %v4312_v30 = vmul.f32 %v1089_v42, %v4215_v33 }
 0x172   : > { %5962 = vst [vmem:[#allocation42_spill] sm:$0xff] %v4297_v19  ;;  %5963 = vst [vmem:[#allocation43_spill] sm:$0xff] %v4302_v14  ;;  %v1093_v20 = vmul.f32 %v965_v40, %v4265_v43  ;;  %v970_v63 = vmul.f32 0.044715, %v4283_v38  ;;  %v4317_v19 = vadd.f32 %v628_v2, %v4060_v57  ;;  %v4320_v10 = vmul.f32 %v1091_v46, %v4243_v49 }
 0x173   : > { %5964 = vst [vmem:[#allocation44_spill] sm:$0xff] %v4305_v24  ;;  %v1095_v41 = vmul.f32 %v967_v8, %v4272_v7  ;;  %v969_v21 = vmul.f32 0.044715, %v4291_v45  ;;  %v4325_v25 = vadd.f32 %v821_v51, %v4062_v58  ;;  %v4328_v42 = vmul.f32 %v1092_v56, %v4251_v12  ;;  %v634_v31 = vpop.f32.mrf.mxu0  ;;  %v827_v56 = vpop.f32.mrf.mxu1 }
 0x174   : > { %5965 = vst [vmem:[#allocation45_spill] sm:$0xff] %v4317_v19  ;;  %v1096_v40 = vmul.f32 %v968_v39, %v4275_v3  ;;  %v971_v24 = vmul.f32 0.044715, %v4309_v9  ;;  %v4333_v2 = vadd.f32 %v630_v55, %v4064_v61  ;;  %v4336_v46 = vmul.f32 %v1094_v59, %v4257_v4 }
 0x175   : > { %5966 = vst [vmem:[#allocation46_spill] sm:$0xff] %v4325_v25  ;;  %5967 = vst [vmem:[#allocation47_spill] sm:$0xff] %v4328_v42  ;;  %v972_v8 = vmul.f32 0.044715, %v4317_v19  ;;  %v4340_v14 = vadd.f32 %v823_v34, %v4066_v0  ;;  %v1321_v51 = vadd.f32 %v4112_v52, %v4071_v5  ;;  %v4345_v39 = vmul.f32 %v1093_v20, %v4265_v43  ;;  %v636_v17 = vpop.f32.mrf.mxu0 }
 0x176   : > { %5968 = vst [vmem:[#allocation48_spill] sm:$0xff] %v4336_v46  ;;  %v1098_v42 = vmul.f32 %v970_v63, %v4283_v38  ;;  %v974_v55 = vmul.f32 0.044715, %v4325_v25  ;;  %v1325_v59 = vadd.f32 %v4135_v13, %v4081_v26  ;;  %v4352_v46 = vmul.f32 %v1095_v41, %v4272_v7 }
 0x177   : > { %v1097_v34 = vmul.f32 %v969_v21, %v4291_v45  ;;  %v973_v4 = vmul.f32 0.044715, %v4333_v2  ;;  %v1449_v12 = vmul.f32 0.7978846, %v1321_v51  ;;  %v4357_v5 = vmul.f32 %v1096_v40, %v4275_v3 }
 0x178   : > { %5969 = vst [vmem:[#allocation49_spill] sm:$0xff] %v4352_v46  ;;  %v1099_v52 = vmul.f32 %v971_v24, %v4309_v9  ;;  %v1453_v20 = vmul.f32 0.7978846, %v1325_v59  ;;  %v1323_v63 = vadd.f32 %v4123_v1, %v4074_v6  ;;  %v1100_v13 = vmul.f32 %v972_v8, %v4317_v19  ;;  %v829_v46 = vpop.f32.mrf.mxu1 }
 0x179   : > { %v975_v41 = vmul.f32 0.044715, %v4340_v14  ;;  %3370 = vtanh.f32 %v1449_v12  ;;  %v1327_v21 = vadd.f32 %v4158_v28, %v4086_v29  ;;  %v4367_v51 = vmul.f32 %v1098_v42, %v4283_v38 }
 0x17a   : > { %v1102_v40 = vmul.f32 %v974_v55, %v4325_v25  ;;  %3372 = vtanh.f32 %v1453_v20  ;;  %v1451_v24 = vmul.f32 0.7978846, %v1323_v63  ;;  %v1101_v59 = vmul.f32 %v973_v4, %v4333_v2  ;;  %v638_v55 = vpop.f32.mrf.mxu0  ;;  %v831_v20 = vpop.f32.mrf.mxu1 }
 0x17b   : > { %5970 = vst [vmem:[#allocation50_spill] sm:$0xff] %v4367_v51  ;;  %v1455_v6 = vmul.f32 0.7978846, %v1327_v21  ;;  %v4372_v1 = vadd.f32 %v634_v31, %v4060_v57  ;;  %v4375_v8 = vadd.f32 %v827_v56, %v4062_v58  ;;  %v4378_v12 = vmul.f32 %v1097_v34, %v4291_v45 }
 0x17c   : > { %v4381_v28 = vmul.f32 %v1099_v52, %v4309_v9  ;;  %v4384_v42 = vmul.f32 0.5, %v4081_v26  ;;  %3374 = vtanh.f32 %v1451_v24  ;;  %v4387_v4 = vmul.f32 %v1100_v13, %v4317_v19 }
 0x17d   : > { %5971 = vst [vmem:[#allocation51_spill] sm:$0xff] %v4372_v1  ;;  %5972 = vst [vmem:[#allocation52_spill] sm:$0xff] %v4375_v8  ;;  %v1103_v31 = vmul.f32 %v975_v41, %v4340_v14  ;;  %3376 = vtanh.f32 %v1455_v6  ;;  %v1836_v56 = vadd.f32 1.0, %v4259_v23  ;;  %v976_v34 = vmul.f32 0.044715, %v4372_v1 }
 0x17e   : > { %5973 = vst [vmem:[#allocation53_spill] sm:$0xff] %v4387_v4  ;;  %v978_v63 = vmul.f32 0.044715, %v4375_v8  ;;  %v1838_v52 = vadd.f32 1.0, %v4267_v37  ;;  %v4395_v26 = vadd.f32 %v636_v17, %v4064_v61  ;;  %v4398_v21 = vmul.f32 %v1102_v40, %v4325_v25  ;;  %v640_v40 = vpop.f32.mrf.mxu0 }
 0x17f   : > { %v4401_v13 = vmul.f32 %v1101_v59, %v4333_v2  ;;  %v1832_v41 = vadd.f32 1.0, %v4207_v22  ;;  %v4405_v23 = vadd.f32 %v829_v46, %v4066_v0  ;;  %v1834_v24 = vadd.f32 1.0, %v4217_v35  ;;  %v833_v35 = vpop.f32.mrf.mxu1 }
 0x180   : > { %5974 = vst [vmem:[#allocation54_spill] sm:$0xff] %v4398_v21  ;;  %v977_v6 = vmul.f32 0.044715, %v4395_v26  ;;  %v4410_v37 = vadd.f32 %v638_v55, %v4060_v57  ;;  %v4413_v17 = vadd.f32 %v831_v20, %v4062_v58  ;;  %v4416_v21 = vmul.f32 %v1103_v31, %v4340_v14 }
 0x181   : > { %5975 = vst [vmem:[#allocation55_spill] sm:$0xff] %v4405_v23  ;;  %v1583_v59 = vmul.f32 0.5, %v4086_v29  ;;  %v4420_v22 = vmul.f32 %v1836_v56, %v4105_v47  ;;  %v979_v46 = vmul.f32 0.044715, %v4405_v23  ;;  %v1104_v25 = vmul.f32 %v976_v34, %v4372_v1 }
 0x182   : > { %5976 = vst [vmem:[#allocation56_spill] sm:$0xff] %v4410_v37  ;;  %5977 = vst [vmem:[#allocation57_spill] sm:$0xff] %v4413_v17  ;;  %v1106_v55 = vmul.f32 %v978_v63, %v4375_v8  ;;  %v4426_v51 = vmul.f32 %v1838_v52, %v4114_v54  ;;  %v980_v20 = vmul.f32 0.044715, %v4410_v37  ;;  %v1105_v31 = vmul.f32 %v977_v6, %v4395_v26 }
 0x183   : > { %v4431_v38 = vadd.f32 %v640_v40, %v4064_v61  ;;  %v1329_v29 = vadd.f32 %v4177_v50, %v4100_v44  ;;  %v1333_v47 = vadd.f32 %v4223_v36, %v4139_v15  ;;  %v1960_v56 = vmul.f32 %v1832_v41, %v4083_v27  ;;  %v644_v41 = vpop.f32.mrf.mxu0 }
 0x184   : > { %v4439_v34 = vmul.f32 %v1834_v24, %v4088_v32  ;;  %v982_v54 = vmul.f32 0.044715, %v4413_v17  ;;  %v4443_v63 = vadd.f32 %v833_v35, %v4066_v0  ;;  %v1107_v52 = vmul.f32 %v979_v46, %v4405_v23 }
 0x185   : > { %v1108_v6 = vmul.f32 %v980_v20, %v4410_v37  ;;  %v1457_v40 = vmul.f32 0.7978846, %v1329_v29  ;;  %v1461_v4 = vmul.f32 0.7978846, %v1333_v47  ;;  %v4448_v19 = vmul.f32 %v1104_v25, %v4372_v1 }
 0x186   : > { %5978 = vst [vmem:[#allocation58_spill] sm:$0xff] %v4443_v63  ;;  %v3371_v50 = vpop.eup %3370  ;;  %v4451_v27 = vmul.f32 %v1106_v55, %v4375_v8  ;;  %v2088_v32 = vpack.c.bf16 %v4420_v22, %v1960_v56  ;;  %v2090_v36 = vpack.c.bf16 %v4426_v51, %v4439_v34  ;;  %v4457_v46 = vmul.f32 %v1105_v31, %v4395_v26  ;;  %v837_v22 = vpop.f32.mrf.mxu1 }
 0x187   : > { %5979 = vst [vmem:[#allocation59_spill] sm:$0xff] %v4448_v19  ;;  %v3373_v24 = vpop.eup %3372  ;;  %v1833_v35 = vadd.f32 1.0, %v3371_v50  ;;  %v981_v20 = vmul.f32 0.044715, %v4431_v38  ;;  %3378 = vtanh.f32 %v1457_v40  ;;  %v983_v25 = vmul.f32 0.044715, %v4443_v63  ;;  %v646_v8 = vpop.f32.mrf.mxu0 }
 0x188   : > { %5980 = vst [vmem:[#allocation60_spill] sm:$0xff] %v4451_v27  ;;  %v1837_v29 = vadd.f32 1.0, %v3373_v24  ;;  %3380 = vtanh.f32 %v1461_v4  ;;  %v1331_v55 = vadd.f32 %v4180_v53, %v4120_v60  ;;  %v4464_v51 = vmul.f32 %v1107_v52, %v4405_v23  ;;  %v5983_v50 = vld [vmem:[#allocation17_spill] sm:$0xff] }
 0x189   : > { %v3375_v47 = vpop.eup %3374  ;;  %v4467_v56 = vmul.f32 %v1108_v6, %v4410_v37  ;;  %v1110_v31 = vmul.f32 %v982_v54, %v4413_v17  ;;  %v1335_v34 = vadd.f32 %v4228_v48, %v4144_v18  ;;  %v1961_v24 = vmul.f32 %v1833_v35, %v5983_v50  ;;  %v5985_v48 = vld [vmem:[#allocation15_spill] sm:$0xff]  ;;  %v5986_v37 = vld [vmem:[#allocation24_spill] sm:$0xff]  ;;  %v839_v35 = vpop.f32.mrf.mxu1  ;;  %v5987_v50 = vld [vmem:[#allocation18_spill] sm:$0xff] }
 0x18a   : > { %5981 = vst [vmem:[#allocation61_spill] sm:$0xff] %v4464_v51  ;;  %v3377_v40 = vpop.eup %3376  ;;  %v1965_v4 = vmul.f32 %v1837_v29, %v4384_v42  ;;  %v1835_v27 = vadd.f32 1.0, %v3375_v47  ;;  %v1459_v53 = vmul.f32 0.7978846, %v1331_v55  ;;  %v1109_v52 = vmul.f32 %v981_v20, %v4431_v38  ;;  %v5990_v47 = vld [vmem:[#allocation19_spill] sm:$0xff] }
 0x18b   : > { %5982 = vst [vmem:[#allocation62_spill] sm:$0xff] %v4467_v56  ;;  %v1839_v19 = vadd.f32 1.0, %v3377_v40  ;;  %v1463_v1 = vmul.f32 0.7978846, %v1335_v34  ;;  %v4476_v6 = vadd.f32 %v644_v41, %v4060_v57  ;;  %v1111_v54 = vmul.f32 %v983_v25, %v4443_v63  ;;  %v5991_v25 = vld [vmem:[#allocation29_spill] sm:$0xff] }
 0x18c   : > { %v2089_v56 = vpack.c.bf16 %v1965_v4, %v1961_v24  ;;  %3382 = vtanh.f32 %v1459_v53  ;;  %v1328_v51 = vadd.f32 %v5986_v37, %v5985_v48  ;;  %v1963_v42 = vmul.f32 %v1835_v27, %v5987_v50  ;;  %v648_v24 = vpop.f32.mrf.mxu0  ;;  %v5996_v4 = vld [vmem:[#allocation32_spill] sm:$0xff]  ;;  %v841_v50 = vpop.f32.mrf.mxu1 }
 0x18d   : > { %5984 = vst [vmem:[#allocation17_spill] sm:$0xff] %v4476_v6  ;;  %v1967_v29 = vmul.f32 %v1839_v19, %v1583_v59  ;;  %3384 = vtanh.f32 %v1463_v1  ;;  %v4483_v55 = vadd.f32 %v837_v22, %v4062_v58  ;;  %v4486_v20 = vmul.f32 %v1110_v31, %v4413_v17  ;;  %v5992_v1 = vld [vmem:[#allocation16_spill] sm:$0xff]  ;;  %v5993_v59 = vld [vmem:[#allocation26_spill] sm:$0xff] }
 0x18e   : > { %2447 = vmatprep.mubr.bf16.mxu0 %v2089_v56  ;;  %v1585_v41 = vmul.f32 0.5, %v4100_v44  ;;  %v1332_v34 = vadd.f32 %v5991_v25, %v5990_v47  ;;  %v1456_v40 = vmul.f32 0.7978846, %v1328_v51  ;;  %v1589_v27 = vmul.f32 0.5, %v4139_v15  ;;  %v5995_v44 = vld [vmem:[#allocation20_spill] sm:$0xff] }
 0x18f   : > { %5988 = vst [vmem:[#allocation15_spill] sm:$0xff] %v4483_v55  ;;  %5989 = vst [vmem:[#allocation24_spill] sm:$0xff] %v4486_v20  ;;  %v2091_v37 = vpack.c.bf16 %v1967_v29, %v1963_v42  ;;  %2448 = vmatmul.mubr.bf16.vlgmr.msra.gmra.mxu0 %v2088_v32  ;;  %v984_v19 = vmul.f32 0.044715, %v4476_v6  ;;  %v1330_v22 = vadd.f32 %v5993_v59, %v5992_v1  ;;  %v1587_v15 = vmul.f32 0.5, %v4120_v60 }
 0x190   : > { %v4496_v56 = vmul.f32 %v1109_v52, %v4431_v38  ;;  %v1460_v31 = vmul.f32 0.7978846, %v1332_v34  ;;  %3386 = vtanh.f32 %v1456_v40  ;;  %v1334_v53 = vadd.f32 %v5996_v4, %v5995_v44  ;;  %v650_v34 = vpop.f32.mrf.mxu0 }
 0x191   : > { %2608 = vmatprep.mubr.bf16.mxu1 %v2091_v37  ;;  %v4501_v51 = vmul.f32 %v1111_v54, %v4443_v63  ;;  %v986_v32 = vmul.f32 0.044715, %v4483_v55  ;;  %v1458_v42 = vmul.f32 0.7978846, %v1330_v22  ;;  %v4506_v52 = vadd.f32 %v646_v8, %v4064_v61 }
 0x192   : > { %5994 = vst [vmem:[#allocation18_spill] sm:$0xff] %v4496_v56  ;;  %2609 = vmatmul.mubr.bf16.vlgmr.msra.gmra.mxu1 %v2090_v36  ;;  %3388 = vtanh.f32 %v1460_v31  ;;  %v1462_v29 = vmul.f32 0.7978846, %v1334_v53  ;;  %v4509_v25 = vadd.f32 %v839_v35, %v4066_v0  ;;  %v1112_v40 = vmul.f32 %v984_v19, %v4476_v6  ;;  %v843_v35 = vpop.f32.mrf.mxu1 }
 0x193   : > { %5997 = vst [vmem:[#allocation19_spill] sm:$0xff] %v4501_v51  ;;  %5998 = vst [vmem:[#allocation29_spill] sm:$0xff] %v4506_v52  ;;  %3390 = vtanh.f32 %v1458_v42  ;;  %v4513_v54 = vadd.f32 %v648_v24, %v4060_v57  ;;  %v4516_v60 = vadd.f32 %v841_v50, %v4062_v58  ;;  %v1591_v36 = vmul.f32 0.5, %v4144_v18  ;;  %v6002_v42 = vld [vmem:[#allocation23_spill] sm:$0xff] }
 0x194   : > { %5999 = vst [vmem:[#allocation16_spill] sm:$0xff] %v4509_v25  ;;  %v3379_v37 = vpop.eup %3378  ;;  %3392 = vtanh.f32 %v1462_v29  ;;  %v985_v8 = vmul.f32 0.044715, %v4506_v52  ;;  %v987_v59 = vmul.f32 0.044715, %v4509_v25  ;;  %v1114_v19 = vmul.f32 %v986_v32, %v4483_v55  ;;  %v6003_v29 = vld [vmem:[#allocation35_spill] sm:$0xff] }
 0x195   : > { %6000 = vst [vmem:[#allocation26_spill] sm:$0xff] %v4513_v54  ;;  %6001 = vst [vmem:[#allocation20_spill] sm:$0xff] %v4516_v60  ;;  %v3381_v22 = vpop.eup %3380  ;;  %v1841_v31 = vadd.f32 1.0, %v3379_v37  ;;  %v1584_v4 = vmul.f32 0.5, %v5985_v48  ;;  %v4524_v24 = vadd.f32 %v650_v34, %v4064_v61  ;;  %v1588_v50 = vmul.f32 0.5, %v5990_v47 }
 0x196   : > { %v1845_v53 = vadd.f32 1.0, %v3381_v22  ;;  %v988_v18 = vmul.f32 0.044715, %v4513_v54  ;;  %v1337_v20 = vadd.f32 %v6003_v29, %v6002_v42  ;;  %v4531_v17 = vmul.f32 %v1112_v40, %v4476_v6 }
 0x197   : > { %v4534_v37 = vmul.f32 0.5, %v5992_v1  ;;  %v990_v32 = vmul.f32 0.044715, %v4516_v60  ;;  %v4538_v48 = vadd.f32 %v843_v35, %v4066_v0  ;;  %v1969_v34 = vmul.f32 %v1841_v31, %v1585_v41 }
 0x198   : > { %6004 = vst [vmem:[#allocation32_spill] sm:$0xff] %v4531_v17  ;;  %v1973_v22 = vmul.f32 %v1845_v53, %v1589_v27  ;;  %v1113_v47 = vmul.f32 %v985_v8, %v4506_v52  ;;  %v1115_v51 = vmul.f32 %v987_v59, %v4509_v25  ;;  %v4543_v29 = vmul.f32 %v1114_v19, %v4483_v55  ;;  %v654_v53 = vpop.f32.mrf.mxu0 }
 0x199   : > { %v3383_v63 = vpop.eup %3382  ;;  %v1590_v40 = vmul.f32 0.5, %v5995_v44  ;;  %v989_v1 = vmul.f32 0.044715, %v4524_v24  ;;  %v1341_v17 = vadd.f32 %v4294_v62, %v4197_v11  ;;  %v1116_v41 = vmul.f32 %v988_v18, %v4513_v54  ;;  %v6008_v62 = vld [vmem:[#allocation25_spill] sm:$0xff] }
 0x19a   : > { %6005 = vst [vmem:[#allocation23_spill] sm:$0xff] %v4543_v29  ;;  %v3385_v6 = vpop.eup %3384  ;;  %v2093_v35 = vpack.c.bf16 %v1973_v22, %v1969_v34  ;;  %v1843_v23 = vadd.f32 1.0, %v3383_v63  ;;  %v1465_v27 = vmul.f32 0.7978846, %v1337_v20  ;;  %v1118_v59 = vmul.f32 %v990_v32, %v4516_v60  ;;  %v6009_v63 = vld [vmem:[#allocation36_spill] sm:$0xff]  ;;  %v6010_v32 = vld [vmem:[#allocation42_spill] sm:$0xff] }
 0x19b   : > { %v1847_v8 = vadd.f32 1.0, %v3385_v6  ;;  %v991_v31 = vmul.f32 0.044715, %v4538_v48  ;;  %v1469_v19 = vmul.f32 0.7978846, %v1341_v17  ;;  %v4553_v44 = vmul.f32 %v1113_v47, %v4506_v52  ;;  %v847_v17 = vpop.f32.mrf.mxu1 }
 0x19c   : > { %2455 = vmatprep.mubr.bf16.mxu0 %v2093_v35  ;;  %v4556_v29 = vmul.f32 %v1115_v51, %v4509_v25  ;;  %3394 = vtanh.f32 %v1465_v27  ;;  %v1339_v34 = vadd.f32 %v6009_v63, %v6008_v62  ;;  %v1971_v20 = vmul.f32 %v1843_v23, %v1587_v15  ;;  %v6012_v25 = vld [vmem:[#allocation21_spill] sm:$0xff] }
 0x19d   : > { %6006 = vst [vmem:[#allocation35_spill] sm:$0xff] %v4553_v44  ;;  %v3387_v18 = vpop.eup %3386  ;;  %v1975_v6 = vmul.f32 %v1847_v8, %v1591_v36  ;;  %3396 = vtanh.f32 %v1469_v19  ;;  %v1343_v22 = vadd.f32 %v6010_v32, %v4202_v16  ;;  %v1117_v35 = vmul.f32 %v989_v1, %v4524_v24  ;;  %v6013_v23 = vld [vmem:[#allocation33_spill] sm:$0xff]  ;;  %v656_v36 = vpop.f32.mrf.mxu0 }
 0x19e   : > { %6007 = vst [vmem:[#allocation63_spill] sm:$0xff] %v4556_v29  ;;  %v1840_v55 = vadd.f32 1.0, %v3387_v18  ;;  %v1467_v47 = vmul.f32 0.7978846, %v1339_v34  ;;  %v4564_v44 = vadd.f32 %v654_v53, %v4060_v57  ;;  %v1119_v29 = vmul.f32 %v991_v31, %v4538_v48  ;;  %v6016_v31 = vld [vmem:[#allocation27_spill] sm:$0xff] }
 0x19f   : > { %v3389_v51 = vpop.eup %3388  ;;  %v2095_v27 = vpack.c.bf16 %v1975_v6, %v1971_v20  ;;  %v1471_v63 = vmul.f32 0.7978846, %v1343_v22  ;;  %v1336_v15 = vadd.f32 %v6013_v23, %v6012_v25  ;;  %v4570_v32 = vmul.f32 %v1116_v41, %v4513_v54  ;;  %v6017_v20 = vld [vmem:[#allocation39_spill] sm:$0xff]  ;;  %v849_v22 = vpop.f32.mrf.mxu1 }
 0x1a0   : > { %6011 = vst [vmem:[#allocation25_spill] sm:$0xff] %v4564_v44  ;;  %v3391_v8 = vpop.eup %3390  ;;  %v1844_v19 = vadd.f32 1.0, %v3389_v51  ;;  %3398 = vtanh.f32 %v1467_v47  ;;  %v4573_v1 = vadd.f32 %v847_v17, %v4062_v58  ;;  %v1968_v34 = vmul.f32 %v1840_v55, %v1584_v4  ;;  %v658_v4 = vpop.f32.mrf.mxu0 }
 0x1a1   : > { %6014 = vst [vmem:[#allocation36_spill] sm:$0xff] %v4570_v32  ;;  %v3393_v53 = vpop.eup %3392  ;;  %2616 = vmatprep.mubr.bf16.mxu1 %v2095_v27  ;;  %v1842_v18 = vadd.f32 1.0, %v3391_v8  ;;  %3400 = vtanh.f32 %v1471_v63  ;;  %v1340_v6 = vadd.f32 %v6017_v20, %v6016_v31  ;;  %v992_v51 = vmul.f32 0.044715, %v4564_v44  ;;  %v6021_v20 = vld [vmem:[#allocation28_spill] sm:$0xff] }
 0x1a2   : > { %6015 = vst [vmem:[#allocation42_spill] sm:$0xff] %v4573_v1  ;;  %v1972_v23 = vmul.f32 %v1844_v19, %v1588_v50  ;;  %v1846_v52 = vadd.f32 1.0, %v3393_v53  ;;  %v1464_v56 = vmul.f32 0.7978846, %v1336_v15  ;;  %v4579_v41 = vmul.f32 %v1118_v59, %v4516_v60  ;;  %v6019_v15 = vld [vmem:[#allocation22_spill] sm:$0xff]  ;;  %v851_v60 = vpop.f32.mrf.mxu1 }
 0x1a3   : > { %v4582_v17 = vmul.f32 %v1117_v35, %v4524_v24  ;;  %v4585_v47 = vmul.f32 %v1119_v29, %v4538_v48  ;;  %v1468_v55 = vmul.f32 0.7978846, %v1340_v6  ;;  %v1970_v63 = vmul.f32 %v1842_v18, %v4534_v37  ;;  %v6020_v59 = vld [vmem:[#allocation34_spill] sm:$0xff]  ;;  %v6022_v35 = vld [vmem:[#allocation41_spill] sm:$0xff] }
 0x1a4   : > { %6018 = vst [vmem:[#allocation21_spill] sm:$0xff] %v4579_v41  ;;  %v2092_v27 = vpack.c.bf16 %v1972_v23, %v1968_v34  ;;  %v1974_v8 = vmul.f32 %v1846_v52, %v1590_v40  ;;  %v1593_v50 = vmul.f32 0.5, %v6002_v42  ;;  %v994_v19 = vmul.f32 0.044715, %v4573_v1  ;;  %v660_v40 = vpop.f32.mrf.mxu0 }
 0x1a5   : > { %3402 = vtanh.f32 %v1464_v56  ;;  %v1338_v53 = vadd.f32 %v6020_v59, %v6019_v15  ;;  %v1342_v41 = vadd.f32 %v6022_v35, %v6021_v20  ;;  %v1597_v6 = vmul.f32 0.5, %v4197_v11 }
 0x1a6   : > { %2456 = vmatmul.mubr.bf16.gmra.mxu0 %v2092_v27  ;;  %v2094_v29 = vpack.c.bf16 %v1974_v8, %v1970_v63  ;;  %v1120_v34 = vmul.f32 %v992_v51, %v4564_v44  ;;  %3404 = vtanh.f32 %v1468_v55  ;;  %v4597_v42 = vadd.f32 %v656_v36, %v4064_v61  ;;  %v853_v55 = vpop.f32.mrf.mxu1 }
 0x1a7   : > { %v1466_v52 = vmul.f32 0.7978846, %v1338_v53  ;;  %v1470_v37 = vmul.f32 0.7978846, %v1342_v41  ;;  %v4600_v56 = vadd.f32 %v849_v22, %v4066_v0  ;;  %v1595_v18 = vmul.f32 0.5, %v6008_v62 }
 0x1a8   : > { %2617 = vmatmul.mubr.bf16.gmra.mxu1 %v2094_v29  ;;  %v1599_v23 = vmul.f32 0.5, %v4202_v16  ;;  %v4605_v27 = vadd.f32 %v658_v4, %v4060_v57  ;;  %v4608_v11 = vadd.f32 %v851_v60, %v4062_v58  ;;  %v1122_v41 = vmul.f32 %v994_v19, %v4573_v1 }
 0x1a9   : > { %v3395_v51 = vpop.eup %3394  ;;  %v4612_v36 = vmul.f32 0.5, %v6012_v25  ;;  %3406 = vtanh.f32 %v1466_v52  ;;  %v993_v22 = vmul.f32 0.044715, %v4597_v42  ;;  %v995_v16 = vmul.f32 0.044715, %v4600_v56 }
 0x1aa   : > { %6023 = vst [vmem:[#allocation33_spill] sm:$0xff] %v4605_v27  ;;  %6024 = vst [vmem:[#allocation27_spill] sm:$0xff] %v4608_v11  ;;  %v3397_v63 = vpop.eup %3396  ;;  %v1849_v62 = vadd.f32 1.0, %v3395_v51  ;;  %3408 = vtanh.f32 %v1470_v37  ;;  %v4617_v4 = vadd.f32 %v660_v40, %v4064_v61  ;;  %v4620_v8 = vmul.f32 %v1120_v34, %v4564_v44  ;;  %v664_v44 = vpop.f32.mrf.mxu0 }
 0x1ab   : > { %v1853_v60 = vadd.f32 1.0, %v3397_v63  ;;  %v1596_v19 = vmul.f32 0.5, %v6016_v31  ;;  %v996_v25 = vmul.f32 0.044715, %v4605_v27  ;;  %v1121_v59 = vmul.f32 %v993_v22, %v4597_v42 }
 0x1ac   : > { %6025 = vst [vmem:[#allocation39_spill] sm:$0xff] %v4620_v8  ;;  %v998_v53 = vmul.f32 0.044715, %v4608_v11  ;;  %v4627_v35 = vadd.f32 %v853_v55, %v4066_v0  ;;  %v1345_v29 = vadd.f32 %v4312_v30, %v4215_v33  ;;  %v1977_v37 = vmul.f32 %v1849_v62, %v1593_v50 }
 0x1ad   : > { %v3399_v52 = vpop.eup %3398  ;;  %v1981_v40 = vmul.f32 %v1853_v60, %v1597_v6  ;;  %v4632_v34 = vmul.f32 %v1122_v41, %v4573_v1  ;;  %v1594_v31 = vmul.f32 0.5, %v6019_v15  ;;  %v1598_v22 = vmul.f32 0.5, %v6021_v20 }
 0x1ae   : > { %v3401_v51 = vpop.eup %3400  ;;  %v1851_v63 = vadd.f32 1.0, %v3399_v52  ;;  %v1123_v8 = vmul.f32 %v995_v16, %v4600_v56  ;;  %v997_v55 = vmul.f32 0.044715, %v4617_v4  ;;  %v1124_v30 = vmul.f32 %v996_v25, %v4605_v27 }
 0x1af   : > { %6026 = vst [vmem:[#allocation22_spill] sm:$0xff] %v4632_v34  ;;  %v2097_v32 = vpack.c.bf16 %v1981_v40, %v1977_v37  ;;  %v1855_v54 = vadd.f32 1.0, %v3401_v51  ;;  %v1349_v50 = vadd.f32 %v4345_v39, %v4265_v43  ;;  %v4642_v6 = vmul.f32 %v1121_v59, %v4597_v42  ;;  %v6028_v59 = vld [vmem:[#allocation49_spill] sm:$0xff]  ;;  %v857_v40 = vpop.f32.mrf.mxu1  ;;  %v666_v51 = vpop.f32.mrf.mxu0 }
 0x1b0   : > { %v1126_v15 = vmul.f32 %v998_v53, %v4608_v11  ;;  %v999_v41 = vmul.f32 0.044715, %v4627_v35  ;;  %v1473_v20 = vmul.f32 0.7978846, %v1345_v29  ;;  %v1979_v62 = vmul.f32 %v1851_v63, %v1595_v18  ;;  %v6033_v34 = vld [vmem:[#allocation37_spill] sm:$0xff] }
 0x1b1   : > { %2463 = vmatprep.mubr.bf16.mxu0 %v2097_v32  ;;  %v1983_v16 = vmul.f32 %v1855_v54, %v1599_v23  ;;  %v1477_v60 = vmul.f32 0.7978846, %v1349_v50  ;;  %v1347_v52 = vadd.f32 %v4320_v10, %v4243_v49  ;;  %v4649_v25 = vmul.f32 %v1123_v8, %v4600_v56  ;;  %v6031_v50 = vld [vmem:[#allocation30_spill] sm:$0xff] }
 0x1b2   : > { %v3403_v37 = vpop.eup %3402  ;;  %v1125_v39 = vmul.f32 %v997_v55, %v4617_v4  ;;  %3410 = vtanh.f32 %v1473_v20  ;;  %v1351_v53 = vadd.f32 %v6028_v59, %v4272_v7  ;;  %v1127_v10 = vmul.f32 %v999_v41, %v4627_v35  ;;  %v6032_v20 = vld [vmem:[#allocation43_spill] sm:$0xff] }
 0x1b3   : > { %6027 = vst [vmem:[#allocation34_spill] sm:$0xff] %v4649_v25  ;;  %v3405_v29 = vpop.eup %3404  ;;  %v2099_v32 = vpack.c.bf16 %v1983_v16, %v1979_v62  ;;  %v1848_v18 = vadd.f32 1.0, %v3403_v37  ;;  %3412 = vtanh.f32 %v1477_v60  ;;  %v1475_v54 = vmul.f32 0.7978846, %v1347_v52  ;;  %v6034_v62 = vld [vmem:[#allocation47_spill] sm:$0xff] }
 0x1b4   : > { %v1852_v23 = vadd.f32 1.0, %v3405_v29  ;;  %v1479_v63 = vmul.f32 0.7978846, %v1351_v53  ;;  %v4656_v8 = vadd.f32 %v664_v44, %v4060_v57  ;;  %v4659_v55 = vadd.f32 %v857_v40, %v4062_v58  ;;  %v859_v44 = vpop.f32.mrf.mxu1  ;;  %v668_v53 = vpop.f32.mrf.mxu0 }
 0x1b5   : > { %2624 = vmatprep.mubr.bf16.mxu1 %v2099_v32  ;;  %3414 = vtanh.f32 %v1475_v54  ;;  %v1344_v59 = vadd.f32 %v6032_v20, %v6031_v50  ;;  %v1348_v16 = vadd.f32 %v6034_v62, %v6033_v34  ;;  %v1976_v52 = vmul.f32 %v1848_v18, %v4612_v36 }
 0x1b6   : > { %6029 = vst [vmem:[#allocation28_spill] sm:$0xff] %v4656_v8  ;;  %6030 = vst [vmem:[#allocation41_spill] sm:$0xff] %v4659_v55  ;;  %v3407_v60 = vpop.eup %3406  ;;  %v1980_v37 = vmul.f32 %v1852_v23, %v1596_v19  ;;  %3416 = vtanh.f32 %v1479_v63  ;;  %v1000_v41 = vmul.f32 0.044715, %v4656_v8  ;;  %v4668_v40 = vmul.f32 %v1124_v30, %v4605_v27  ;;  %v6037_v23 = vld [vmem:[#allocation31_spill] sm:$0xff]  ;;  %v6038_v63 = vld [vmem:[#allocation44_spill] sm:$0xff] }
 0x1b7   : > { %v3409_v29 = vpop.eup %3408  ;;  %v1850_v32 = vadd.f32 1.0, %v3407_v60  ;;  %v1472_v54 = vmul.f32 0.7978846, %v1344_v59  ;;  %v1476_v1 = vmul.f32 0.7978846, %v1348_v16  ;;  %v4671_v62 = vmul.f32 %v1126_v15, %v4608_v11  ;;  %v861_v15 = vpop.f32.mrf.mxu1 }
 0x1b8   : > { %6035 = vst [vmem:[#allocation49_spill] sm:$0xff] %v4668_v40  ;;  %v2096_v20 = vpack.c.bf16 %v1980_v37, %v1976_v52  ;;  %v1854_v25 = vadd.f32 1.0, %v3409_v29  ;;  %v4674_v36 = vmul.f32 %v1125_v39, %v4617_v4  ;;  %v4677_v19 = vmul.f32 %v1127_v10, %v4627_v35  ;;  %v670_v52 = vpop.f32.mrf.mxu0  ;;  %v6039_v10 = vld [vmem:[#allocation38_spill] sm:$0xff]  ;;  %v6040_v29 = vld [vmem:[#allocation48_spill] sm:$0xff] }
 0x1b9   : > { %6036 = vst [vmem:[#allocation30_spill] sm:$0xff] %v4671_v62  ;;  %v1601_v18 = vmul.f32 0.5, %v4215_v33  ;;  %3418 = vtanh.f32 %v1472_v54  ;;  %v1346_v30 = vadd.f32 %v6038_v63, %v6037_v23  ;;  %v1978_v59 = vmul.f32 %v1850_v32, %v1594_v31 }
 0x1ba   : > { %2464 = vmatmul.mubr.bf16.gmra.mxu0 %v2096_v20  ;;  %v1982_v16 = vmul.f32 %v1854_v25, %v1598_v22  ;;  %v1002_v60 = vmul.f32 0.044715, %v4659_v55  ;;  %3420 = vtanh.f32 %v1476_v1  ;;  %v1605_v39 = vmul.f32 0.5, %v4265_v43  ;;  %v863_v20 = vpop.f32.mrf.mxu1  ;;  %v674_v27 = vpop.f32.mrf.mxu0 }
 0x1bb   : > { %v1128_v37 = vmul.f32 %v1000_v41, %v4656_v8  ;;  %v1350_v62 = vadd.f32 %v6040_v29, %v6039_v10  ;;  %v1474_v33 = vmul.f32 0.7978846, %v1346_v30  ;;  %v4688_v11 = vadd.f32 %v666_v51, %v4064_v61 }
 0x1bc   : > { %v2098_v54 = vpack.c.bf16 %v1982_v16, %v1978_v59  ;;  %v4691_v31 = vadd.f32 %v859_v44, %v4066_v0  ;;  %v4694_v22 = vadd.f32 %v668_v53, %v4060_v57  ;;  %v4697_v43 = vadd.f32 %v861_v15, %v4062_v58 }
 0x1bd   : > { %v1478_v1 = vmul.f32 0.7978846, %v1350_v62  ;;  %3422 = vtanh.f32 %v1474_v33  ;;  %v4700_v25 = vadd.f32 %v670_v52, %v4064_v61  ;;  %v1603_v41 = vmul.f32 0.5, %v4243_v49 }
 0x1be   : > { %6041 = vst [vmem:[#allocation43_spill] sm:$0xff] %v4694_v22  ;;  %6042 = vst [vmem:[#allocation37_spill] sm:$0xff] %v4697_v43  ;;  %2625 = vmatmul.mubr.bf16.gmra.mxu1 %v2098_v54  ;;  %v1607_v51 = vmul.f32 0.5, %v4272_v7  ;;  %v1130_v32 = vmul.f32 %v1002_v60, %v4659_v55  ;;  %v1001_v44 = vmul.f32 0.044715, %v4688_v11  ;;  %v1600_v62 = vmul.f32 0.5, %v6031_v50 }
 0x1bf   : > { %v3411_v53 = vpop.eup %3410  ;;  %v1604_v63 = vmul.f32 0.5, %v6033_v34  ;;  %3424 = vtanh.f32 %v1478_v1  ;;  %v1003_v30 = vmul.f32 0.044715, %v4691_v31  ;;  %v4710_v15 = vmul.f32 %v1128_v37, %v4656_v8 }
 0x1c0   : > { %v3413_v59 = vpop.eup %3412  ;;  %v1857_v16 = vadd.f32 1.0, %v3411_v53  ;;  %v1004_v49 = vmul.f32 0.044715, %v4694_v22  ;;  %v1353_v7 = vadd.f32 %v4378_v12, %v4291_v45  ;;  %v1006_v52 = vmul.f32 0.044715, %v4697_v43 }
 0x1c1   : > { %6043 = vst [vmem:[#allocation47_spill] sm:$0xff] %v4710_v15  ;;  %v1861_v60 = vadd.f32 1.0, %v3413_v59  ;;  %v1005_v50 = vmul.f32 0.044715, %v4700_v25  ;;  %v4718_v34 = vadd.f32 %v863_v20, %v4066_v0  ;;  %v4721_v33 = vmul.f32 %v1130_v32, %v4659_v55 }
 0x1c2   : > { %v3415_v29 = vpop.eup %3414  ;;  %v4724_v37 = vmul.f32 0.5, %v6037_v23  ;;  %v4727_v54 = vmul.f32 0.5, %v6039_v10  ;;  %v1129_v12 = vmul.f32 %v1001_v44, %v4688_v11  ;;  %v1985_v53 = vmul.f32 %v1857_v16, %v1601_v18 }
 0x1c3   : > { %6044 = vst [vmem:[#allocation31_spill] sm:$0xff] %v4721_v33  ;;  %v3417_v1 = vpop.eup %3416  ;;  %v1989_v59 = vmul.f32 %v1861_v60, %v1605_v39  ;;  %v1859_v15 = vadd.f32 1.0, %v3415_v29  ;;  %v1131_v8 = vmul.f32 %v1003_v30, %v4691_v31  ;;  %v1132_v40 = vmul.f32 %v1004_v49, %v4694_v22  ;;  %v867_v30 = vpop.f32.mrf.mxu1 }
 0x1c4   : > { %v1863_v20 = vadd.f32 1.0, %v3417_v1  ;;  %v1357_v32 = vadd.f32 %v4401_v13, %v4333_v2  ;;  %v1481_v33 = vmul.f32 0.7978846, %v1353_v7  ;;  %v1134_v55 = vmul.f32 %v1006_v52, %v4697_v43 }
 0x1c5   : > { %v2101_v23 = vpack.c.bf16 %v1989_v59, %v1985_v53  ;;  %v1133_v10 = vmul.f32 %v1005_v50, %v4700_v25  ;;  %v1007_v44 = vmul.f32 0.044715, %v4718_v34  ;;  %v1987_v39 = vmul.f32 %v1859_v15, %v1603_v41 }
 0x1c6   : > { %v3419_v18 = vpop.eup %3418  ;;  %v1991_v16 = vmul.f32 %v1863_v20, %v1607_v51  ;;  %v1485_v60 = vmul.f32 0.7978846, %v1357_v32  ;;  %3426 = vtanh.f32 %v1481_v33  ;;  %v4738_v13 = vmul.f32 %v1129_v12, %v4688_v11  ;;  %v676_v12 = vpop.f32.mrf.mxu0  ;;  %v6047_v32 = vld [vmem:[#allocation45_spill] sm:$0xff] }
 0x1c7   : > { %v3421_v29 = vpop.eup %3420  ;;  %2471 = vmatprep.mubr.bf16.mxu0 %v2101_v23  ;;  %v1856_v49 = vadd.f32 1.0, %v3419_v18  ;;  %v1355_v7 = vadd.f32 %v4381_v28, %v4309_v9  ;;  %v1359_v52 = vadd.f32 %v4416_v21, %v4340_v14  ;;  %v4745_v41 = vmul.f32 %v1131_v8, %v4691_v31  ;;  %v6048_v8 = vld [vmem:[#allocation53_spill] sm:$0xff]  ;;  %v869_v18 = vpop.f32.mrf.mxu1 }
 0x1c8   : > { %v2103_v50 = vpack.c.bf16 %v1991_v16, %v1987_v39  ;;  %v1860_v1 = vadd.f32 1.0, %v3421_v29  ;;  %3428 = vtanh.f32 %v1485_v60  ;;  %v4748_v53 = vadd.f32 %v674_v27, %v4060_v57 }
 0x1c9   : > { %v1984_v51 = vmul.f32 %v1856_v49, %v1600_v62  ;;  %v1483_v15 = vmul.f32 0.7978846, %v1355_v7  ;;  %v1487_v33 = vmul.f32 0.7978846, %v1359_v52  ;;  %v4751_v28 = vadd.f32 %v867_v30, %v4062_v58  ;;  %v678_v52 = vpop.f32.mrf.mxu0 }
 0x1ca   : > { %6045 = vst [vmem:[#allocation44_spill] sm:$0xff] %v4748_v53  ;;  %v3423_v59 = vpop.eup %3422  ;;  %2632 = vmatprep.mubr.bf16.mxu1 %v2103_v50  ;;  %v1988_v20 = vmul.f32 %v1860_v1, %v1604_v63  ;;  %v1352_v21 = vadd.f32 %v4357_v5, %v4275_v3  ;;  %v1356_v23 = vadd.f32 %v6048_v8, %v6047_v32  ;;  %v1008_v63 = vmul.f32 0.044715, %v4748_v53  ;;  %v6051_v50 = vld [vmem:[#allocation40_spill] sm:$0xff]  ;;  %v6052_v1 = vld [vmem:[#allocation50_spill] sm:$0xff] }
 0x1cb   : > { %6046 = vst [vmem:[#allocation38_spill] sm:$0xff] %v4751_v28  ;;  %v1858_v62 = vadd.f32 1.0, %v3423_v59  ;;  %v4758_v39 = vmul.f32 %v1132_v40, %v4694_v22  ;;  %v1135_v27 = vmul.f32 %v1007_v44, %v4718_v34  ;;  %3430 = vtanh.f32 %v1483_v15  ;;  %v871_v15 = vpop.f32.mrf.mxu1  ;;  %v6053_v59 = vld [vmem:[#allocation46_spill] sm:$0xff] }
 0x1cc   : > { %v3425_v16 = vpop.eup %3424  ;;  %v2100_v60 = vpack.c.bf16 %v1988_v20, %v1984_v51  ;;  %3432 = vtanh.f32 %v1487_v33  ;;  %v1480_v30 = vmul.f32 0.7978846, %v1352_v21  ;;  %v4763_v5 = vmul.f32 %v1134_v55, %v4697_v43 }
 0x1cd   : > { %6049 = vst [vmem:[#allocation48_spill] sm:$0xff] %v4758_v39  ;;  %v1862_v29 = vadd.f32 1.0, %v3425_v16  ;;  %v4766_v49 = vmul.f32 %v1133_v10, %v4700_v25  ;;  %v1484_v7 = vmul.f32 0.7978846, %v1356_v23  ;;  %v1609_v40 = vmul.f32 0.5, %v4291_v45  ;;  %v6054_v10 = vld [vmem:[#allocation54_spill] sm:$0xff] }
 0x1ce   : > { %6050 = vst [vmem:[#allocation45_spill] sm:$0xff] %v4763_v5  ;;  %2472 = vmatmul.mubr.bf16.gmra.mxu0 %v2100_v60  ;;  %v1010_v44 = vmul.f32 0.044715, %v4751_v28  ;;  %3434 = vtanh.f32 %v1480_v30  ;;  %v1354_v51 = vadd.f32 %v6052_v1, %v6051_v50  ;;  %v1986_v33 = vmul.f32 %v1858_v62, %v4724_v37 }
 0x1cf   : > { %v1990_v55 = vmul.f32 %v1862_v29, %v4727_v54  ;;  %3436 = vtanh.f32 %v1484_v7  ;;  %v1358_v20 = vadd.f32 %v6054_v10, %v6053_v59  ;;  %v4777_v21 = vmul.f32 %v1135_v27, %v4718_v34  ;;  %v680_v54 = vpop.f32.mrf.mxu0 }
 0x1d0   : > { %v1613_v45 = vmul.f32 0.5, %v4333_v2  ;;  %v1136_v8 = vmul.f32 %v1008_v63, %v4748_v53  ;;  %v1482_v23 = vmul.f32 0.7978846, %v1354_v51  ;;  %v4782_v30 = vadd.f32 %v676_v12, %v4064_v61  ;;  %v873_v63 = vpop.f32.mrf.mxu1 }
 0x1d1   : > { %v2102_v16 = vpack.c.bf16 %v1990_v55, %v1986_v33  ;;  %v1486_v60 = vmul.f32 0.7978846, %v1358_v20  ;;  %v4785_v37 = vadd.f32 %v869_v18, %v4066_v0  ;;  %v1138_v62 = vmul.f32 %v1010_v44, %v4751_v28  ;;  %v684_v43 = vpop.f32.mrf.mxu0 }
 0x1d2   : > { %3438 = vtanh.f32 %v1482_v23  ;;  %v4789_v27 = vadd.f32 %v678_v52, %v4060_v57  ;;  %v4792_v2 = vadd.f32 %v871_v15, %v4062_v58  ;;  %v1611_v7 = vmul.f32 0.5, %v4309_v9 }
 0x1d3   : > { %6055 = vst [vmem:[#allocation53_spill] sm:$0xff] %v4785_v37  ;;  %v3427_v29 = vpop.eup %3426  ;;  %2633 = vmatmul.mubr.bf16.gmra.mxu1 %v2102_v16  ;;  %3440 = vtanh.f32 %v1486_v60  ;;  %v1009_v12 = vmul.f32 0.044715, %v4782_v30  ;;  %v1011_v18 = vmul.f32 0.044715, %v4785_v37  ;;  %v1615_v44 = vmul.f32 0.5, %v4340_v14 }
 0x1d4   : > { %6056 = vst [vmem:[#allocation40_spill] sm:$0xff] %v4789_v27  ;;  %6057 = vst [vmem:[#allocation50_spill] sm:$0xff] %v4792_v2  ;;  %v1865_v1 = vadd.f32 1.0, %v3427_v29  ;;  %v1608_v51 = vmul.f32 0.5, %v4275_v3  ;;  %v4800_v52 = vadd.f32 %v680_v54, %v4064_v61  ;;  %v1612_v33 = vmul.f32 0.5, %v6047_v32 }
 0x1d5   : > { %v3429_v15 = vpop.eup %3428  ;;  %v1012_v55 = vmul.f32 0.044715, %v4789_v27  ;;  %v4805_v9 = vadd.f32 %v873_v63, %v4066_v0  ;;  %v1361_v10 = vadd.f32 %v4457_v46, %v4395_v26  ;;  %v4810_v23 = vmul.f32 %v1136_v8, %v4748_v53  ;;  %v6061_v8 = vld [vmem:[#allocation18_spill] sm:$0xff] }
 0x1d6   : > { %v1869_v20 = vadd.f32 1.0, %v3429_v15  ;;  %v4813_v3 = vmul.f32 %v1138_v62, %v4751_v28  ;;  %v1014_v14 = vmul.f32 0.044715, %v4792_v2  ;;  %v1610_v16 = vmul.f32 0.5, %v6051_v50 }
 0x1d7   : > { %6058 = vst [vmem:[#allocation46_spill] sm:$0xff] %v4805_v9  ;;  %6059 = vst [vmem:[#allocation54_spill] sm:$0xff] %v4810_v23  ;;  %v1614_v32 = vmul.f32 0.5, %v6053_v59  ;;  %v1137_v60 = vmul.f32 %v1009_v12, %v4782_v30  ;;  %v1139_v54 = vmul.f32 %v1011_v18, %v4785_v37  ;;  %v1993_v29 = vmul.f32 %v1865_v1, %v1609_v40 }
 0x1d8   : > { %6060 = vst [vmem:[#allocation64_spill] sm:$0xff] %v4813_v3  ;;  %v3431_v63 = vpop.eup %3430  ;;  %v1997_v46 = vmul.f32 %v1869_v20, %v1613_v45  ;;  %v1013_v15 = vmul.f32 0.044715, %v4800_v52  ;;  %v1365_v23 = vadd.f32 %v6061_v8, %v4431_v38  ;;  %v1140_v28 = vmul.f32 %v1012_v55, %v4789_v27  ;;  %v6063_v20 = vld [vmem:[#allocation55_spill] sm:$0xff]  ;;  %v6064_v8 = vld [vmem:[#allocation61_spill] sm:$0xff] }
 0x1d9   : > { %v3433_v62 = vpop.eup %3432  ;;  %v1867_v3 = vadd.f32 1.0, %v3431_v63  ;;  %v1015_v50 = vmul.f32 0.044715, %v4805_v9  ;;  %v1489_v53 = vmul.f32 0.7978846, %v1361_v10  ;;  %v1142_v12 = vmul.f32 %v1014_v14, %v4792_v2  ;;  %v6065_v10 = vld [vmem:[#allocation58_spill] sm:$0xff]  ;;  %v877_v14 = vpop.f32.mrf.mxu1 }
 0x1da   : > { %v2105_v59 = vpack.c.bf16 %v1997_v46, %v1993_v29  ;;  %v1871_v5 = vadd.f32 1.0, %v3433_v62  ;;  %v1493_v18 = vmul.f32 0.7978846, %v1365_v23  ;;  %v4827_v1 = vmul.f32 %v1137_v60, %v4782_v30  ;;  %v6066_v29 = vld [vmem:[#allocation19_spill] sm:$0xff] }
 0x1db   : > { %v3435_v40 = vpop.eup %3434  ;;  %v1995_v45 = vmul.f32 %v1867_v3, %v1611_v7  ;;  %3442 = vtanh.f32 %v1489_v53  ;;  %v1363_v63 = vadd.f32 %v6064_v8, %v6063_v20  ;;  %v1367_v46 = vadd.f32 %v6066_v29, %v6065_v10  ;;  %v6069_v29 = vld [vmem:[#allocation51_spill] sm:$0xff] }
 0x1dc   : > { %6062 = vst [vmem:[#allocation18_spill] sm:$0xff] %v4827_v1  ;;  %v3437_v39 = vpop.eup %3436  ;;  %2479 = vmatprep.mubr.bf16.mxu0 %v2105_v59  ;;  %v1999_v55 = vmul.f32 %v1871_v5, %v1615_v44  ;;  %v1864_v22 = vadd.f32 1.0, %v3435_v40  ;;  %3444 = vtanh.f32 %v1493_v18  ;;  %v4834_v62 = vmul.f32 %v1139_v54, %v4785_v37  ;;  %v686_v5 = vpop.f32.mrf.mxu0 }
 0x1dd   : > { %v1868_v23 = vadd.f32 1.0, %v3437_v39  ;;  %v1141_v7 = vmul.f32 %v1013_v15, %v4800_v52  ;;  %v1491_v3 = vmul.f32 0.7978846, %v1363_v63  ;;  %v1143_v60 = vmul.f32 %v1015_v50, %v4805_v9  ;;  %v6070_v39 = vld [vmem:[#allocation59_spill] sm:$0xff]  ;;  %v6072_v50 = vld [vmem:[#allocation56_spill] sm:$0xff] }
 0x1de   : > { %6067 = vst [vmem:[#allocation55_spill] sm:$0xff] %v4834_v62  ;;  %v2107_v53 = vpack.c.bf16 %v1999_v55, %v1995_v45  ;;  %v1495_v8 = vmul.f32 0.7978846, %v1367_v46  ;;  %v4839_v59 = vadd.f32 %v684_v43, %v4060_v57  ;;  %v1992_v18 = vmul.f32 %v1864_v22, %v1608_v51  ;;  %v6073_v45 = vld [vmem:[#allocation62_spill] sm:$0xff]  ;;  %v879_v43 = vpop.f32.mrf.mxu1 }
 0x1df   : > { %v3439_v44 = vpop.eup %3438  ;;  %v1996_v40 = vmul.f32 %v1868_v23, %v1612_v33  ;;  %3446 = vtanh.f32 %v1491_v3  ;;  %v1360_v1 = vadd.f32 %v6070_v39, %v6069_v29  ;;  %v4844_v15 = vadd.f32 %v877_v14, %v4062_v58 }
 0x1e0   : > { %6068 = vst [vmem:[#allocation61_spill] sm:$0xff] %v4839_v59  ;;  %v3441_v54 = vpop.eup %3440  ;;  %2640 = vmatprep.mubr.bf16.mxu1 %v2107_v53  ;;  %v1866_v62 = vadd.f32 1.0, %v3439_v44  ;;  %3448 = vtanh.f32 %v1495_v8  ;;  %v1364_v63 = vadd.f32 %v6073_v45, %v6072_v50  ;;  %v1016_v22 = vmul.f32 0.044715, %v4839_v59  ;;  %v688_v53 = vpop.f32.mrf.mxu0 }
 0x1e1   : > { %6071 = vst [vmem:[#allocation58_spill] sm:$0xff] %v4844_v15  ;;  %v2104_v55 = vpack.c.bf16 %v1996_v40, %v1992_v18  ;;  %v1870_v46 = vadd.f32 1.0, %v3441_v54  ;;  %v1488_v51 = vmul.f32 0.7978846, %v1360_v1  ;;  %v4850_v33 = vmul.f32 %v1140_v28, %v4789_v27  ;;  %v6077_v28 = vld [vmem:[#allocation52_spill] sm:$0xff] }
 0x1e2   : > { %v4853_v23 = vmul.f32 %v1142_v12, %v4792_v2  ;;  %v4856_v3 = vmul.f32 %v1141_v7, %v4800_v52  ;;  %v1492_v14 = vmul.f32 0.7978846, %v1364_v63  ;;  %v1994_v8 = vmul.f32 %v1866_v62, %v1610_v16  ;;  %v6078_v40 = vld [vmem:[#allocation60_spill] sm:$0xff]  ;;  %v6079_v12 = vld [vmem:[#allocation57_spill] sm:$0xff]  ;;  %v881_v7 = vpop.f32.mrf.mxu1 }
 0x1e3   : > { %6074 = vst [vmem:[#allocation19_spill] sm:$0xff] %v4850_v33  ;;  %2480 = vmatmul.mubr.bf16.gmra.mxu0 %v2104_v55  ;;  %v1998_v44 = vmul.f32 %v1870_v46, %v1614_v32  ;;  %v4859_v18 = vmul.f32 %v1143_v60, %v4805_v9  ;;  %3450 = vtanh.f32 %v1488_v51  ;;  %v1018_v1 = vmul.f32 0.044715, %v4844_v15  ;;  %v6080_v54 = vld [vmem:[#allocation24_spill] sm:$0xff]  ;;  %v690_v51 = vpop.f32.mrf.mxu0 }
 0x1e4   : > { %6075 = vst [vmem:[#allocation51_spill] sm:$0xff] %v4853_v23  ;;  %3452 = vtanh.f32 %v1492_v14  ;;  %v1362_v39 = vadd.f32 %v6078_v40, %v6077_v28  ;;  %v1366_v45 = vadd.f32 %v6080_v54, %v6079_v12  ;;  %v1617_v63 = vmul.f32 0.5, %v4395_v26  ;;  %v883_v40 = vpop.f32.mrf.mxu1 }
 0x1e5   : > { %6076 = vst [vmem:[#allocation59_spill] sm:$0xff] %v4859_v18  ;;  %v2106_v23 = vpack.c.bf16 %v1998_v44, %v1994_v8  ;;  %v1621_v16 = vmul.f32 0.5, %v4431_v38  ;;  %v1144_v32 = vmul.f32 %v1016_v22, %v4839_v59  ;;  %v4870_v55 = vadd.f32 %v686_v5, %v4064_v61  ;;  %v694_v18 = vpop.f32.mrf.mxu0 }
 0x1e6   : > { %v1490_v62 = vmul.f32 0.7978846, %v1362_v39  ;;  %v1494_v60 = vmul.f32 0.7978846, %v1366_v45  ;;  %v4873_v46 = vadd.f32 %v879_v43, %v4066_v0  ;;  %v1619_v14 = vmul.f32 0.5, %v6063_v20 }
 0x1e7   : > { %2641 = vmatmul.mubr.bf16.gmra.mxu1 %v2106_v23  ;;  %v1623_v8 = vmul.f32 0.5, %v6065_v10  ;;  %v4878_v26 = vadd.f32 %v688_v53, %v4060_v57  ;;  %v4881_v38 = vadd.f32 %v881_v7, %v4062_v58  ;;  %v1146_v44 = vmul.f32 %v1018_v1, %v4844_v15 }
 0x1e8   : > { %v3443_v22 = vpop.eup %3442  ;;  %v1616_v5 = vmul.f32 0.5, %v6069_v29  ;;  %3454 = vtanh.f32 %v1490_v62  ;;  %v1017_v43 = vmul.f32 0.044715, %v4870_v55  ;;  %v1019_v20 = vmul.f32 0.044715, %v4873_v46 }
 0x1e9   : > { %6081 = vst [vmem:[#allocation56_spill] sm:$0xff] %v4878_v26  ;;  %6082 = vst [vmem:[#allocation62_spill] sm:$0xff] %v4881_v38  ;;  %v3445_v23 = vpop.eup %3444  ;;  %v1873_v39 = vadd.f32 1.0, %v3443_v22  ;;  %3456 = vtanh.f32 %v1494_v60  ;;  %v4888_v10 = vadd.f32 %v690_v51, %v4064_v61  ;;  %v4891_v54 = vmul.f32 %v1144_v32, %v4839_v59  ;;  %v6085_v60 = vld [vmem:[#allocation29_spill] sm:$0xff]  ;;  %v6086_v22 = vld [vmem:[#allocation35_spill] sm:$0xff] }
 0x1ea   : > { %v1877_v53 = vadd.f32 1.0, %v3445_v23  ;;  %v1620_v1 = vmul.f32 0.5, %v6072_v50  ;;  %v1020_v29 = vmul.f32 0.044715, %v4878_v26  ;;  %v1145_v45 = vmul.f32 %v1017_v43, %v4870_v55 }
 0x1eb   : > { %6083 = vst [vmem:[#allocation52_spill] sm:$0xff] %v4891_v54  ;;  %v1022_v7 = vmul.f32 0.044715, %v4881_v38  ;;  %v4898_v62 = vadd.f32 %v883_v40, %v4066_v0  ;;  %v1369_v2 = vadd.f32 %v6086_v22, %v6085_v60  ;;  %v2001_v33 = vmul.f32 %v1873_v39, %v1617_v63 }
 0x1ec   : > { %v3447_v51 = vpop.eup %3446  ;;  %v2005_v23 = vmul.f32 %v1877_v53, %v1621_v16  ;;  %v4903_v32 = vmul.f32 %v1146_v44, %v4844_v15  ;;  %v4906_v50 = vmul.f32 0.5, %v6077_v28  ;;  %v1622_v43 = vmul.f32 0.5, %v6079_v12 }
 0x1ed   : > { %6084 = vst [vmem:[#allocation60_spill] sm:$0xff] %v4898_v62  ;;  %v3449_v54 = vpop.eup %3448  ;;  %v1875_v59 = vadd.f32 1.0, %v3447_v51  ;;  %v1147_v27 = vmul.f32 %v1019_v20, %v4873_v46  ;;  %v1021_v40 = vmul.f32 0.044715, %v4888_v10  ;;  %v1148_v63 = vmul.f32 %v1020_v29, %v4878_v26  ;;  %v887_v29 = vpop.f32.mrf.mxu1 }
 0x1ee   : > { %6087 = vst [vmem:[#allocation57_spill] sm:$0xff] %v4903_v32  ;;  %v2109_v9 = vpack.c.bf16 %v2005_v23, %v2001_v33  ;;  %v1879_v22 = vadd.f32 1.0, %v3449_v54  ;;  %v1373_v16 = vadd.f32 %v4582_v17, %v4524_v24  ;;  %v4915_v44 = vmul.f32 %v1145_v45, %v4870_v55  ;;  %v6089_v33 = vld [vmem:[#allocation16_spill] sm:$0xff]  ;;  %v6090_v54 = vld [vmem:[#allocation63_spill] sm:$0xff] }
 0x1ef   : > { %v1150_v28 = vmul.f32 %v1022_v7, %v4881_v38  ;;  %v1023_v39 = vmul.f32 0.044715, %v4898_v62  ;;  %v1497_v12 = vmul.f32 0.7978846, %v1369_v2  ;;  %v2003_v20 = vmul.f32 %v1875_v59, %v1619_v14  ;;  %v696_v7 = vpop.f32.mrf.mxu0 }
 0x1f0   : > { %6088 = vst [vmem:[#allocation24_spill] sm:$0xff] %v4915_v44  ;;  %v3451_v53 = vpop.eup %3450  ;;  %2487 = vmatprep.mubr.bf16.mxu0 %v2109_v9  ;;  %v2007_v51 = vmul.f32 %v1879_v22, %v1623_v8  ;;  %v1501_v32 = vmul.f32 0.7978846, %v1373_v16  ;;  %v1371_v23 = vadd.f32 %v6090_v54, %v6089_v33  ;;  %v1149_v17 = vmul.f32 %v1021_v40, %v4888_v10 }
 0x1f1   : > { %v3453_v15 = vpop.eup %3452  ;;  %v1872_v37 = vadd.f32 1.0, %v3451_v53  ;;  %3458 = vtanh.f32 %v1497_v12  ;;  %v1375_v45 = vadd.f32 %v4585_v47, %v4538_v48  ;;  %v1151_v14 = vmul.f32 %v1023_v39, %v4898_v62  ;;  %v6093_v12 = vld [vmem:[#allocation17_spill] sm:$0xff]  ;;  %v6094_v47 = vld [vmem:[#allocation32_spill] sm:$0xff] }
 0x1f2   : > { %v2111_v44 = vpack.c.bf16 %v2007_v51, %v2003_v20  ;;  %v1876_v2 = vadd.f32 1.0, %v3453_v15  ;;  %3460 = vtanh.f32 %v1501_v32  ;;  %v1499_v9 = vmul.f32 0.7978846, %v1371_v23  ;;  %v889_v20 = vpop.f32.mrf.mxu1 }
 0x1f3   : > { %v2000_v59 = vmul.f32 %v1872_v37, %v1616_v5  ;;  %v1503_v8 = vmul.f32 0.7978846, %v1375_v45  ;;  %v4926_v22 = vadd.f32 %v694_v18, %v4060_v57  ;;  %v4929_v40 = vadd.f32 %v887_v29, %v4062_v58  ;;  %v6096_v18 = vld [vmem:[#allocation26_spill] sm:$0xff]  ;;  %v6097_v5 = vld [vmem:[#allocation36_spill] sm:$0xff] }
 0x1f4   : > { %2648 = vmatprep.mubr.bf16.mxu1 %v2111_v44  ;;  %v2004_v16 = vmul.f32 %v1876_v2, %v1620_v1  ;;  %3462 = vtanh.f32 %v1499_v9  ;;  %v1368_v53 = vadd.f32 %v6094_v47, %v6093_v12  ;;  %v4934_v32 = vmul.f32 %v1147_v27, %v4873_v46  ;;  %v698_v1 = vpop.f32.mrf.mxu0 }
 0x1f5   : > { %6091 = vst [vmem:[#allocation29_spill] sm:$0xff] %v4926_v22  ;;  %6092 = vst [vmem:[#allocation35_spill] sm:$0xff] %v4929_v40  ;;  %v3455_v15 = vpop.eup %3454  ;;  %v4937_v37 = vmul.f32 %v1148_v63, %v4878_v26  ;;  %3464 = vtanh.f32 %v1503_v8  ;;  %v1372_v44 = vadd.f32 %v6097_v5, %v6096_v18  ;;  %v1024_v23 = vmul.f32 0.044715, %v4926_v22 }
 0x1f6   : > { %v3457_v39 = vpop.eup %3456  ;;  %v2108_v51 = vpack.c.bf16 %v2004_v16, %v2000_v59  ;;  %v1874_v54 = vadd.f32 1.0, %v3455_v15  ;;  %v1496_v29 = vmul.f32 0.7978846, %v1368_v53  ;;  %v4943_v2 = vmul.f32 %v1150_v28, %v4881_v38  ;;  %v6100_v59 = vld [vmem:[#allocation15_spill] sm:$0xff]  ;;  %v891_v15 = vpop.f32.mrf.mxu1  ;;  %v6102_v28 = vld [vmem:[#allocation20_spill] sm:$0xff] }
 0x1f7   : > { %6095 = vst [vmem:[#allocation16_spill] sm:$0xff] %v4937_v37  ;;  %v1878_v45 = vadd.f32 1.0, %v3457_v39  ;;  %v4946_v27 = vmul.f32 %v1149_v17, %v4888_v10  ;;  %v1500_v63 = vmul.f32 0.7978846, %v1372_v44  ;;  %v4949_v9 = vmul.f32 %v1151_v14, %v4898_v62  ;;  %v6101_v16 = vld [vmem:[#allocation23_spill] sm:$0xff]  ;;  %v6103_v39 = vld [vmem:[#allocation21_spill] sm:$0xff] }
 0x1f8   : > { %6098 = vst [vmem:[#allocation63_spill] sm:$0xff] %v4943_v2  ;;  %2488 = vmatmul.mubr.bf16.gmra.mxu0 %v2108_v51  ;;  %v1026_v8 = vmul.f32 0.044715, %v4929_v40  ;;  %3466 = vtanh.f32 %v1496_v29  ;;  %v1370_v47 = vadd.f32 %v6101_v16, %v6100_v59  ;;  %v2002_v53 = vmul.f32 %v1874_v54, %v4906_v50  ;;  %v700_v2 = vpop.f32.mrf.mxu0 }
 0x1f9   : > { %6099 = vst [vmem:[#allocation17_spill] sm:$0xff] %v4949_v9  ;;  %v2006_v5 = vmul.f32 %v1878_v45, %v1622_v43  ;;  %3468 = vtanh.f32 %v1500_v63  ;;  %v1374_v17 = vadd.f32 %v6103_v39, %v6102_v28  ;;  %v1625_v44 = vmul.f32 0.5, %v6085_v60  ;;  %v893_v60 = vpop.f32.mrf.mxu1 }
 0x1fa   : > { %v1629_v14 = vmul.f32 0.5, %v4524_v24  ;;  %v1152_v51 = vmul.f32 %v1024_v23, %v4926_v22  ;;  %v1498_v38 = vmul.f32 0.7978846, %v1370_v47  ;;  %v4961_v16 = vadd.f32 %v696_v7, %v4064_v61 }
 0x1fb   : > { %v2110_v29 = vpack.c.bf16 %v2006_v5, %v2002_v53  ;;  %v1502_v37 = vmul.f32 0.7978846, %v1374_v17  ;;  %v4964_v50 = vadd.f32 %v889_v20, %v4066_v0  ;;  %v4967_v43 = vadd.f32 %v698_v1, %v4060_v57 }
 0x1fc   : > { %3470 = vtanh.f32 %v1498_v38  ;;  %v4970_v54 = vadd.f32 %v891_v15, %v4062_v58  ;;  %v4973_v24 = vadd.f32 %v700_v2, %v4064_v61  ;;  %v1627_v23 = vmul.f32 0.5, %v6089_v33 }
 0x1fd   : > { %6104 = vst [vmem:[#allocation32_spill] sm:$0xff] %v4967_v43  ;;  %2649 = vmatmul.mubr.bf16.gmra.mxu1 %v2110_v29  ;;  %v1154_v7 = vmul.f32 %v1026_v8, %v4929_v40  ;;  %3472 = vtanh.f32 %v1502_v37  ;;  %v1025_v20 = vmul.f32 0.044715, %v4961_v16  ;;  %v1631_v38 = vmul.f32 0.5, %v4538_v48 }
 0x1fe   : > { %6105 = vst [vmem:[#allocation26_spill] sm:$0xff] %v4970_v54  ;;  %v3459_v45 = vpop.eup %3458  ;;  %v1624_v1 = vmul.f32 0.5, %v6093_v12  ;;  %v1628_v63 = vmul.f32 0.5, %v6096_v18  ;;  %v1027_v47 = vmul.f32 0.044715, %v4964_v50  ;;  %v4983_v53 = vmul.f32 %v1152_v51, %v4926_v22 }
 0x1ff   : > { %v3461_v2 = vpop.eup %3460  ;;  %v1881_v15 = vadd.f32 1.0, %v3459_v45  ;;  %v1028_v33 = vmul.f32 0.044715, %v4967_v43  ;;  %v4987_v37 = vadd.f32 %v893_v60, %v4066_v0  ;;  %v1030_v5 = vmul.f32 0.044715, %v4970_v54 }
 0x200   : > { %6106 = vst [vmem:[#allocation36_spill] sm:$0xff] %v4983_v53  ;;  %v1885_v8 = vadd.f32 1.0, %v3461_v2  ;;  %v1029_v48 = vmul.f32 0.044715, %v4973_v24  ;;  %v1377_v12 = vadd.f32 %v4642_v6, %v4597_v42  ;;  %v4994_v39 = vmul.f32 %v1154_v7, %v4929_v40 }
 0x201   : > { %6107 = vst [vmem:[#allocation15_spill] sm:$0xff] %v4987_v37  ;;  %v3463_v18 = vpop.eup %3462  ;;  %v1626_v17 = vmul.f32 0.5, %v6100_v59  ;;  %v1630_v51 = vmul.f32 0.5, %v6102_v28  ;;  %v1153_v29 = vmul.f32 %v1025_v20, %v4961_v16  ;;  %v2009_v45 = vmul.f32 %v1881_v15, %v1625_v44 }
 0x202   : > { %6108 = vst [vmem:[#allocation23_spill] sm:$0xff] %v4994_v39  ;;  %v3465_v60 = vpop.eup %3464  ;;  %v2013_v2 = vmul.f32 %v1885_v8, %v1629_v14  ;;  %v1883_v53 = vadd.f32 1.0, %v3463_v18  ;;  %v1155_v22 = vmul.f32 %v1027_v47, %v4964_v50  ;;  %v1156_v9 = vmul.f32 %v1028_v33, %v4967_v43  ;;  %v704_v39 = vpop.f32.mrf.mxu0  ;;  %v6109_v47 = vld [vmem:[#allocation34_spill] sm:$0xff] }
 0x203   : > { %v1887_v26 = vadd.f32 1.0, %v3465_v60  ;;  %v1031_v6 = vmul.f32 0.044715, %v4987_v37  ;;  %v1381_v7 = vadd.f32 %v4674_v36, %v4617_v4  ;;  %v1158_v28 = vmul.f32 %v1030_v5, %v4970_v54  ;;  %v897_v5 = vpop.f32.mrf.mxu1 }
 0x204   : > { %v2113_v59 = vpack.c.bf16 %v2013_v2, %v2009_v45  ;;  %v1157_v20 = vmul.f32 %v1029_v48, %v4973_v24  ;;  %v1505_v40 = vmul.f32 0.7978846, %v1377_v12  ;;  %v2011_v14 = vmul.f32 %v1883_v53, %v1627_v23 }
 0x205   : > { %v3467_v44 = vpop.eup %3466  ;;  %v2015_v15 = vmul.f32 %v1887_v26, %v1631_v38  ;;  %v1509_v8 = vmul.f32 0.7978846, %v1381_v7  ;;  %v1379_v18 = vadd.f32 %v6109_v47, %v4600_v56  ;;  %v5009_v62 = vmul.f32 %v1153_v29, %v4961_v16  ;;  %v706_v26 = vpop.f32.mrf.mxu0 }
 0x206   : > { %v3469_v33 = vpop.eup %3468  ;;  %2495 = vmatprep.mubr.bf16.mxu0 %v2113_v59  ;;  %v1880_v60 = vadd.f32 1.0, %v3467_v44  ;;  %3474 = vtanh.f32 %v1505_v40  ;;  %v1383_v36 = vadd.f32 %v4677_v19, %v4627_v35  ;;  %v1159_v53 = vmul.f32 %v1031_v6, %v4987_v37  ;;  %v6112_v19 = vld [vmem:[#allocation25_spill] sm:$0xff]  ;;  %v6113_v59 = vld [vmem:[#allocation39_spill] sm:$0xff] }
 0x207   : > { %v2115_v48 = vpack.c.bf16 %v2015_v15, %v2011_v14  ;;  %v1884_v12 = vadd.f32 1.0, %v3469_v33  ;;  %3476 = vtanh.f32 %v1509_v8  ;;  %v1507_v23 = vmul.f32 0.7978846, %v1379_v18  ;;  %v6114_v6 = vld [vmem:[#allocation33_spill] sm:$0xff] }
 0x208   : > { %v2008_v38 = vmul.f32 %v1880_v60, %v1624_v1  ;;  %v1511_v45 = vmul.f32 0.7978846, %v1383_v36  ;;  %v5015_v2 = vadd.f32 %v704_v39, %v4060_v57  ;;  %v5018_v40 = vadd.f32 %v897_v5, %v4062_v58  ;;  %v6115_v8 = vld [vmem:[#allocation49_spill] sm:$0xff]  ;;  %v899_v39 = vpop.f32.mrf.mxu1  ;;  %v708_v36 = vpop.f32.mrf.mxu0 }
 0x209   : > { %v3471_v7 = vpop.eup %3470  ;;  %2656 = vmatprep.mubr.bf16.mxu1 %v2115_v48  ;;  %v2012_v29 = vmul.f32 %v1884_v12, %v1628_v63  ;;  %3478 = vtanh.f32 %v1507_v23  ;;  %v1376_v44 = vadd.f32 %v6113_v59, %v6112_v19  ;;  %v1380_v47 = vadd.f32 %v6115_v8, %v6114_v6  ;;  %v6121_v8 = vld [vmem:[#allocation30_spill] sm:$0xff] }
 0x20a   : > { %6110 = vst [vmem:[#allocation20_spill] sm:$0xff] %v5015_v2  ;;  %6111 = vst [vmem:[#allocation21_spill] sm:$0xff] %v5018_v40  ;;  %v3473_v14 = vpop.eup %3472  ;;  %v1882_v15 = vadd.f32 1.0, %v3471_v7  ;;  %3480 = vtanh.f32 %v1511_v45  ;;  %v1032_v1 = vmul.f32 0.044715, %v5015_v2  ;;  %v5027_v5 = vmul.f32 %v1155_v22, %v4964_v50 }
 0x20b   : > { %v2112_v18 = vpack.c.bf16 %v2012_v29, %v2008_v38  ;;  %v1886_v33 = vadd.f32 1.0, %v3473_v14  ;;  %v1034_v63 = vmul.f32 0.044715, %v5018_v40  ;;  %v1504_v60 = vmul.f32 0.7978846, %v1376_v44  ;;  %v6118_v29 = vld [vmem:[#allocation42_spill] sm:$0xff] }
 0x20c   : > { %v5030_v48 = vmul.f32 %v1156_v9, %v4967_v43  ;;  %v1160_v12 = vmul.f32 %v1032_v1, %v5015_v2  ;;  %v1508_v23 = vmul.f32 0.7978846, %v1380_v47  ;;  %v2010_v45 = vmul.f32 %v1882_v15, %v1626_v17  ;;  %v6119_v44 = vld [vmem:[#allocation22_spill] sm:$0xff]  ;;  %v6120_v14 = vld [vmem:[#allocation27_spill] sm:$0xff]  ;;  %v710_v15 = vpop.f32.mrf.mxu0 }
 0x20d   : > { %2496 = vmatmul.mubr.bf16.gmra.mxu0 %v2112_v18  ;;  %v2014_v7 = vmul.f32 %v1886_v33, %v1630_v51  ;;  %v1162_v59 = vmul.f32 %v1034_v63, %v5018_v40  ;;  %3482 = vtanh.f32 %v1504_v60  ;;  %v5035_v38 = vmul.f32 %v1158_v28, %v4970_v54 }
 0x20e   : > { %6116 = vst [vmem:[#allocation34_spill] sm:$0xff] %v5030_v48  ;;  %3484 = vtanh.f32 %v1508_v23  ;;  %v1378_v22 = vadd.f32 %v6119_v44, %v6118_v29  ;;  %v1382_v9 = vadd.f32 %v6121_v8, %v6120_v14  ;;  %v901_v48 = vpop.f32.mrf.mxu1  ;;  %v5042_v1 = vmul.f32 %v1157_v20, %v4973_v24 }
 0x20f   : > { %6117 = vst [vmem:[#allocation25_spill] sm:$0xff] %v5035_v38  ;;  %v2114_v43 = vpack.c.bf16 %v2014_v7, %v2010_v45  ;;  %v5045_v17 = vmul.f32 %v1159_v53, %v4987_v37  ;;  %v1633_v51 = vmul.f32 0.5, %v4597_v42  ;;  %v1288_v28 = vmul.f32 %v1160_v12, %v5015_v2 }
 0x210   : > { %v1290_v47 = vmul.f32 %v1162_v59, %v5018_v40  ;;  %v1506_v18 = vmul.f32 0.7978846, %v1378_v22  ;;  %v1510_v33 = vmul.f32 0.7978846, %v1382_v9  ;;  %v5051_v63 = vadd.f32 %v706_v26, %v4064_v61  ;;  %v903_v54 = vpop.f32.mrf.mxu1 }
 0x211   : > { %6122 = vst [vmem:[#allocation39_spill] sm:$0xff] %v5045_v17  ;;  %2657 = vmatmul.mubr.bf16.gmra.mxu1 %v2114_v43  ;;  %v5054_v60 = vadd.f32 %v899_v39, %v4066_v0  ;;  %v5057_v20 = vadd.f32 %v708_v36, %v4060_v57  ;;  %v5060_v53 = vadd.f32 %v901_v48, %v4062_v58  ;;  %v1637_v42 = vmul.f32 0.5, %v4617_v4 }
 0x212   : > { %v1635_v12 = vmul.f32 0.5, %v4600_v56  ;;  %3486 = vtanh.f32 %v1506_v18  ;;  %v5065_v23 = vadd.f32 %v710_v15, %v4064_v61  ;;  %v1639_v26 = vmul.f32 0.5, %v4627_v35 }
 0x213   : > { %6123 = vst [vmem:[#allocation33_spill] sm:$0xff] %v5060_v53  ;;  %v3475_v43 = vpop.eup %3474  ;;  %v1632_v39 = vmul.f32 0.5, %v6112_v19  ;;  %3488 = vtanh.f32 %v1510_v33  ;;  %v1036_v36 = vmul.f32 0.044715, %v5057_v20  ;;  %v1416_v48 = vadd.f32 %v1288_v28, %v5015_v2 }
 0x214   : > { %v3477_v45 = vpop.eup %3476  ;;  %v1889_v7 = vadd.f32 1.0, %v3475_v43  ;;  %v1418_v4 = vadd.f32 %v1290_v47, %v5018_v40  ;;  %v1038_v56 = vmul.f32 0.044715, %v5060_v53  ;;  %v1033_v44 = vmul.f32 0.044715, %v5051_v63 }
 0x215   : > { %v1893_v59 = vadd.f32 1.0, %v3477_v45  ;;  %v1035_v22 = vmul.f32 0.044715, %v5054_v60  ;;  %v1164_v35 = vmul.f32 %v1036_v36, %v5057_v20  ;;  %v1636_v19 = vmul.f32 0.5, %v6114_v6 }
 0x216   : > { %v3479_v8 = vpop.eup %3478  ;;  %v5078_v9 = vmul.f32 0.5, %v6118_v29  ;;  %v1166_v15 = vmul.f32 %v1038_v56, %v5060_v53  ;;  %v1037_v28 = vmul.f32 0.044715, %v5065_v23  ;;  %v2017_v18 = vmul.f32 %v1889_v7, %v1633_v51 }
 0x217   : > { %v3481_v47 = vpop.eup %3480  ;;  %v2021_v33 = vmul.f32 %v1893_v59, %v1637_v42  ;;  %v1891_v43 = vadd.f32 1.0, %v3479_v8  ;;  %v1638_v45 = vmul.f32 0.5, %v6120_v14  ;;  %v1544_v2 = vmul.f32 0.7978846, %v1416_v48 }
 0x218   : > { %v1895_v40 = vadd.f32 1.0, %v3481_v47  ;;  %v1546_v38 = vmul.f32 0.7978846, %v1418_v4  ;;  %v1292_v36 = vmul.f32 %v1164_v35, %v5057_v20  ;;  %v1161_v29 = vmul.f32 %v1033_v44, %v5051_v63 }
 0x219   : > { %v2117_v6 = vpack.c.bf16 %v2021_v33, %v2017_v18  ;;  %v1163_v17 = vmul.f32 %v1035_v22, %v5054_v60  ;;  %v1385_v56 = vadd.f32 %v4738_v13, %v4688_v11  ;;  %v2019_v51 = vmul.f32 %v1891_v43, %v1635_v12 }
 0x21a   : > { %v3483_v37 = vpop.eup %3482  ;;  %v2023_v42 = vmul.f32 %v1895_v40, %v1639_v26  ;;  %v1294_v7 = vmul.f32 %v1166_v15, %v5060_v53  ;;  %v1165_v14 = vmul.f32 %v1037_v28, %v5065_v23  ;;  %v5091_v59 = vadd.f32 %v903_v54, %v4066_v0  ;;  %v907_v28 = vpop.f32.mrf.mxu1 }
 0x21b   : > { %v3485_v48 = vpop.eup %3484  ;;  %2503 = vmatprep.mubr.bf16.mxu0 %v2117_v6  ;;  %v1888_v4 = vadd.f32 1.0, %v3483_v37  ;;  %v1389_v44 = vadd.f32 %v4766_v49, %v4700_v25  ;;  %v1513_v22 = vmul.f32 0.7978846, %v1385_v56  ;;  %3490 = vtanh.f32 %v1544_v2  ;;  %v714_v2 = vpop.f32.mrf.mxu0 }
 0x21c   : > { %v2119_v35 = vpack.c.bf16 %v2023_v42, %v2019_v51  ;;  %v1892_v13 = vadd.f32 1.0, %v3485_v48  ;;  %v1420_v12 = vadd.f32 %v1292_v36, %v5057_v20  ;;  %3492 = vtanh.f32 %v1546_v38  ;;  %v6129_v48 = vld [vmem:[#allocation48_spill] sm:$0xff] }
 0x21d   : > { %v5097_v40 = vmul.f32 %v1161_v29, %v5051_v63  ;;  %v5100_v26 = vmul.f32 %v1163_v17, %v5054_v60  ;;  %v1517_v37 = vmul.f32 0.7978846, %v1389_v44  ;;  %v2016_v54 = vmul.f32 %v1888_v4, %v1632_v39  ;;  %v716_v44 = vpop.f32.mrf.mxu0 }
 0x21e   : > { %2664 = vmatprep.mubr.bf16.mxu1 %v2119_v35  ;;  %v2020_v8 = vmul.f32 %v1892_v13, %v1636_v19  ;;  %v1422_v15 = vadd.f32 %v1294_v7, %v5060_v53  ;;  %v5104_v49 = vmul.f32 %v1165_v14, %v5065_v23  ;;  %v1039_v38 = vmul.f32 0.044715, %v5091_v59  ;;  %v6127_v7 = vld [vmem:[#allocation47_spill] sm:$0xff] }
 0x21f   : > { %v3487_v47 = vpop.eup %3486  ;;  %3494 = vtanh.f32 %v1513_v22  ;;  %v1387_v18 = vadd.f32 %v4745_v41, %v4691_v31  ;;  %v1391_v17 = vadd.f32 %v4777_v21, %v4718_v34  ;;  %v1548_v43 = vmul.f32 0.7978846, %v1420_v12  ;;  %v6126_v41 = vld [vmem:[#allocation28_spill] sm:$0xff]  ;;  %v6128_v21 = vld [vmem:[#allocation43_spill] sm:$0xff]  ;;  %v909_v22 = vpop.f32.mrf.mxu1 }
 0x220   : > { %v3489_v33 = vpop.eup %3488  ;;  %v2116_v39 = vpack.c.bf16 %v2020_v8, %v2016_v54  ;;  %v1890_v19 = vadd.f32 1.0, %v3487_v47  ;;  %3496 = vtanh.f32 %v1517_v37  ;;  %v5112_v56 = vadd.f32 %v714_v2, %v4060_v57  ;;  %v6131_v47 = vld [vmem:[#allocation31_spill] sm:$0xff] }
 0x221   : > { %v1894_v36 = vadd.f32 1.0, %v3489_v33  ;;  %v1515_v6 = vmul.f32 0.7978846, %v1387_v18  ;;  %v1519_v29 = vmul.f32 0.7978846, %v1391_v17  ;;  %v5115_v42 = vadd.f32 %v907_v28, %v4062_v58  ;;  %v6130_v28 = vld [vmem:[#allocation41_spill] sm:$0xff] }
 0x222   : > { %6124 = vst [vmem:[#allocation49_spill] sm:$0xff] %v5112_v56  ;;  %2504 = vmatmul.mubr.bf16.gmra.mxu0 %v2116_v39  ;;  %v1550_v51 = vmul.f32 0.7978846, %v1422_v15  ;;  %v1384_v14 = vadd.f32 %v6127_v7, %v6126_v41  ;;  %v1388_v4 = vadd.f32 %v6129_v48, %v6128_v21  ;;  %v2018_v35 = vmul.f32 %v1890_v19, %v5078_v9  ;;  %v6133_v33 = vld [vmem:[#allocation45_spill] sm:$0xff]  ;;  %v718_v19 = vpop.f32.mrf.mxu0 }
 0x223   : > { %6125 = vst [vmem:[#allocation42_spill] sm:$0xff] %v5115_v42  ;;  %v2022_v13 = vmul.f32 %v1894_v36, %v1638_v45  ;;  %3498 = vtanh.f32 %v1515_v6  ;;  %v1040_v12 = vmul.f32 0.044715, %v5112_v56  ;;  %v1042_v37 = vmul.f32 0.044715, %v5115_v42  ;;  %v6132_v45 = vld [vmem:[#allocation37_spill] sm:$0xff]  ;;  %v911_v36 = vpop.f32.mrf.mxu1 }
 0x224   : > { %3500 = vtanh.f32 %v1519_v29  ;;  %v1512_v54 = vmul.f32 0.7978846, %v1384_v14  ;;  %v1516_v8 = vmul.f32 0.7978846, %v1388_v4  ;;  %v1386_v18 = vadd.f32 %v6131_v47, %v6130_v28 }
 0x225   : > { %v2118_v15 = vpack.c.bf16 %v2022_v13, %v2018_v35  ;;  %3502 = vtanh.f32 %v1548_v43  ;;  %v1168_v2 = vmul.f32 %v1040_v12, %v5112_v56  ;;  %v1167_v17 = vmul.f32 %v1039_v38, %v5091_v59 }
 0x226   : > { %v1170_v9 = vmul.f32 %v1042_v37, %v5115_v42  ;;  %3504 = vtanh.f32 %v1512_v54  ;;  %v1390_v39 = vadd.f32 %v6133_v33, %v6132_v45  ;;  %v1641_v6 = vmul.f32 0.5, %v4688_v11 }
 0x227   : > { %2665 = vmatmul.mubr.bf16.gmra.mxu1 %v2118_v15  ;;  %v1296_v43 = vmul.f32 %v1168_v2, %v5112_v56  ;;  %3506 = vtanh.f32 %v1516_v8  ;;  %v1514_v29 = vmul.f32 0.7978846, %v1386_v18  ;;  %v5135_v38 = vadd.f32 %v716_v44, %v4064_v61  ;;  %v720_v15 = vpop.f32.mrf.mxu0 }
 0x228   : > { %3508 = vtanh.f32 %v1550_v51  ;;  %v1298_v7 = vmul.f32 %v1170_v9, %v5115_v42  ;;  %v1518_v14 = vmul.f32 0.7978846, %v1390_v39  ;;  %v5137_v48 = vpop.eup %3490  ;;  %v5140_v4 = vadd.f32 %v909_v22, %v4066_v0  ;;  %v913_v9 = vpop.f32.mrf.mxu1 }
 0x229   : > { %6134 = vst [vmem:[#allocation22_spill] sm:$0xff] %v5137_v48  ;;  %3510 = vtanh.f32 %v1514_v29  ;;  %v5143_v35 = vadd.f32 %v718_v19, %v4060_v57  ;;  %v5146_v11 = vadd.f32 %v911_v36, %v4062_v58  ;;  %v5148_v13 = vpop.eup %3492  ;;  %v5151_v51 = vmul.f32 %v1167_v17, %v5091_v59 }
 0x22a   : > { %6135 = vst [vmem:[#allocation27_spill] sm:$0xff] %v5140_v4  ;;  %6138 = vst [vmem:[#allocation47_spill] sm:$0xff] %v5148_v13  ;;  %v1645_v44 = vmul.f32 0.5, %v4700_v25  ;;  %v1424_v12 = vadd.f32 %v1296_v43, %v5112_v56  ;;  %3512 = vtanh.f32 %v1518_v14  ;;  %v1426_v37 = vadd.f32 %v1298_v7, %v5115_v42 }
 0x22b   : > { %6136 = vst [vmem:[#allocation30_spill] sm:$0xff] %v5143_v35  ;;  %6137 = vst [vmem:[#allocation28_spill] sm:$0xff] %v5146_v11  ;;  %v1041_v22 = vmul.f32 0.044715, %v5135_v38  ;;  %v1044_v54 = vmul.f32 0.044715, %v5143_v35 }
 0x22c   : > { %v1046_v8 = vmul.f32 0.044715, %v5146_v11  ;;  %v3495_v2 = vpop.eup %3494  ;;  %v1643_v47 = vmul.f32 0.5, %v4691_v31  ;;  %v1647_v18 = vmul.f32 0.5, %v4718_v34  ;;  %v1640_v17 = vmul.f32 0.5, %v6126_v41 }
 0x22d   : > { %v1644_v25 = vmul.f32 0.5, %v6128_v21  ;;  %v3497_v33 = vpop.eup %3496  ;;  %v1897_v39 = vadd.f32 1.0, %v3495_v2  ;;  %v1043_v19 = vmul.f32 0.044715, %v5140_v4  ;;  %v1172_v36 = vmul.f32 %v1044_v54, %v5143_v35 }
 0x22e   : > { %v1174_v43 = vmul.f32 %v1046_v8, %v5146_v11  ;;  %v1901_v29 = vadd.f32 1.0, %v3497_v33  ;;  %v1552_v7 = vmul.f32 0.7978846, %v1424_v12  ;;  %v1642_v14 = vmul.f32 0.5, %v6130_v28  ;;  %v6140_v8 = vld [vmem:[#allocation18_spill] sm:$0xff] }
 0x22f   : > { %v5168_v31 = vadd.f32 %v720_v15, %v4064_v61  ;;  %v1554_v34 = vmul.f32 0.7978846, %v1426_v37  ;;  %v1646_v41 = vmul.f32 0.5, %v6132_v45  ;;  %v1169_v21 = vmul.f32 %v1041_v22, %v5135_v38 }
 0x230   : > { %v5173_v2 = vadd.f32 %v913_v9, %v4066_v0  ;;  %v3499_v42 = vpop.eup %3498  ;;  %v2025_v56 = vmul.f32 %v1897_v39, %v1641_v6  ;;  %v2029_v54 = vmul.f32 %v1901_v29, %v1645_v44  ;;  %v1393_v33 = vadd.f32 %v6140_v8, %v4782_v30 }
 0x231   : > { %v1397_v28 = vadd.f32 %v4856_v3, %v4800_v52  ;;  %v3501_v12 = vpop.eup %3500  ;;  %v1899_v15 = vadd.f32 1.0, %v3499_v42  ;;  %v1171_v37 = vmul.f32 %v1043_v19, %v5140_v4  ;;  %v1300_v45 = vmul.f32 %v1172_v36, %v5143_v35 }
 0x232   : > { %6139 = vst [vmem:[#allocation43_spill] sm:$0xff] %v5173_v2  ;;  %v1302_v22 = vmul.f32 %v1174_v43, %v5146_v11  ;;  %v5182_v13 = vpop.eup %3502  ;;  %v2121_v9 = vpack.c.bf16 %v2029_v54, %v2025_v56  ;;  %v1903_v53 = vadd.f32 1.0, %v3501_v12  ;;  %3514 = vtanh.f32 %v1552_v7  ;;  %v724_v54 = vpop.f32.mrf.mxu0 }
 0x233   : > { %v1045_v6 = vmul.f32 0.044715, %v5168_v31  ;;  %v3505_v44 = vpop.eup %3504  ;;  %3516 = vtanh.f32 %v1554_v34  ;;  %v5186_v39 = vmul.f32 %v1169_v21, %v5135_v38  ;;  %v1047_v3 = vmul.f32 0.044715, %v5173_v2 }
 0x234   : > { %v1521_v42 = vmul.f32 0.7978846, %v1393_v33  ;;  %v3507_v19 = vpop.eup %3506  ;;  %2511 = vmatprep.mubr.bf16.mxu0 %v2121_v9  ;;  %v2027_v36 = vmul.f32 %v1899_v15, %v1643_v47  ;;  %v2031_v29 = vmul.f32 %v1903_v53, %v1647_v18  ;;  %v1896_v43 = vadd.f32 1.0, %v3505_v44  ;;  %v6143_v47 = vld [vmem:[#allocation53_spill] sm:$0xff]  ;;  %v6144_v53 = vld [vmem:[#allocation55_spill] sm:$0xff] }
 0x235   : > { %6141 = vst [vmem:[#allocation48_spill] sm:$0xff] %v5186_v39  ;;  %v1525_v8 = vmul.f32 0.7978846, %v1397_v28  ;;  %v5189_v48 = vpop.eup %3508  ;;  %v1900_v56 = vadd.f32 1.0, %v3507_v19  ;;  %v5192_v7 = vmul.f32 %v1171_v37, %v5140_v4  ;;  %v1428_v34 = vadd.f32 %v1300_v45, %v5143_v35  ;;  %v917_v28 = vpop.f32.mrf.mxu1  ;;  %v6145_v37 = vld [vmem:[#allocation46_spill] sm:$0xff] }
 0x236   : > { %v1430_v21 = vadd.f32 %v1302_v22, %v5146_v11  ;;  %v3511_v12 = vpop.eup %3510  ;;  %v2123_v39 = vpack.c.bf16 %v2031_v29, %v2027_v36  ;;  %v2024_v33 = vmul.f32 %v1896_v43, %v1640_v17  ;;  %v1173_v9 = vmul.f32 %v1045_v6, %v5168_v31  ;;  %v726_v11 = vpop.f32.mrf.mxu0 }
 0x237   : > { %6142 = vst [vmem:[#allocation41_spill] sm:$0xff] %v5192_v7  ;;  %v1395_v18 = vadd.f32 %v6144_v53, %v6143_v47  ;;  %v3513_v15 = vpop.eup %3512  ;;  %v2028_v44 = vmul.f32 %v1900_v56, %v1644_v25  ;;  %v1898_v19 = vadd.f32 1.0, %v3511_v12  ;;  %3518 = vtanh.f32 %v1521_v42  ;;  %v6146_v7 = vld [vmem:[#allocation59_spill] sm:$0xff]  ;;  %v919_v56 = vpop.f32.mrf.mxu1  ;;  %v6151_v12 = vld [vmem:[#allocation40_spill] sm:$0xff] }
 0x238   : > { %v1399_v4 = vadd.f32 %v6146_v7, %v6145_v37  ;;  %2672 = vmatprep.mubr.bf16.mxu1 %v2123_v39  ;;  %v1902_v45 = vadd.f32 1.0, %v3513_v15  ;;  %v1175_v22 = vmul.f32 %v1047_v3, %v5173_v2  ;;  %3520 = vtanh.f32 %v1525_v8  ;;  %v6149_v3 = vld [vmem:[#allocation44_spill] sm:$0xff]  ;;  %v6150_v8 = vld [vmem:[#allocation54_spill] sm:$0xff] }
 0x239   : > { %v1523_v36 = vmul.f32 0.7978846, %v1395_v18  ;;  %v2120_v17 = vpack.c.bf16 %v2028_v44, %v2024_v33  ;;  %v2026_v29 = vmul.f32 %v1898_v19, %v1642_v14  ;;  %v1556_v6 = vmul.f32 0.7978846, %v1428_v34  ;;  %v6152_v14 = vld [vmem:[#allocation19_spill] sm:$0xff]  ;;  %v6154_v15 = vld [vmem:[#allocation38_spill] sm:$0xff] }
 0x23a   : > { %v1527_v43 = vmul.f32 0.7978846, %v1399_v4  ;;  %v2030_v53 = vmul.f32 %v1902_v45, %v1646_v41  ;;  %v5203_v25 = vadd.f32 %v724_v54, %v4060_v57  ;;  %v5206_v42 = vadd.f32 %v917_v28, %v4062_v58  ;;  %v6155_v44 = vld [vmem:[#allocation64_spill] sm:$0xff]  ;;  %v6156_v19 = vld [vmem:[#allocation50_spill] sm:$0xff]  ;;  %v6157_v45 = vld [vmem:[#allocation51_spill] sm:$0xff] }
 0x23b   : > { %3522 = vtanh.f32 %v1523_v36  ;;  %2512 = vmatmul.mubr.bf16.gmra.mxu0 %v2120_v17  ;;  %v1558_v39 = vmul.f32 0.7978846, %v1430_v21  ;;  %v1392_v7 = vadd.f32 %v6150_v8, %v6149_v3  ;;  %v1396_v34 = vadd.f32 %v6152_v14, %v6151_v12  ;;  %v728_v17 = vpop.f32.mrf.mxu0 }
 0x23c   : > { %6147 = vst [vmem:[#allocation31_spill] sm:$0xff] %v5203_v25  ;;  %6148 = vst [vmem:[#allocation37_spill] sm:$0xff] %v5206_v42  ;;  %3524 = vtanh.f32 %v1527_v43  ;;  %v2122_v4 = vpack.c.bf16 %v2030_v53, %v2026_v29  ;;  %v5213_v41 = vmul.f32 %v1173_v9, %v5168_v31  ;;  %v1048_v54 = vmul.f32 0.044715, %v5203_v25  ;;  %v921_v53 = vpop.f32.mrf.mxu1 }
 0x23d   : > { %v1050_v33 = vmul.f32 0.044715, %v5206_v42  ;;  %v1520_v18 = vmul.f32 0.7978846, %v1392_v7  ;;  %v1524_v28 = vmul.f32 0.7978846, %v1396_v34  ;;  %v1394_v21 = vadd.f32 %v6155_v44, %v6154_v15 }
 0x23e   : > { %6153 = vst [vmem:[#allocation45_spill] sm:$0xff] %v5213_v41  ;;  %v1398_v36 = vadd.f32 %v6157_v45, %v6156_v19  ;;  %2673 = vmatmul.mubr.bf16.gmra.mxu1 %v2122_v4  ;;  %3526 = vtanh.f32 %v1556_v6  ;;  %v5222_v29 = vmul.f32 %v1175_v22, %v5173_v2  ;;  %v1176_v9 = vmul.f32 %v1048_v54, %v5203_v25 }
 0x23f   : > { %v1178_v43 = vmul.f32 %v1050_v33, %v5206_v42  ;;  %v5226_v8 = vpop.eup %3514  ;;  %3528 = vtanh.f32 %v1520_v18  ;;  %v1522_v7 = vmul.f32 0.7978846, %v1394_v21  ;;  %v5229_v34 = vadd.f32 %v726_v11, %v4064_v61  ;;  %v730_v11 = vpop.f32.mrf.mxu0 }
 0x240   : > { %6158 = vst [vmem:[#allocation18_spill] sm:$0xff] %v5222_v29  ;;  %6159 = vst [vmem:[#allocation53_spill] sm:$0xff] %v5226_v8  ;;  %v1526_v14 = vmul.f32 0.7978846, %v1398_v36  ;;  %v5231_v44 = vpop.eup %3516  ;;  %v1304_v6 = vmul.f32 %v1176_v9, %v5203_v25  ;;  %3530 = vtanh.f32 %v1524_v28  ;;  %v5236_v4 = vadd.f32 %v919_v56, %v4066_v0  ;;  %v923_v29 = vpop.f32.mrf.mxu1 }
 0x241   : > { %6160 = vst [vmem:[#allocation55_spill] sm:$0xff] %v5231_v44  ;;  %v1306_v22 = vmul.f32 %v1178_v43, %v5206_v42  ;;  %v1649_v54 = vmul.f32 0.5, %v4782_v30  ;;  %3532 = vtanh.f32 %v1522_v7  ;;  %v5240_v33 = vadd.f32 %v728_v17, %v4060_v57 }
 0x242   : > { %6161 = vst [vmem:[#allocation46_spill] sm:$0xff] %v5236_v4  ;;  %v5243_v18 = vadd.f32 %v921_v53, %v4062_v58  ;;  %v1653_v21 = vmul.f32 0.5, %v4800_v52  ;;  %v1432_v45 = vadd.f32 %v1304_v6, %v5203_v25  ;;  %3534 = vtanh.f32 %v1526_v14 }
 0x243   : > { %6162 = vst [vmem:[#allocation59_spill] sm:$0xff] %v5240_v33  ;;  %v1049_v28 = vmul.f32 0.044715, %v5229_v34  ;;  %v1434_v56 = vadd.f32 %v1306_v22, %v5206_v42  ;;  %v1051_v36 = vmul.f32 0.044715, %v5236_v4  ;;  %3536 = vtanh.f32 %v1558_v39 }
 0x244   : > { %6163 = vst [vmem:[#allocation44_spill] sm:$0xff] %v5243_v18  ;;  %v1052_v30 = vmul.f32 0.044715, %v5240_v33  ;;  %v1054_v17 = vmul.f32 0.044715, %v5243_v18  ;;  %v3519_v9 = vpop.eup %3518  ;;  %v1651_v43 = vmul.f32 0.5, %v6143_v47  ;;  %v5255_v52 = vadd.f32 %v730_v11, %v4064_v61 }
 0x245   : > { %v1655_v53 = vmul.f32 0.5, %v6145_v37  ;;  %v3521_v7 = vpop.eup %3520  ;;  %v1905_v14 = vadd.f32 1.0, %v3519_v9  ;;  %v1648_v6 = vmul.f32 0.5, %v6149_v3  ;;  %v1560_v44 = vmul.f32 0.7978846, %v1432_v45 }
 0x246   : > { %v1180_v22 = vmul.f32 %v1052_v30, %v5240_v33  ;;  %v1182_v42 = vmul.f32 %v1054_v17, %v5243_v18  ;;  %v1909_v25 = vadd.f32 1.0, %v3521_v7  ;;  %v1652_v35 = vmul.f32 0.5, %v6151_v12 }
 0x247   : > { %v1177_v39 = vmul.f32 %v1049_v28, %v5229_v34  ;;  %v1562_v8 = vmul.f32 0.7978846, %v1434_v56  ;;  %v1650_v37 = vmul.f32 0.5, %v6154_v15  ;;  %v1179_v11 = vmul.f32 %v1051_v36, %v5236_v4  ;;  %v6164_v56 = vld [vmem:[#allocation24_spill] sm:$0xff] }
 0x248   : > { %v3523_v47 = vpop.eup %3522  ;;  %v1308_v9 = vmul.f32 %v1180_v22, %v5240_v33  ;;  %v2033_v2 = vmul.f32 %v1905_v14, %v1649_v54  ;;  %v2037_v30 = vmul.f32 %v1909_v25, %v1653_v21  ;;  %v1053_v17 = vmul.f32 0.044715, %v5255_v52 }
 0x249   : > { %v3525_v3 = vpop.eup %3524  ;;  %v1907_v41 = vadd.f32 1.0, %v3523_v47  ;;  %v1654_v12 = vmul.f32 0.5, %v6156_v19  ;;  %v1310_v28 = vmul.f32 %v1182_v42, %v5243_v18  ;;  %v1401_v7 = vadd.f32 %v6164_v56, %v4870_v55  ;;  %v734_v56 = vpop.f32.mrf.mxu0 }
 0x24a   : > { %v1911_v45 = vadd.f32 1.0, %v3525_v3  ;;  %v2125_v15 = vpack.c.bf16 %v2037_v30, %v2033_v2  ;;  %3538 = vtanh.f32 %v1560_v44  ;;  %v5271_v36 = vmul.f32 %v1177_v39, %v5229_v34 }
 0x24b   : > { %v5274_v22 = vadd.f32 %v923_v29, %v4066_v0  ;;  %v5276_v25 = vpop.eup %3526  ;;  %v2035_v54 = vmul.f32 %v1907_v41, %v1651_v43  ;;  %v1436_v14 = vadd.f32 %v1308_v9, %v5240_v33  ;;  %v1405_v42 = vadd.f32 %v4946_v27, %v4888_v10 }
 0x24c   : > { %v2039_v21 = vmul.f32 %v1911_v45, %v1655_v53  ;;  %v3529_v19 = vpop.eup %3528  ;;  %2519 = vmatprep.mubr.bf16.mxu0 %v2125_v15  ;;  %3540 = vtanh.f32 %v1562_v8  ;;  %v5282_v2 = vmul.f32 %v1179_v11, %v5236_v4  ;;  %v1181_v44 = vmul.f32 %v1053_v17, %v5255_v52  ;;  %v6166_v8 = vld [vmem:[#allocation60_spill] sm:$0xff]  ;;  %v6167_v45 = vld [vmem:[#allocation17_spill] sm:$0xff] }
 0x24d   : > { %v1529_v39 = vmul.f32 0.7978846, %v1401_v7  ;;  %v3531_v29 = vpop.eup %3530  ;;  %v1904_v3 = vadd.f32 1.0, %v3529_v19  ;;  %v1438_v41 = vadd.f32 %v1310_v28, %v5243_v18  ;;  %v1533_v43 = vmul.f32 0.7978846, %v1405_v42 }
 0x24e   : > { %6165 = vst [vmem:[#allocation54_spill] sm:$0xff] %v5282_v2  ;;  %v2127_v47 = vpack.c.bf16 %v2039_v21, %v2035_v54  ;;  %v3533_v53 = vpop.eup %3532  ;;  %v1908_v9 = vadd.f32 1.0, %v3531_v29  ;;  %v1055_v30 = vmul.f32 0.044715, %v5274_v22  ;;  %v1403_v27 = vadd.f32 %v4934_v32, %v4873_v46  ;;  %v927_v21 = vpop.f32.mrf.mxu1 }
 0x24f   : > { %v1407_v11 = vadd.f32 %v6167_v45, %v6166_v8  ;;  %v3535_v15 = vpop.eup %3534  ;;  %v2032_v17 = vmul.f32 %v1904_v3, %v1648_v6  ;;  %v1906_v7 = vadd.f32 1.0, %v3533_v53  ;;  %v1564_v54 = vmul.f32 0.7978846, %v1436_v14  ;;  %v736_v14 = vpop.f32.mrf.mxu0 }
 0x250   : > { %2680 = vmatprep.mubr.bf16.mxu1 %v2127_v47  ;;  %3542 = vtanh.f32 %v1529_v39  ;;  %v2036_v28 = vmul.f32 %v1908_v9, %v1652_v35  ;;  %v1910_v42 = vadd.f32 1.0, %v3535_v15  ;;  %v1531_v19 = vmul.f32 0.7978846, %v1403_v27  ;;  %v5291_v29 = vpop.eup %3536  ;;  %v6170_v39 = vld [vmem:[#allocation61_spill] sm:$0xff]  ;;  %v6171_v47 = vld [vmem:[#allocation52_spill] sm:$0xff]  ;;  %v929_v53 = vpop.f32.mrf.mxu1 }
 0x251   : > { %3544 = vtanh.f32 %v1533_v43  ;;  %v2034_v18 = vmul.f32 %v1906_v7, %v1650_v37  ;;  %v1566_v33 = vmul.f32 0.7978846, %v1438_v41  ;;  %v1535_v32 = vmul.f32 0.7978846, %v1407_v11  ;;  %v6172_v43 = vld [vmem:[#allocation56_spill] sm:$0xff]  ;;  %v6175_v7 = vld [vmem:[#allocation57_spill] sm:$0xff] }
 0x252   : > { %v5294_v2 = vadd.f32 %v734_v56, %v4060_v57  ;;  %v2124_v45 = vpack.c.bf16 %v2036_v28, %v2032_v17  ;;  %v2038_v4 = vmul.f32 %v1910_v42, %v1654_v12  ;;  %3546 = vtanh.f32 %v1531_v19  ;;  %v6173_v37 = vld [vmem:[#allocation16_spill] sm:$0xff]  ;;  %v6174_v17 = vld [vmem:[#allocation58_spill] sm:$0xff] }
 0x253   : > { %v5297_v6 = vadd.f32 %v927_v21, %v4062_v58  ;;  %3548 = vtanh.f32 %v1535_v32  ;;  %v1400_v3 = vadd.f32 %v6171_v47, %v6170_v39  ;;  %v1404_v41 = vadd.f32 %v6173_v37, %v6172_v43  ;;  %v931_v47 = vpop.f32.mrf.mxu1 }
 0x254   : > { %6168 = vst [vmem:[#allocation40_spill] sm:$0xff] %v5294_v2  ;;  %v1056_v35 = vmul.f32 0.044715, %v5294_v2  ;;  %2520 = vmatmul.mubr.bf16.gmra.mxu0 %v2124_v45  ;;  %v2126_v9 = vpack.c.bf16 %v2038_v4, %v2034_v18  ;;  %3550 = vtanh.f32 %v1564_v54  ;;  %v1183_v12 = vmul.f32 %v1055_v30, %v5274_v22  ;;  %v6176_v4 = vld [vmem:[#allocation62_spill] sm:$0xff]  ;;  %v6177_v18 = vld [vmem:[#allocation63_spill] sm:$0xff]  ;;  %v738_v30 = vpop.f32.mrf.mxu0 }
 0x255   : > { %6169 = vst [vmem:[#allocation19_spill] sm:$0xff] %v5297_v6  ;;  %v1058_v27 = vmul.f32 0.044715, %v5297_v6  ;;  %v1528_v56 = vmul.f32 0.7978846, %v1400_v3  ;;  %v1402_v21 = vadd.f32 %v6175_v7, %v6174_v17  ;;  %3552 = vtanh.f32 %v1566_v33 }
 0x256   : > { %v1184_v11 = vmul.f32 %v1056_v35, %v5294_v2  ;;  %v1532_v15 = vmul.f32 0.7978846, %v1404_v41  ;;  %2681 = vmatmul.mubr.bf16.gmra.mxu1 %v2126_v9  ;;  %v5310_v28 = vmul.f32 %v1181_v44, %v5255_v52  ;;  %v1406_v54 = vadd.f32 %v6177_v18, %v6176_v4  ;;  %v740_v7 = vpop.f32.mrf.mxu0 }
 0x257   : > { %v1186_v42 = vmul.f32 %v1058_v27, %v5297_v6  ;;  %v5315_v19 = vpop.eup %3538  ;;  %3554 = vtanh.f32 %v1528_v56  ;;  %v1530_v45 = vmul.f32 0.7978846, %v1402_v21  ;;  %v5319_v35 = vadd.f32 %v736_v14, %v4064_v61 }
 0x258   : > { %6178 = vst [vmem:[#allocation38_spill] sm:$0xff] %v5315_v19  ;;  %v1312_v32 = vmul.f32 %v1184_v11, %v5294_v2  ;;  %v5322_v33 = vmul.f32 %v1183_v12, %v5274_v22  ;;  %3556 = vtanh.f32 %v1532_v15  ;;  %v1534_v3 = vmul.f32 0.7978846, %v1406_v54  ;;  %v5363_v19 = vpop.f32.mrf.mxu0 }
 0x259   : > { %v1314_v44 = vmul.f32 %v1186_v42, %v5297_v6  ;;  %v5325_v37 = vpop.eup %3540  ;;  %v1657_v41 = vmul.f32 0.5, %v4870_v55  ;;  %3558 = vtanh.f32 %v1530_v45  ;;  %v5329_v9 = vadd.f32 %v929_v53, %v4066_v0 }
 0x25a   : > { %6179 = vst [vmem:[#allocation64_spill] sm:$0xff] %v5325_v37  ;;  %v5332_v27 = vadd.f32 %v738_v30, %v4060_v57  ;;  %v1661_v14 = vmul.f32 0.5, %v4888_v10  ;;  %v1659_v12 = vmul.f32 0.5, %v4873_v46  ;;  %3560 = vtanh.f32 %v1534_v3 }
 0x25b   : > { %v5337_v11 = vadd.f32 %v931_v47, %v4062_v58  ;;  %v1440_v56 = vadd.f32 %v1312_v32, %v5294_v2  ;;  %v1442_v15 = vadd.f32 %v1314_v44, %v5297_v6  ;;  %v1057_v55 = vmul.f32 0.044715, %v5319_v35 }
 0x25c   : > { %v1060_v53 = vmul.f32 0.044715, %v5332_v27  ;;  %v1663_v57 = vmul.f32 0.5, %v6166_v8  ;;  %v1656_v10 = vmul.f32 0.5, %v6170_v39  ;;  %v1660_v46 = vmul.f32 0.5, %v6172_v43  ;;  %v933_v43 = vpop.f32.mrf.mxu1 }
 0x25d   : > { %6180 = vst [vmem:[#allocation50_spill] sm:$0xff] %v5337_v11  ;;  %v3543_v21 = vpop.eup %3542  ;;  %v1062_v42 = vmul.f32 0.044715, %v5337_v11  ;;  %v5348_v54 = vmul.f32 0.5, %v6174_v17  ;;  %v1059_v30 = vmul.f32 0.044715, %v5329_v9  ;;  %v5357_v39 = vadd.f32 %v740_v7, %v4064_v61 }
 0x25e   : > { %v3545_v58 = vpop.eup %3544  ;;  %v1913_v18 = vadd.f32 1.0, %v3543_v21  ;;  %v1188_v32 = vmul.f32 %v1060_v53, %v5332_v27  ;;  %v5353_v47 = vmul.f32 0.5, %v6176_v4  ;;  %v1568_v3 = vmul.f32 0.7978846, %v1440_v56 }
 0x25f   : > { %v1917_v45 = vadd.f32 1.0, %v3545_v58  ;;  %v1190_v8 = vmul.f32 %v1062_v42, %v5337_v11  ;;  %v3547_v44 = vpop.eup %3546  ;;  %v1570_v21 = vmul.f32 0.7978846, %v1442_v15  ;;  %v1185_v17 = vmul.f32 %v1057_v55, %v5319_v35 }
 0x260   : > { %v1316_v6 = vmul.f32 %v1188_v32, %v5332_v27  ;;  %v3549_v2 = vpop.eup %3548  ;;  %v2041_v37 = vmul.f32 %v1913_v18, %v1657_v41  ;;  %v1915_v58 = vadd.f32 1.0, %v3547_v44  ;;  %v1409_v4 = vadd.f32 %v5009_v62, %v4961_v16 }
 0x261   : > { %v2045_v53 = vmul.f32 %v1917_v45, %v1661_v14  ;;  %v5365_v42 = vpop.eup %3550  ;;  %v1919_v61 = vadd.f32 1.0, %v3549_v2  ;;  %v1187_v7 = vmul.f32 %v1059_v30, %v5329_v9  ;;  %v1318_v56 = vmul.f32 %v1190_v8, %v5337_v11  ;;  %v5381_v30 = vpop.f32.mrf.mxu1 }
 0x262   : > { %v5370_v15 = vadd.f32 %v933_v43, %v4066_v0  ;;  %v1444_v41 = vadd.f32 %v1316_v6, %v5332_v27  ;;  %v1061_v14 = vmul.f32 0.044715, %v5357_v39  ;;  %v1413_v62 = vadd.f32 %v5042_v1, %v4973_v24  ;;  %v5376_v18 = vpop.eup %3552  ;;  %6181 = vst [vmem:[#allocation51_spill] sm:$0xff] %v5381_v30  ;;  %v5385_v43 = vpop.f32.mrf.mxu0 }
 0x263   : > { %v2129_v55 = vpack.c.bf16 %v2045_v53, %v2041_v37  ;;  %v2043_v32 = vmul.f32 %v1915_v58, %v1659_v12  ;;  %v2047_v45 = vmul.f32 %v1919_v61, %v1663_v57  ;;  %3562 = vtanh.f32 %v1568_v3  ;;  %6182 = vst [vmem:[#allocation24_spill] sm:$0xff] %v5385_v43 }
 0x264   : > { %v5379_v2 = vmul.f32 %v1185_v17, %v5319_v35  ;;  %v3555_v0 = vpop.eup %3554  ;;  %3564 = vtanh.f32 %v1570_v21  ;;  %v1537_v37 = vmul.f32 0.7978846, %v1409_v4  ;;  %v1541_v6 = vmul.f32 0.7978846, %v1413_v62  ;;  %v6183_v21 = vld [vmem:[#allocation15_spill] sm:$0xff] }
 0x265   : > { %2527 = vmatprep.mubr.bf16.mxu0 %v2129_v55  ;;  %v1411_v8 = vadd.f32 %v5027_v5, %v4964_v50  ;;  %v3557_v1 = vpop.eup %3556  ;;  %v2131_v44 = vpack.c.bf16 %v2047_v45, %v2043_v32  ;;  %v1912_v12 = vadd.f32 1.0, %v3555_v0  ;;  %v1446_v57 = vadd.f32 %v1318_v56, %v5337_v11  ;;  %v6184_v4 = vld [vmem:[#allocation39_spill] sm:$0xff]  ;;  %v5392_v32 = vpop.f32.mrf.mxu1 }
 0x266   : > { %v1063_v3 = vmul.f32 0.044715, %v5370_v15  ;;  %v3559_v17 = vpop.eup %3558  ;;  %v1916_v53 = vadd.f32 1.0, %v3557_v1  ;;  %v1572_v58 = vmul.f32 0.7978846, %v1444_v41  ;;  %v1189_v61 = vmul.f32 %v1061_v14, %v5357_v39  ;;  %6185 = vst [vmem:[#allocation60_spill] sm:$0xff] %v5392_v32  ;;  %v5394_v11 = vpop.f32.mrf.mxu0 }
 0x267   : > { %v1415_v55 = vadd.f32 %v6184_v4, %v6183_v21  ;;  %v3561_v62 = vpop.eup %3560  ;;  %2688 = vmatprep.mubr.bf16.mxu1 %v2131_v44  ;;  %v2040_v5 = vmul.f32 %v1912_v12, %v1656_v10  ;;  %v1914_v30 = vadd.f32 1.0, %v3559_v17  ;;  %3566 = vtanh.f32 %v1537_v37  ;;  %6186 = vst [vmem:[#allocation17_spill] sm:$0xff] %v5394_v11  ;;  %v6187_v37 = vld [vmem:[#allocation29_spill] sm:$0xff]  ;;  %v6189_v12 = vld [vmem:[#allocation32_spill] sm:$0xff]  ;;  %v6190_v17 = vld [vmem:[#allocation34_spill] sm:$0xff] }
 0x268   : > { %v1539_v43 = vmul.f32 0.7978846, %v1411_v8  ;;  %v2044_v45 = vmul.f32 %v1916_v53, %v1660_v46  ;;  %v1918_v56 = vadd.f32 1.0, %v3561_v62  ;;  %3568 = vtanh.f32 %v1541_v6  ;;  %v6188_v8 = vld [vmem:[#allocation36_spill] sm:$0xff]  ;;  %v6195_v62 = vld [vmem:[#allocation25_spill] sm:$0xff] }
 0x269   : > { %v1543_v0 = vmul.f32 0.7978846, %v1415_v55  ;;  %v2042_v41 = vmul.f32 %v1914_v30, %v5348_v54  ;;  %v1574_v14 = vmul.f32 0.7978846, %v1446_v57  ;;  %v1191_v1 = vmul.f32 %v1063_v3, %v5370_v15  ;;  %v6191_v30 = vld [vmem:[#allocation35_spill] sm:$0xff]  ;;  %v6194_v55 = vld [vmem:[#allocation26_spill] sm:$0xff] }
 0x26a   : > { %3570 = vtanh.f32 %v1539_v43  ;;  %v2128_v4 = vpack.c.bf16 %v2044_v45, %v2040_v5  ;;  %v2046_v10 = vmul.f32 %v1918_v56, %v5353_v47  ;;  %v1408_v44 = vadd.f32 %v6188_v8, %v6187_v37  ;;  %v6192_v57 = vld [vmem:[#allocation23_spill] sm:$0xff]  ;;  %v5411_v43 = vpop.f32.mrf.mxu1 }
 0x26b   : > { %3572 = vtanh.f32 %v1543_v0  ;;  %v5402_v46 = vmul.f32 %v1187_v7, %v5329_v9  ;;  %v5405_v6 = vmul.f32 %v1189_v61, %v5357_v39  ;;  %v1412_v54 = vadd.f32 %v6190_v17, %v6189_v12  ;;  %6193 = vst [vmem:[#allocation61_spill] sm:$0xff] %v5411_v43  ;;  %v5415_v7 = vpop.f32.mrf.mxu0 }
 0x26c   : > { %v1410_v3 = vadd.f32 %v6192_v57, %v6191_v30  ;;  %2528 = vmatmul.mubr.bf16.gmra.mxu0 %v2128_v4  ;;  %v2130_v47 = vpack.c.bf16 %v2046_v10, %v2042_v41  ;;  %3574 = vtanh.f32 %v1572_v58  ;;  %v1536_v53 = vmul.f32 0.7978846, %v1408_v44  ;;  %6196 = vst [vmem:[#allocation52_spill] sm:$0xff] %v5415_v7  ;;  %v5427_v8 = vpop.f32.mrf.mxu1 }
 0x26d   : > { %v1414_v5 = vadd.f32 %v6195_v62, %v6194_v55  ;;  %3576 = vtanh.f32 %v1574_v14  ;;  %v1540_v61 = vmul.f32 0.7978846, %v1412_v54  ;;  %v1417_v56 = vadd.f32 %v5097_v40, %v5051_v63  ;;  %6197 = vst [vmem:[#allocation56_spill] sm:$0xff] %v5427_v8  ;;  %v5434_v54 = vpop.f32.mrf.mxu0 }
 0x26e   : > { %v1538_v45 = vmul.f32 0.7978846, %v1410_v3  ;;  %2689 = vmatmul.mubr.bf16.gmra.mxu1 %v2130_v47  ;;  %v5420_v0 = vmul.f32 %v1191_v1, %v5370_v15  ;;  %3578 = vtanh.f32 %v1536_v53  ;;  %v1421_v58 = vadd.f32 %v5104_v49, %v5065_v23  ;;  %6198 = vst [vmem:[#allocation16_spill] sm:$0xff] %v5434_v54 }
 0x26f   : > { %v1542_v4 = vmul.f32 0.7978846, %v1414_v5  ;;  %v1665_v41 = vmul.f32 0.5, %v4961_v16  ;;  %3580 = vtanh.f32 %v1540_v61  ;;  %v1545_v10 = vmul.f32 0.7978846, %v1417_v56 }
 0x270   : > { %v1419_v14 = vadd.f32 %v5100_v26, %v5054_v60  ;;  %v5429_v44 = vpop.eup %3562  ;;  %v1669_v40 = vmul.f32 0.5, %v4973_v24  ;;  %3582 = vtanh.f32 %v1538_v45  ;;  %v1549_v1 = vmul.f32 0.7978846, %v1421_v58  ;;  %v5460_v45 = vpop.f32.mrf.mxu0 }
 0x271   : > { %v1423_v17 = vadd.f32 %v5151_v51, %v5091_v59  ;;  %v5436_v49 = vpop.eup %3564  ;;  %v1667_v16 = vmul.f32 0.5, %v4964_v50  ;;  %v1671_v57 = vmul.f32 0.5, %v6183_v21  ;;  %3584 = vtanh.f32 %v1542_v4  ;;  %v5455_v21 = vpop.f32.mrf.mxu1  ;;  %6201 = vst [vmem:[#allocation57_spill] sm:$0xff] %v5460_v45  ;;  %v6206_v45 = vld [vmem:[#allocation33_spill] sm:$0xff] }
 0x272   : > { %v1547_v26 = vmul.f32 0.7978846, %v1419_v14  ;;  %v5441_v3 = vmul.f32 0.5, %v6187_v37  ;;  %v5444_v24 = vmul.f32 0.5, %v6189_v12  ;;  %3586 = vtanh.f32 %v1545_v10  ;;  %6199 = vst [vmem:[#allocation58_spill] sm:$0xff] %v5455_v21  ;;  %v6200_v37 = vld [vmem:[#allocation20_spill] sm:$0xff]  ;;  %v5473_v7 = vpop.f32.mrf.mxu0 }
 0x273   : > { %v1551_v47 = vmul.f32 0.7978846, %v1423_v17  ;;  %v5447_v51 = vmul.f32 0.5, %v6191_v30  ;;  %v5450_v53 = vmul.f32 0.5, %v6194_v55  ;;  %v5453_v50 = vmul.f32 0.5, %v5051_v63  ;;  %v6202_v63 = vld [vmem:[#allocation48_spill] sm:$0xff] }
 0x274   : > { %3588 = vtanh.f32 %v1549_v1  ;;  %v3567_v62 = vpop.eup %3566  ;;  %v1672_v5 = vmul.f32 0.5, %v6200_v37  ;;  %v1676_v12 = vmul.f32 0.5, %v5057_v20  ;;  %v1932_v61 = vadd.f32 1.0, %v5182_v13  ;;  %v6203_v14 = vld [vmem:[#allocation22_spill] sm:$0xff]  ;;  %v6204_v17 = vld [vmem:[#allocation21_spill] sm:$0xff] }
 0x275   : > { %3590 = vtanh.f32 %v1547_v26  ;;  %v3569_v30 = vpop.eup %3568  ;;  %v1921_v56 = vadd.f32 1.0, %v3567_v62  ;;  %v1934_v55 = vadd.f32 1.0, %v5189_v48  ;;  %v1425_v4 = vadd.f32 %v6202_v63, %v5135_v38  ;;  %v6205_v20 = vld [vmem:[#allocation45_spill] sm:$0xff]  ;;  %v6207_v62 = vld [vmem:[#allocation47_spill] sm:$0xff]  ;;  %v5471_v48 = vpop.f32.mrf.mxu1 }
 0x276   : > { %3592 = vtanh.f32 %v1551_v47  ;;  %v1925_v10 = vadd.f32 1.0, %v3569_v30  ;;  %v1928_v1 = vadd.f32 1.0, %v6203_v14  ;;  %v1674_v26 = vmul.f32 0.5, %v6204_v17 }
 0x277   : > { %v3571_v58 = vpop.eup %3570  ;;  %v1429_v37 = vadd.f32 %v6205_v20, %v5168_v31  ;;  %v1678_v54 = vmul.f32 0.5, %v6206_v45  ;;  %v1930_v47 = vadd.f32 1.0, %v6207_v62  ;;  %v1553_v8 = vmul.f32 0.7978846, %v1425_v4  ;;  %v6208_v62 = vld [vmem:[#allocation27_spill] sm:$0xff] }
 0x278   : > { %v3573_v13 = vpop.eup %3572  ;;  %v1923_v21 = vadd.f32 1.0, %v3571_v58  ;;  %v2049_v43 = vmul.f32 %v1921_v56, %v1665_v41  ;;  %v2053_v63 = vmul.f32 %v1925_v10, %v1669_v40  ;;  %v5477_v11 = vmul.f32 %v1932_v61, %v1676_v12  ;;  %v6209_v41 = vld [vmem:[#allocation41_spill] sm:$0xff]  ;;  %v5491_v12 = vpop.f32.mrf.mxu1 }
 0x279   : > { %v1927_v32 = vadd.f32 1.0, %v3573_v13  ;;  %v1557_v30 = vmul.f32 0.7978846, %v1429_v37  ;;  %v5475_v14 = vpop.eup %3574  ;;  %v5479_v20 = vmul.f32 %v1934_v55, %v1678_v54  ;;  %3594 = vtanh.f32 %v1553_v8  ;;  %v5495_v55 = vpop.f32.mrf.mxu0 }
 0x27a   : > { %v2051_v17 = vmul.f32 %v1923_v21, %v1667_v16  ;;  %v5481_v45 = vpop.eup %3576  ;;  %v2133_v58 = vpack.c.bf16 %v2053_v63, %v2049_v43  ;;  %v1427_v40 = vadd.f32 %v6209_v41, %v6208_v62  ;;  %v1677_v10 = vmul.f32 0.5, %v5065_v23  ;;  %v6210_v16 = vld [vmem:[#allocation43_spill] sm:$0xff]  ;;  %v6211_v21 = vld [vmem:[#allocation18_spill] sm:$0xff] }
 0x27b   : > { %v2055_v4 = vmul.f32 %v1927_v32, %v1671_v57  ;;  %3596 = vtanh.f32 %v1557_v30  ;;  %v3579_v56 = vpop.eup %3578  ;;  %v1675_v37 = vmul.f32 0.5, %v5054_v60  ;;  %v5487_v13 = vmul.f32 %v1928_v1, %v1672_v5  ;;  %v6216_v5 = vld [vmem:[#allocation30_spill] sm:$0xff] }
 0x27c   : > { %v1431_v54 = vadd.f32 %v6211_v21, %v6210_v16  ;;  %v3581_v8 = vpop.eup %3580  ;;  %2535 = vmatprep.mubr.bf16.mxu0 %v2133_v58  ;;  %v1920_v32 = vadd.f32 1.0, %v3579_v56  ;;  %v5493_v57 = vmul.f32 %v1930_v47, %v1674_v26  ;;  %v1555_v61 = vmul.f32 0.7978846, %v1427_v40 }
 0x27d   : > { %v2135_v43 = vpack.c.bf16 %v2055_v4, %v2051_v17  ;;  %v3583_v63 = vpop.eup %3582  ;;  %v1924_v23 = vadd.f32 1.0, %v3581_v8  ;;  %v1679_v60 = vmul.f32 0.5, %v5091_v59  ;;  %v1681_v26 = vmul.f32 0.5, %v5135_v38  ;;  %v5505_v59 = vpop.f32.mrf.mxu1  ;;  %v6213_v8 = vld [vmem:[#allocation53_spill] sm:$0xff] }
 0x27e   : > { %v1559_v1 = vmul.f32 0.7978846, %v1431_v54  ;;  %v3585_v30 = vpop.eup %3584  ;;  %v1922_v41 = vadd.f32 1.0, %v3583_v63  ;;  %3598 = vtanh.f32 %v1555_v61  ;;  %v2048_v58 = vmul.f32 %v1920_v32, %v5441_v3  ;;  %6212 = vst [vmem:[#allocation62_spill] sm:$0xff] %v5505_v59  ;;  %v5510_v17 = vpop.f32.mrf.mxu0 }
 0x27f   : > { %2696 = vmatprep.mubr.bf16.mxu1 %v2135_v43  ;;  %v3587_v47 = vpop.eup %3586  ;;  %v2052_v4 = vmul.f32 %v1924_v23, %v5444_v24  ;;  %v1926_v40 = vadd.f32 1.0, %v3585_v30  ;;  %v1685_v54 = vmul.f32 0.5, %v5168_v31  ;;  %v1936_v43 = vadd.f32 1.0, %v6213_v8  ;;  %6214 = vst [vmem:[#allocation63_spill] sm:$0xff] %v5510_v17 }
 0x280   : > { %3600 = vtanh.f32 %v1559_v1  ;;  %v1929_v21 = vadd.f32 1.0, %v3587_v47  ;;  %v1940_v63 = vadd.f32 1.0, %v5276_v25  ;;  %v2050_v3 = vmul.f32 %v1922_v41, %v5447_v51  ;;  %v6215_v47 = vld [vmem:[#allocation49_spill] sm:$0xff] }
 0x281   : > { %v3589_v56 = vpop.eup %3588  ;;  %v2132_v61 = vpack.c.bf16 %v2052_v4, %v2048_v58  ;;  %v2054_v24 = vmul.f32 %v1926_v40, %v5450_v53  ;;  %v5515_v30 = vmul.f32 0.5, %v6208_v62  ;;  %v1680_v31 = vmul.f32 0.5, %v6215_v47  ;;  %v5520_v4 = vpop.f32.mrf.mxu1 }
 0x282   : > { %v3591_v38 = vpop.eup %3590  ;;  %v1933_v32 = vadd.f32 1.0, %v3589_v56  ;;  %v1684_v8 = vmul.f32 0.5, %v6216_v5  ;;  %v2057_v17 = vmul.f32 %v1929_v21, %v5453_v50  ;;  %v1687_v51 = vmul.f32 0.5, %v6210_v16  ;;  %v5529_v40 = vpop.f32.mrf.mxu0 }
 0x283   : > { %v3593_v23 = vpop.eup %3592  ;;  %v1931_v1 = vadd.f32 1.0, %v3591_v38  ;;  %2536 = vmatmul.mubr.bf16.gmra.mxu0 %v2132_v61  ;;  %v2134_v25 = vpack.c.bf16 %v2054_v24, %v2050_v3  ;;  %v5523_v53 = vmul.f32 %v1936_v43, %v1680_v31  ;;  %v1433_v62 = vadd.f32 %v5271_v36, %v5229_v34  ;;  %v6217_v38 = vld [vmem:[#allocation55_spill] sm:$0xff]  ;;  %v6218_v3 = vld [vmem:[#allocation46_spill] sm:$0xff] }
 0x284   : > { %v2061_v59 = vmul.f32 %v1933_v32, %v1677_v10  ;;  %v1935_v58 = vadd.f32 1.0, %v3593_v23  ;;  %v1437_v41 = vadd.f32 %v5310_v28, %v5255_v52  ;;  %v5531_v10 = vmul.f32 %v1940_v63, %v1684_v8  ;;  %v6219_v24 = vld [vmem:[#allocation54_spill] sm:$0xff]  ;;  %v5542_v31 = vpop.f32.mrf.mxu0 }
 0x285   : > { %2697 = vmatmul.mubr.bf16.gmra.mxu1 %v2134_v25  ;;  %v2059_v56 = vmul.f32 %v1931_v1, %v1675_v37  ;;  %v1938_v61 = vadd.f32 1.0, %v6217_v38  ;;  %v1561_v16 = vmul.f32 0.7978846, %v1433_v62  ;;  %v1435_v32 = vadd.f32 %v6219_v24, %v6218_v3  ;;  %v6221_v25 = vld [vmem:[#allocation28_spill] sm:$0xff] }
 0x286   : > { %v2137_v5 = vpack.c.bf16 %v2061_v59, %v2057_v17  ;;  %v2063_v50 = vmul.f32 %v1935_v58, %v1679_v60  ;;  %v3595_v21 = vpop.eup %3594  ;;  %v1565_v43 = vmul.f32 0.7978846, %v1437_v41  ;;  %v1942_v47 = vadd.f32 1.0, %v5291_v29  ;;  %v5539_v60 = vpop.f32.mrf.mxu1  ;;  %v6220_v59 = vld [vmem:[#allocation42_spill] sm:$0xff] }
 0x287   : > { %v1937_v28 = vadd.f32 1.0, %v3595_v21  ;;  %v1439_v37 = vadd.f32 %v5322_v33, %v5274_v22  ;;  %v1682_v63 = vmul.f32 0.5, %v6220_v59  ;;  %3602 = vtanh.f32 %v1561_v16  ;;  %v6229_v59 = vld [vmem:[#allocation64_spill] sm:$0xff] }
 0x288   : > { %v3597_v36 = vpop.eup %3596  ;;  %2543 = vmatprep.mubr.bf16.mxu0 %v2137_v5  ;;  %v2139_v23 = vpack.c.bf16 %v2063_v50, %v2059_v56  ;;  %v1563_v1 = vmul.f32 0.7978846, %v1435_v32  ;;  %v2140_v8 = vpack.c.bf16 %v5531_v10, %v5523_v53  ;;  %v1686_v58 = vmul.f32 0.5, %v6221_v25  ;;  %v5554_v10 = vpop.f32.mrf.mxu1 }
 0x289   : > { %v1941_v17 = vadd.f32 1.0, %v3597_v36  ;;  %3604 = vtanh.f32 %v1565_v43  ;;  %v1567_v29 = vmul.f32 0.7978846, %v1439_v37  ;;  %v2065_v62 = vmul.f32 %v1937_v28, %v1681_v26  ;;  %v6224_v43 = vld [vmem:[#allocation59_spill] sm:$0xff]  ;;  %v5558_v32 = vpop.f32.mrf.mxu0  ;;  %v6227_v28 = vld [vmem:[#allocation37_spill] sm:$0xff]  ;;  %v6228_v37 = vld [vmem:[#allocation44_spill] sm:$0xff] }
 0x28a   : > { %2704 = vmatprep.mubr.bf16.mxu1 %v2139_v23  ;;  %v2066_v33 = vmul.f32 %v1938_v61, %v1682_v63  ;;  %3606 = vtanh.f32 %v1563_v1  ;;  %v6222_v56 = vpack.c.bf16 %v5477_v11, %v5487_v13  ;;  %v2070_v50 = vmul.f32 %v1942_v47, %v1686_v58  ;;  %v6226_v13 = vld [vmem:[#allocation38_spill] sm:$0xff] }
 0x28b   : > { %v2069_v41 = vmul.f32 %v1941_v17, %v1685_v54  ;;  %v3599_v5 = vpop.eup %3598  ;;  %v5551_v21 = vmul.f32 0.5, %v5229_v34  ;;  %3608 = vtanh.f32 %v1567_v29  ;;  %v1948_v53 = vadd.f32 1.0, %v5365_v42  ;;  %v6223_v54 = vld [vmem:[#allocation31_spill] sm:$0xff] }
 0x28c   : > { %2544 = vmatmul.mubr.bf16.gmra.mxu0 %v6222_v56  ;;  %v1939_v26 = vadd.f32 1.0, %v3599_v5  ;;  %v1688_v61 = vmul.f32 0.5, %v6223_v54  ;;  %v1692_v24 = vmul.f32 0.5, %v6224_v43  ;;  %v6225_v11 = vpack.c.bf16 %v5479_v20, %v5493_v57 }
 0x28d   : > { %v3601_v38 = vpop.eup %3600  ;;  %v2141_v16 = vpack.c.bf16 %v2069_v41, %v2065_v62  ;;  %v1944_v36 = vadd.f32 1.0, %v6226_v13  ;;  %v1950_v42 = vadd.f32 1.0, %v5376_v18  ;;  %v1441_v23 = vadd.f32 %v5379_v2, %v5319_v35  ;;  %v5575_v18 = vpop.f32.mrf.mxu1  ;;  %v6231_v13 = vld [vmem:[#allocation24_spill] sm:$0xff] }
 0x28e   : > { %2705 = vmatmul.mubr.bf16.gmra.mxu1 %v6225_v11  ;;  %v1943_v34 = vadd.f32 1.0, %v3601_v38  ;;  %v1690_v47 = vmul.f32 0.5, %v6227_v28  ;;  %v1694_v17 = vmul.f32 0.5, %v6228_v37  ;;  %v1946_v63 = vadd.f32 1.0, %v6229_v59  ;;  %v5583_v5 = vpop.f32.mrf.mxu0  ;;  %v6234_v59 = vld [vmem:[#allocation52_spill] sm:$0xff] }
 0x28f   : > { %2551 = vmatprep.mubr.bf16.mxu0 %v2141_v16  ;;  %v1445_v1 = vadd.f32 %v5405_v6, %v5357_v39  ;;  %v2067_v20 = vmul.f32 %v1939_v26, %v5515_v30  ;;  %v5573_v25 = vmul.f32 %v1948_v53, %v1692_v24  ;;  %v1569_v58 = vmul.f32 0.7978846, %v1441_v23  ;;  %v5616_v24 = vld [vmem:[%s5790_s4] ss:$0 sm:$0xff] }
 0x290   : > { %v2071_v57 = vmul.f32 %v1943_v34, %v1687_v51  ;;  %v5577_v29 = vmul.f32 %v1950_v42, %v1694_v17  ;;  %v1443_v62 = vadd.f32 %v5402_v46, %v5329_v9  ;;  %v1447_v41 = vadd.f32 %v5420_v0, %v5370_v15  ;;  %v6233_v17 = vld [vmem:[#allocation17_spill] sm:$0xff] }
 0x291   : > { %v1573_v2 = vmul.f32 0.7978846, %v1445_v1  ;;  %v1693_v30 = vmul.f32 0.5, %v5255_v52  ;;  %v5586_v51 = vmul.f32 %v1944_v36, %v1688_v61  ;;  %3610 = vtanh.f32 %v1569_v58 }
 0x292   : > { %v2143_v6 = vpack.c.bf16 %v2071_v57, %v2067_v20  ;;  %v5588_v56 = vmul.f32 %v1946_v63, %v1690_v47  ;;  %v1571_v53 = vmul.f32 0.7978846, %v1443_v62  ;;  %v1575_v38 = vmul.f32 0.7978846, %v1447_v41  ;;  %v6235_v57 = vld [vmem:[#allocation51_spill] sm:$0xff] }
 0x293   : > { %3612 = vtanh.f32 %v1573_v2  ;;  %v2142_v16 = vpack.c.bf16 %v2070_v50, %v2066_v33  ;;  %v1691_v46 = vmul.f32 0.5, %v6218_v3  ;;  %v1695_v0 = vmul.f32 0.5, %v5274_v22  ;;  %v5595_v54 = vpop.f32.mrf.mxu1 }
 0x294   : > { %2712 = vmatprep.mubr.bf16.mxu1 %v2143_v6  ;;  %2552 = vmatmul.mubr.bf16.gmra.mxu0 %v2140_v8  ;;  %v5593_v26 = vmul.f32 0.5, %v5319_v35  ;;  %v2144_v52 = vpack.c.bf16 %v5573_v25, %v5586_v51  ;;  %v2146_v61 = vpack.c.bf16 %v5577_v29, %v5588_v56  ;;  %v5602_v43 = vmul.f32 0.5, %v5357_v39  ;;  %v3007_v8 = vpop.f32.mrf.mxu0  ;;  %v3603_v33 = vpop.eup %3602  ;;  %v6230_v35 = vld [vmem:[#allocation40_spill] sm:$0xff] }
 0x295   : > { %3614 = vtanh.f32 %v1571_v53  ;;  %v5605_v22 = vmul.f32 0.5, %v5329_v9  ;;  %v5608_v3 = vmul.f32 0.5, %v6230_v35  ;;  %v5611_v50 = vmul.f32 0.5, %v5332_v27  ;;  %v3119_v42 = vpop.f32.mrf.mxu1  ;;  %v6232_v27 = vld [vmem:[#allocation50_spill] sm:$0xff]  ;;  %v6238_v6 = vld [vmem:[#allocation56_spill] sm:$0xff] }
 0x296   : > { %2713 = vmatmul.mubr.bf16.gmra.mxu1 %v2142_v16  ;;  %3616 = vtanh.f32 %v1575_v38  ;;  %v3605_v39 = vpop.eup %3604  ;;  %v1945_v11 = vadd.f32 1.0, %v3603_v33  ;;  %v5619_v34 = vadd.f32 1.0, %v5429_v44  ;;  %v1956_v9 = vadd.f32 1.0, %v5475_v14  ;;  %v3009_v58 = vpop.f32.mrf.mxu0  ;;  %v6240_v33 = vld [vmem:[#allocation57_spill] sm:$0xff] }
 0x297   : > { %v2990_v36 = vadd.f32 %v6231_v13, %v5363_v19  ;;  %v3607_v23 = vpop.eup %3606  ;;  %v1949_v28 = vadd.f32 1.0, %v3605_v39  ;;  %v5625_v47 = vmul.f32 0.5, %v6232_v27  ;;  %v5628_v37 = vadd.f32 1.0, %v5436_v49  ;;  %v6236_v19 = vld [vmem:[#allocation60_spill] sm:$0xff]  ;;  %v6237_v49 = vld [vmem:[#allocation61_spill] sm:$0xff]  ;;  %v3121_v39 = vpop.f32.mrf.mxu1 }
 0x298   : > { %v2993_v63 = vadd.f32 %v6234_v59, %v6233_v17  ;;  %v3609_v1 = vpop.eup %3608  ;;  %v2073_v44 = vmul.f32 %v1945_v11, %v5551_v21  ;;  %v1947_v20 = vadd.f32 1.0, %v3607_v23  ;;  %v3102_v25 = vadd.f32 %v6236_v19, %v6235_v57  ;;  %v6239_v21 = vld [vmem:[#allocation16_spill] sm:$0xff]  ;;  %v6243_v17 = vld [vmem:[#allocation63_spill] sm:$0xff]  ;;  %v3010_v59 = vpop.f32.mrf.mxu0 }
 0x299   : > { %v2450_v14 = vadd.f32 %v2990_v36, %v5616_v24  ;;  %v2077_v2 = vmul.f32 %v1949_v28, %v1693_v30  ;;  %v1951_v62 = vadd.f32 1.0, %v3609_v1  ;;  %v3105_v51 = vadd.f32 %v6238_v6, %v6237_v49  ;;  %v6242_v28 = vld [vmem:[#allocation62_spill] sm:$0xff] }
 0x29a   : > { %v2453_v41 = vadd.f32 %v2993_v63, %v5616_v24  ;;  %v2075_v53 = vmul.f32 %v1947_v20, %v1691_v46  ;;  %v1958_v38 = vadd.f32 1.0, %v5481_v45  ;;  %v2996_v35 = vadd.f32 %v6240_v33, %v6239_v21  ;;  %v6241_v45 = vld [vmem:[#allocation58_spill] sm:$0xff] }
 0x29b   : > { %v2611_v16 = vadd.f32 %v3102_v25, %v2450_v14  ;;  %v2145_v11 = vpack.c.bf16 %v2077_v2, %v2073_v44  ;;  %v2079_v13 = vmul.f32 %v1951_v62, %v1695_v0  ;;  %v2999_v30 = vadd.f32 %v5495_v55, %v5473_v7  ;;  %v3122_v14 = vpop.f32.mrf.mxu1 }
 0x29c   : > { %v2614_v36 = vadd.f32 %v3105_v51, %v2453_v41  ;;  %v2458_v46 = vadd.f32 %v2996_v35, %v5616_v24  ;;  %v3108_v23 = vadd.f32 %v5471_v48, %v6241_v45  ;;  %v3111_v27 = vadd.f32 %v6242_v28, %v5491_v12  ;;  %v6244_v51 = vld [vmem:[#allocation19_spill] sm:$0xff] }
 0x29d   : > { %2737 = vst [vmem:[%s5646_s15] sm:$0xff] %v2611_v16  ;;  %v3002_v0 = vadd.f32 %v5529_v40, %v6243_v17  ;;  %2559 = vmatprep.mubr.bf16.mxu0 %v2145_v11  ;;  %v2147_v7 = vpack.c.bf16 %v2079_v13, %v2075_v53  ;;  %v2461_v55 = vadd.f32 %v2999_v30, %v5616_v24  ;;  %v1698_v53 = vmul.f32 0.5, %v6244_v51 }
 0x29e   : > { %2738 = vst [vmem:[%s5646_s15 + $0x8] sm:$0xff] %v2614_v36  ;;  %v3114_v63 = vadd.f32 %v5539_v60, %v5520_v4  ;;  %v3005_v1 = vadd.f32 %v5558_v32, %v5542_v31  ;;  %v3611_v48 = vpop.eup %3610  ;;  %2560 = vmatmul.mubr.bf16.gmra.mxu0 %v2144_v52  ;;  %v2619_v44 = vadd.f32 %v3108_v23, %v2458_v46 }
 0x29f   : > { %v2466_v12 = vadd.f32 %v3002_v0, %v5616_v24  ;;  %v3117_v40 = vadd.f32 %v5575_v18, %v5554_v10  ;;  %v3008_v20 = vadd.f32 %v3007_v8, %v5583_v5  ;;  %2720 = vmatprep.mubr.bf16.mxu1 %v2147_v7  ;;  %v1953_v19 = vadd.f32 1.0, %v3611_v48 }
 0x2a0   : > { %v3613_v57 = vpop.eup %3612  ;;  %v2622_v4 = vadd.f32 %v3111_v27, %v2461_v55  ;;  %v2469_v60 = vadd.f32 %v3005_v1, %v5616_v24  ;;  %v3011_v31 = vadd.f32 %v3010_v59, %v3009_v58  ;;  %2721 = vmatmul.mubr.bf16.gmra.mxu1 %v2146_v61  ;;  %2739 = vst [vmem:[%s5646_s15 + $0x10] sm:$0xff] %v2619_v44 }
 0x2a1   : > { %v1957_v32 = vadd.f32 1.0, %v3613_v57  ;;  %v2627_v52 = vadd.f32 %v3114_v63, %v2466_v12  ;;  %v2474_v10 = vadd.f32 %v3008_v20, %v5616_v24  ;;  %v3120_v18 = vadd.f32 %v3119_v42, %v5595_v54 }
 0x2a2   : > { %v3615_v5 = vpop.eup %3614  ;;  %v2084_v8 = vmul.f32 %v1956_v9, %v5611_v50  ;;  %2740 = vst [vmem:[%s5646_s15 + $0x18] sm:$0xff] %v2622_v4  ;;  %v2630_v25 = vadd.f32 %v3117_v40, %v2469_v60  ;;  %v2477_v58 = vadd.f32 %v3011_v31, %v5616_v24  ;;  %v3123_v2 = vadd.f32 %v3122_v14, %v3121_v39 }
 0x2a3   : > { %v3617_v29 = vpop.eup %3616  ;;  %v2081_v56 = vmul.f32 %v1953_v19, %v5593_v26  ;;  %v2085_v61 = vmul.f32 %v1957_v32, %v5602_v43  ;;  %v1955_v62 = vadd.f32 1.0, %v3615_v5  ;;  %2741 = vst [vmem:[%s5646_s15 + $0x20] sm:$0xff] %v2627_v52  ;;  %v2635_v41 = vadd.f32 %v3120_v18, %v2474_v10  ;;  %v3012_v49 = vpop.f32.mrf.mxu0 }
 0x2a4   : > { %v1703_v54 = vmul.f32 0.5, %v5370_v15  ;;  %v1959_v42 = vadd.f32 1.0, %v3617_v29  ;;  %v2080_v50 = vmul.f32 %v5619_v34, %v5608_v3  ;;  %2742 = vst [vmem:[%s5646_s15 + $0x28] sm:$0xff] %v2630_v25  ;;  %v2638_v9 = vadd.f32 %v3123_v2, %v2477_v58 }
 0x2a5   : > { %v2149_v6 = vpack.c.bf16 %v2085_v61, %v2081_v56  ;;  %v2086_v26 = vmul.f32 %v1958_v38, %v5625_v47  ;;  %2743 = vst [vmem:[%s5646_s15 + $0x30] sm:$0xff] %v2635_v41  ;;  %v2083_v43 = vmul.f32 %v1955_v62, %v5605_v22  ;;  %v3013_v33 = vpop.f32.mrf.mxu0  ;;  %v2082_v15 = vmul.f32 %v5628_v37, %v1698_v53 }
 0x2a6   : > { %v2087_v16 = vmul.f32 %v1959_v42, %v1703_v54  ;;  %v2148_v21 = vpack.c.bf16 %v2084_v8, %v2080_v50  ;;  %2744 = vst [vmem:[%s5646_s15 + $0x38] sm:$0xff] %v2638_v9  ;;  %v3014_v35 = vadd.f32 %v3013_v33, %v3012_v49 }
 0x2a7   : > { %2567 = vmatprep.mubr.bf16.mxu0 %v2149_v6  ;;  %v3124_v34 = vpop.f32.mrf.mxu1  ;;  %v3015_v39 = vpop.f32.mrf.mxu0  ;;  %v2150_v11 = vpack.c.bf16 %v2086_v26, %v2082_v15 }
 0x2a8   : > { %v2151_v3 = vpack.c.bf16 %v2087_v16, %v2083_v43  ;;  %2568 = vmatmul.mubr.bf16.gmra.mxu0 %v2148_v21  ;;  %v2482_v47 = vadd.f32 %v3014_v35, %v5616_v24 }
 0x2a9   : > { %v3125_v38 = vpop.f32.mrf.mxu1  ;;  %v3016_v22 = vpop.f32.mrf.mxu0 }
 0x2aa   : > { %2728 = vmatprep.mubr.bf16.mxu1 %v2151_v3  ;;  %v3126_v13 = vadd.f32 %v3125_v38, %v3124_v34  ;;  %v3017_v36 = vadd.f32 %v3016_v22, %v3015_v39 }
 0x2ab   : > { %2729 = vmatmul.mubr.bf16.gmra.mxu1 %v2150_v11  ;;  %v3127_v30 = vpop.f32.mrf.mxu1 }
 0x2ac   : > { %v2643_v46 = vadd.f32 %v3126_v13, %v2482_v47  ;;  %v2485_v37 = vadd.f32 %v3017_v36, %v5616_v24 }
 0x2ad   : > { %v3128_v45 = vpop.f32.mrf.mxu1 }
 0x2ae   : > { %2745 = vst [vmem:[%s5646_s15 + $0x40] sm:$0xff] %v2643_v46  ;;  %v3129_v23 = vadd.f32 %v3128_v45, %v3127_v30 }
 0x2b0   : > { %v2646_v28 = vadd.f32 %v3129_v23, %v2485_v37 }
 0x2b2   : > { %2746 = vst [vmem:[%s5646_s15 + $0x48] sm:$0xff] %v2646_v28 }
 0x2b8   : > { %v3018_v27 = vpop.f32.mrf.mxu0 }
 0x2ba   : > { %v3019_v17 = vpop.f32.mrf.mxu0 }
 0x2bb   : > { %v3020_v0 = vadd.f32 %v3019_v17, %v3018_v27 }
 0x2bc   : > { %v3021_v59 = vpop.f32.mrf.mxu0 }
 0x2bd   : > { %v3130_v7 = vpop.f32.mrf.mxu1  ;;  %v2490_v55 = vadd.f32 %v3020_v0, %v5616_v24 }
 0x2be   : > { %v3022_v63 = vpop.f32.mrf.mxu0 }
 0x2bf   : > { %v3131_v1 = vpop.f32.mrf.mxu1  ;;  %v3023_v48 = vadd.f32 %v3022_v63, %v3021_v59 }
 0x2c0   : > { %v3132_v44 = vadd.f32 %v3131_v1, %v3130_v7 }
 0x2c1   : > { %v3133_v12 = vpop.f32.mrf.mxu1  ;;  %v2493_v20 = vadd.f32 %v3023_v48, %v5616_v24 }
 0x2c2   : > { %v2651_v40 = vadd.f32 %v3132_v44, %v2490_v55 }
 0x2c3   : > { %v3134_v14 = vpop.f32.mrf.mxu1 }
 0x2c4   : > { %2747 = vst [vmem:[%s5646_s15 + $0x50] sm:$0xff] %v2651_v40  ;;  %v3135_v57 = vadd.f32 %v3134_v14, %v3133_v12 }
 0x2c6   : > { %v2654_v19 = vadd.f32 %v3135_v57, %v2493_v20 }
 0x2c8   : > { %2748 = vst [vmem:[%s5646_s15 + $0x58] sm:$0xff] %v2654_v19 }
 0x2cd   : > { %v3024_v4 = vpop.f32.mrf.mxu0 }
 0x2cf   : > { %v3025_v60 = vpop.f32.mrf.mxu0 }
 0x2d0   : > { %v3026_v31 = vadd.f32 %v3025_v60, %v3024_v4 }
 0x2d1   : > { %v3136_v32 = vpop.f32.mrf.mxu1  ;;  %v3027_v52 = vpop.f32.mrf.mxu0 }
 0x2d2   : > { %v2498_v10 = vadd.f32 %v3026_v31, %v5616_v24 }
 0x2d3   : > { %v3137_v18 = vpop.f32.mrf.mxu1  ;;  %v3028_v5 = vpop.f32.mrf.mxu0 }
 0x2d4   : > { %v3138_v8 = vadd.f32 %v3137_v18, %v3136_v32  ;;  %v3029_v25 = vadd.f32 %v3028_v5, %v3027_v52 }
 0x2d5   : > { %v3139_v58 = vpop.f32.mrf.mxu1 }
 0x2d6   : > { %v2659_v2 = vadd.f32 %v3138_v8, %v2498_v10  ;;  %v2501_v29 = vadd.f32 %v3029_v25, %v5616_v24 }
 0x2d7   : > { %v3140_v56 = vpop.f32.mrf.mxu1 }
 0x2d8   : > { %2749 = vst [vmem:[%s5646_s15 + $0x60] sm:$0xff] %v2659_v2  ;;  %v3141_v61 = vadd.f32 %v3140_v56, %v3139_v58 }
 0x2da   : > { %v2662_v62 = vadd.f32 %v3141_v61, %v2501_v29 }
 0x2dc   : > { %2750 = vst [vmem:[%s5646_s15 + $0x68] sm:$0xff] %v2662_v62 }
 0x2e2   : > { %v3030_v41 = vpop.f32.mrf.mxu0 }
 0x2e4   : > { %v3031_v54 = vpop.f32.mrf.mxu0 }
 0x2e5   : > { %v3032_v42 = vadd.f32 %v3031_v54, %v3030_v41 }
 0x2e6   : > { %v3033_v50 = vpop.f32.mrf.mxu0 }
 0x2e7   : > { %v3142_v9 = vpop.f32.mrf.mxu1  ;;  %v2506_v49 = vadd.f32 %v3032_v42, %v5616_v24 }
 0x2e8   : > { %v3034_v6 = vpop.f32.mrf.mxu0 }
 0x2e9   : > { %v3143_v51 = vpop.f32.mrf.mxu1  ;;  %v3035_v53 = vadd.f32 %v3034_v6, %v3033_v50 }
 0x2ea   : > { %v3144_v26 = vadd.f32 %v3143_v51, %v3142_v9 }
 0x2eb   : > { %v3145_v43 = vpop.f32.mrf.mxu1  ;;  %v2509_v21 = vadd.f32 %v3035_v53, %v5616_v24 }
 0x2ec   : > { %v2667_v16 = vadd.f32 %v3144_v26, %v2506_v49 }
 0x2ed   : > { %v3146_v33 = vpop.f32.mrf.mxu1 }
 0x2ee   : > { %2751 = vst [vmem:[%s5646_s15 + $0x70] sm:$0xff] %v2667_v16  ;;  %v3147_v15 = vadd.f32 %v3146_v33, %v3145_v43 }
 0x2f0   : > { %v2670_v35 = vadd.f32 %v3147_v15, %v2509_v21 }
 0x2f2   : > { %2752 = vst [vmem:[%s5646_s15 + $0x78] sm:$0xff] %v2670_v35 }
 0x2fb   : > { %v3036_v3 = vpop.f32.mrf.mxu0 }
 0x2fd   : > { %v3037_v34 = vpop.f32.mrf.mxu0 }
 0x2fe   : > { %v3148_v39 = vpop.f32.mrf.mxu1  ;;  %v3038_v11 = vadd.f32 %v3037_v34, %v3036_v3 }
 0x2ff   : > { %v3039_v47 = vpop.f32.mrf.mxu0 }
 0x300   : > { %v2514_v38 = vadd.f32 %v3038_v11, %v5616_v24  ;;  %v3149_v22 = vpop.f32.mrf.mxu1 }
 0x301   : > { %v3150_v13 = vadd.f32 %v3149_v22, %v3148_v39  ;;  %v3040_v36 = vpop.f32.mrf.mxu0 }
 0x302   : > { %v3151_v30 = vpop.f32.mrf.mxu1  ;;  %v3041_v46 = vadd.f32 %v3040_v36, %v3039_v47 }
 0x303   : > { %v2675_v37 = vadd.f32 %v3150_v13, %v2514_v38 }
 0x304   : > { %v2517_v45 = vadd.f32 %v3041_v46, %v5616_v24  ;;  %v3152_v23 = vpop.f32.mrf.mxu1 }
 0x305   : > { %2753 = vst [vmem:[%s5646_s15 + $0x80] sm:$0xff] %v2675_v37  ;;  %v3153_v28 = vadd.f32 %v3152_v23, %v3151_v30 }
 0x307   : > { %v2678_v27 = vadd.f32 %v3153_v28, %v2517_v45 }
 0x309   : > { %2754 = vst [vmem:[%s5646_s15 + $0x88] sm:$0xff] %v2678_v27 }
 0x314   : > { %v3042_v17 = vpop.f32.mrf.mxu0 }
 0x316   : > { %v3154_v0 = vpop.f32.mrf.mxu1  ;;  %v3043_v59 = vpop.f32.mrf.mxu0 }
 0x317   : > { %v3044_v7 = vadd.f32 %v3043_v59, %v3042_v17 }
 0x318   : > { %v3155_v55 = vpop.f32.mrf.mxu1  ;;  %v3045_v63 = vpop.f32.mrf.mxu0 }
 0x319   : > { %v2522_v1 = vadd.f32 %v3044_v7, %v5616_v24  ;;  %v3156_v48 = vadd.f32 %v3155_v55, %v3154_v0 }
 0x31a   : > { %v3157_v44 = vpop.f32.mrf.mxu1  ;;  %v3046_v12 = vpop.f32.mrf.mxu0 }
 0x31b   : > { %v2683_v40 = vadd.f32 %v3156_v48, %v2522_v1  ;;  %v3047_v20 = vadd.f32 %v3046_v12, %v3045_v63 }
 0x31c   : > { %v3158_v14 = vpop.f32.mrf.mxu1 }
 0x31d   : > { %2755 = vst [vmem:[%s5646_s15 + $0x90] sm:$0xff] %v2683_v40  ;;  %v2525_v57 = vadd.f32 %v3047_v20, %v5616_v24  ;;  %v3159_v19 = vadd.f32 %v3158_v14, %v3157_v44 }
 0x31f   : > { %v2686_v4 = vadd.f32 %v3159_v19, %v2525_v57 }
 0x321   : > { %2756 = vst [vmem:[%s5646_s15 + $0x98] sm:$0xff] %v2686_v4 }
 0x32c   : > { %v3048_v60 = vpop.f32.mrf.mxu0 }
 0x32e   : > { %v3160_v31 = vpop.f32.mrf.mxu1  ;;  %v3049_v32 = vpop.f32.mrf.mxu0 }
 0x32f   : > { %v3050_v52 = vadd.f32 %v3049_v32, %v3048_v60 }
 0x330   : > { %v3161_v10 = vpop.f32.mrf.mxu1  ;;  %v3051_v18 = vpop.f32.mrf.mxu0 }
 0x331   : > { %v2530_v5 = vadd.f32 %v3050_v52, %v5616_v24  ;;  %v3162_v8 = vadd.f32 %v3161_v10, %v3160_v31 }
 0x332   : > { %v3163_v25 = vpop.f32.mrf.mxu1  ;;  %v3052_v58 = vpop.f32.mrf.mxu0 }
 0x333   : > { %v2691_v2 = vadd.f32 %v3162_v8, %v2530_v5  ;;  %v3053_v29 = vadd.f32 %v3052_v58, %v3051_v18 }
 0x334   : > { %v3164_v56 = vpop.f32.mrf.mxu1 }
 0x335   : > { %2757 = vst [vmem:[%s5646_s15 + $0xa0] sm:$0xff] %v2691_v2  ;;  %v2533_v61 = vadd.f32 %v3053_v29, %v5616_v24  ;;  %v3165_v62 = vadd.f32 %v3164_v56, %v3163_v25 }
 0x337   : > { %v2694_v41 = vadd.f32 %v3165_v62, %v2533_v61 }
 0x339   : > { %2758 = vst [vmem:[%s5646_s15 + $0xa8] sm:$0xff] %v2694_v41 }
 0x343   : > { %v3054_v54 = vpop.f32.mrf.mxu0 }
 0x345   : > { %v3166_v42 = vpop.f32.mrf.mxu1  ;;  %v3055_v50 = vpop.f32.mrf.mxu0 }
 0x346   : > { %v3056_v9 = vadd.f32 %v3055_v50, %v3054_v54 }
 0x347   : > { %v3167_v49 = vpop.f32.mrf.mxu1  ;;  %v3057_v6 = vpop.f32.mrf.mxu0 }
 0x348   : > { %v2538_v51 = vadd.f32 %v3056_v9, %v5616_v24  ;;  %v3168_v53 = vadd.f32 %v3167_v49, %v3166_v42 }
 0x349   : > { %v3169_v26 = vpop.f32.mrf.mxu1  ;;  %v3058_v43 = vpop.f32.mrf.mxu0 }
 0x34a   : > { %v2699_v16 = vadd.f32 %v3168_v53, %v2538_v51  ;;  %v3059_v21 = vadd.f32 %v3058_v43, %v3057_v6 }
 0x34b   : > { %v3170_v33 = vpop.f32.mrf.mxu1 }
 0x34c   : > { %v3060_v15 = vpop.f32.mrf.mxu0  ;;  %2759 = vst [vmem:[%s5646_s15 + $0xb0] sm:$0xff] %v2699_v16  ;;  %v2541_v35 = vadd.f32 %v3059_v21, %v5616_v24  ;;  %v3171_v3 = vadd.f32 %v3170_v33, %v3169_v26 }
 0x34e   : > { %v3172_v34 = vpop.f32.mrf.mxu1  ;;  %v3061_v39 = vpop.f32.mrf.mxu0  ;;  %v2702_v11 = vadd.f32 %v3171_v3, %v2541_v35 }
 0x34f   : > { %v3062_v47 = vadd.f32 %v3061_v39, %v3060_v15 }
 0x350   : > { %v3173_v38 = vpop.f32.mrf.mxu1  ;;  %v3063_v22 = vpop.f32.mrf.mxu0  ;;  %2760 = vst [vmem:[%s5646_s15 + $0xb8] sm:$0xff] %v2702_v11 }
 0x351   : > { %v2546_v13 = vadd.f32 %v3062_v47, %v5616_v24  ;;  %v3174_v36 = vadd.f32 %v3173_v38, %v3172_v34 }
 0x352   : > { %v3175_v30 = vpop.f32.mrf.mxu1  ;;  %v3064_v46 = vpop.f32.mrf.mxu0 }
 0x353   : > { %v2707_v37 = vadd.f32 %v3174_v36, %v2546_v13  ;;  %v3065_v45 = vadd.f32 %v3064_v46, %v3063_v22 }
 0x354   : > { %v3176_v23 = vpop.f32.mrf.mxu1  ;;  %v3066_v28 = vpop.f32.mrf.mxu0 }
 0x355   : > { %2761 = vst [vmem:[%s5646_s15 + $0xc0] sm:$0xff] %v2707_v37  ;;  %v2549_v27 = vadd.f32 %v3065_v45, %v5616_v24  ;;  %v3177_v17 = vadd.f32 %v3176_v23, %v3175_v30 }
 0x356   : > { %v3178_v0 = vpop.f32.mrf.mxu1  ;;  %v3067_v59 = vpop.f32.mrf.mxu0 }
 0x357   : > { %v2710_v7 = vadd.f32 %v3177_v17, %v2549_v27  ;;  %v3068_v55 = vadd.f32 %v3067_v59, %v3066_v28 }
 0x358   : > { %v3179_v63 = vpop.f32.mrf.mxu1  ;;  %v3069_v1 = vpop.f32.mrf.mxu0 }
 0x359   : > { %2762 = vst [vmem:[%s5646_s15 + $0xc8] sm:$0xff] %v2710_v7  ;;  %v2554_v48 = vadd.f32 %v3068_v55, %v5616_v24  ;;  %v3180_v44 = vadd.f32 %v3179_v63, %v3178_v0 }
 0x35a   : > { %v3181_v12 = vpop.f32.mrf.mxu1  ;;  %v3070_v40 = vpop.f32.mrf.mxu0 }
 0x35b   : > { %v2715_v20 = vadd.f32 %v3180_v44, %v2554_v48  ;;  %v3071_v14 = vadd.f32 %v3070_v40, %v3069_v1 }
 0x35c   : > { %v3182_v57 = vpop.f32.mrf.mxu1 }
 0x35d   : > { %2763 = vst [vmem:[%s5646_s15 + $0xd0] sm:$0xff] %v2715_v20  ;;  %v2557_v19 = vadd.f32 %v3071_v14, %v5616_v24  ;;  %v3183_v4 = vadd.f32 %v3182_v57, %v3181_v12 }
 0x35e   : > { %v3072_v31 = vpop.f32.mrf.mxu0 }
 0x35f   : > { %v2718_v60 = vadd.f32 %v3183_v4, %v2557_v19 }
 0x360   : > { %v3184_v32 = vpop.f32.mrf.mxu1  ;;  %v3073_v52 = vpop.f32.mrf.mxu0 }
 0x361   : > { %2764 = vst [vmem:[%s5646_s15 + $0xd8] sm:$0xff] %v2718_v60  ;;  %v3074_v10 = vadd.f32 %v3073_v52, %v3072_v31 }
 0x362   : > { %v3185_v18 = vpop.f32.mrf.mxu1  ;;  %v3075_v5 = vpop.f32.mrf.mxu0 }
 0x363   : > { %v2562_v8 = vadd.f32 %v3074_v10, %v5616_v24  ;;  %v3186_v25 = vadd.f32 %v3185_v18, %v3184_v32 }
 0x364   : > { %v3187_v58 = vpop.f32.mrf.mxu1  ;;  %v3076_v2 = vpop.f32.mrf.mxu0 }
 0x365   : > { %v2723_v29 = vadd.f32 %v3186_v25, %v2562_v8  ;;  %v3077_v56 = vadd.f32 %v3076_v2, %v3075_v5 }
 0x366   : > { %v3188_v61 = vpop.f32.mrf.mxu1 }
 0x367   : > { %2765 = vst [vmem:[%s5646_s15 + $0xe0] sm:$0xff] %v2723_v29  ;;  %v2565_v62 = vadd.f32 %v3077_v56, %v5616_v24  ;;  %v3189_v41 = vadd.f32 %v3188_v61, %v3187_v58 }
 0x368   : > { %v3078_v54 = vpop.f32.mrf.mxu0 }
 0x369   : > { %v2726_v42 = vadd.f32 %v3189_v41, %v2565_v62 }
 0x36a   : > { %v3079_v50 = vpop.f32.mrf.mxu0 }
 0x36b   : > { %v3190_v9 = vpop.f32.mrf.mxu1  ;;  %v3080_v49 = vadd.f32 %v3079_v50, %v3078_v54  ;;  %2766 = vst [vmem:[%s5646_s15 + $0xe8] sm:$0xff] %v2726_v42 }
 0x36c   : > { %v3081_v6 = vpop.f32.mrf.mxu0 }
 0x36d   : > { %v2570_v51 = vadd.f32 %v3080_v49, %v5616_v24  ;;  %v3191_v53 = vpop.f32.mrf.mxu1 }
 0x36e   : > { %v3192_v26 = vadd.f32 %v3191_v53, %v3190_v9  ;;  %v3082_v43 = vpop.f32.mrf.mxu0 }
 0x36f   : > { %v3193_v16 = vpop.f32.mrf.mxu1  ;;  %v3083_v21 = vadd.f32 %v3082_v43, %v3081_v6 }
 0x370   : > { %v2731_v33 = vadd.f32 %v3192_v26, %v2570_v51 }
 0x371   : > { %v2573_v15 = vadd.f32 %v3083_v21, %v5616_v24  ;;  %v3194_v35 = vpop.f32.mrf.mxu1 }
 0x372   : > { %2767 = vst [vmem:[%s5646_s15 + $0xf0] sm:$0xff] %v2731_v33  ;;  %v3195_v3 = vadd.f32 %v3194_v35, %v3193_v16 }
 0x374   : > { %v2734_v34 = vadd.f32 %v3195_v3, %v2573_v15 }
 0x376   : > { %2768 = vst [vmem:[%s5646_s15 + $0xf8] sm:$0xff] %v2734_v34 }
 0x377   : > { %3737 = shalt.err (!%p3734_p9)
}
 0x378   : > { %s3738_s9 = scalar_lea.hbm %s5741_s13, 4096  ;;  %s3742_s24 = scalar_lea.hbm %s5791_s5, 16384 }
 0x379   : > { %p3739_p1 = scmp.ne.s32.totalorder %s5741_s13, %s3738_s9  ;;  %p3743_p10 = scmp.lt.s32.totalorder %s5741_s13, %s5791_s5 }
 0x37a   : > { %p3744_p12 = scmp.lt.s32.totalorder %s3742_s24, %s3738_s9 }
 0x37b   : > { %p3740_p8 = pnand %p3739_p1, %p6245_p6 }
 0x37c   : > { %p3745_p2 = por %p3744_p12, %p3743_p10 }
 0x37d   : > { %p3741_p5 = pneg %p3740_p8 }
 0x37f   : > { %p3746_p4 = pnand %p3745_p2, %p3741_p5 }
 0x381   : > { %3749 = shalt.err (!%p3746_p4)
}
 0x382   : > { %s3810_s17 = smov 128   ;;  %s3811_s27 = smov 8  }
 0x383   : > { %3210 = dma.vmem_to_hbm [thread:$0]  (%p6245_p6), %s5743_s23, 4096, %s5741_s13, %s2770_s14, %s3810_s17, %s3810_s17, %s3811_s27  }
 0x384 PF: > { %p3237_p11 = scmp.ge.s32.totalorder %s3796_s21, 2  ;;  %s2798_s29 = sand.u32 1, %s3784_s18  }
 0x385   : > { %p6246_p13 = scmp.ne.s32.totalorder %s5923_s25, 0  ;;  %s2799_s22 = scalar_lea.sflag [#allocation4], %s2798_s29 }
 0x387   : > { %p3227_p3 = pnand %p3237_p11, %p6246_p13 }
 0x389   : > { %p3228_p0 = pneg %p3227_p3 }
 0x38b   : > { %3779 = dma.done.wait (%p3228_p0), %s2799_s22, 4096  }
 0x38c   : > { %3781 = vsyncadd (%p3228_p0), %s2799_s22, 4294963200  ;;  %p20_p7 = scmp.ge.s32.totalorder %s3921_s6, 6   ;;  %s6247_s18 = smov %s3788_s19 }
 0x38d   : > { %s6248_s19 = smov %s3792_s20  ;;  %s6249_s20 = smov %s3931_s10 }
 0x38e   : > { %s6250_s21 = smov %s3921_s6  ;;  %22 = sbr.rel (!%p20_p7) target bundleno = 7 (0x7), region = 97 }
 0x393   :  { %2804 = vsyncpa [#allocation3], 1 }
 0x394   :  { %2806 = vsyncpa [#allocation3 + $0x1], 1 }
 0x395   :  { %2807 = vsyncpa [#allocation6], 1 }
 0x396   :  { %2808 = vsyncpa [#allocation9], 1 }
 0x397   :  { %2809 = vsyncpa [#allocation4], 1 }
 0x398   :  { %2811 = vsyncpa [#allocation4 + $0x1], 1 }

</bundles_post_ra>
